<compile_context>
chip_gen: v7x
topology: tpu7x:2x2x1
jax: 0.10.0
libtpu: 0.0.40
codegen_flags: <defaults>
</compile_context>

<pallas_src>
import functools

import jax
import jax.numpy as jnp
from jax import lax
from jax.experimental import pallas as pl
from jax.experimental.pallas import tpu as pltpu


# (cin, cout, kh, kw, pad_h, apply_tanh) -- matches the nn.Sequential above.
_LAYER_CFG = [
    (2, 64, 11, 2, 5, True),
    (64, 32, 9, 1, 4, True),
    (32, 16, 7, 1, 3, True),
    (16, 2, 5, 1, 2, False),
]

_BN_EPS = 1e-5


def _fused_net_kernel(x_ref, w1_ref, s1_ref, w2_ref, s2_ref, w3_ref, s3_ref,
                      w4_ref, s4_ref, o_ref, a1, a2, a3, a4, *, H, W):
    """All four Conv+BN(+Tanh) layers for one batch element, VMEM-resident.

    x_ref : (1, H*W, 4)  flattened input, channels = [x(w)_c0, x(w)_c1,
                          x(w+1)_c0, x(w+1)_c1]  (layer-1 width-2 tap folded in)
    w*_ref: (kh, Cin_tap, Cout)  BN-scale-folded conv weights
    s*_ref: (1, Cout)            per-channel shift (bias + BN offset)
    o_ref : (1, H*W, 2)          flattened output (col W-1 is scratch, dropped)
    a1..a4: ((H+2*pad)*W, Cin)   zero-H-padded activation buffers (VMEM scratch)
    """
    M = H * W  # flattened (h, w) output positions per batch element

    def conv_h(buf, y_in, w_ref, s_ref, pad, act):
        cin = buf.shape[1]
        cout = w_ref.shape[-1]
        n_taps = 2 * pad + 1
        # Zero only the H-pad rows; interior rows are fully overwritten.
        zeros_pad = jnp.zeros((pad * W, cin), jnp.float32)
        buf[0:pad * W, :] = zeros_pad
        buf[pad * W + M:2 * pad * W + M, :] = zeros_pad
        buf[pad * W:pad * W + M, :] = y_in
        acc = jnp.zeros((M, cout), jnp.float32)
        for kh in range(n_taps):            # each tap: contiguous W-aligned slice
            acc = acc + jnp.dot(buf[kh * W:kh * W + M, :], w_ref[kh],
                                preferred_element_type=jnp.float32)
        y = acc + s_ref[...]
        return jnp.tanh(y) if act else y

    y = conv_h(a1, x_ref[0], w1_ref, s1_ref, pad=5, act=True)    # 2->64  (11,2)
    y = conv_h(a2, y, w2_ref, s2_ref, pad=4, act=True)           # 64->32 (9,1)
    y = conv_h(a3, y, w3_ref, s3_ref, pad=3, act=True)           # 32->16 (7,1)
    y = conv_h(a4, y, w4_ref, s4_ref, pad=2, act=False)          # 16->2  (5,1)

    o_ref[0] = y.astype(o_ref.dtype)


def net_forward(x_nchw, kparams):
    """Full fused forward. x_nchw: (N, 2, H, W) -> (N, 2, H, W-1)."""
    (w1, s1), (w2, s2), (w3, s3), (w4, s4) = kparams
    n, cin, H, W = x_nchw.shape
    assert cin == 2
    M = H * W

    # Tiny layout plumbing, fused by XLA under jit.
    x_nhwc = jnp.transpose(x_nchw, (0, 2, 3, 1))                       # (N,H,W,2)
    # Fold the width-2 conv tap into channels: per position, [x(w), x(w+1)].
    x_shift = jnp.concatenate(
        [x_nhwc[:, :, 1:, :], jnp.zeros((n, H, 1, cin), x_nhwc.dtype)], axis=2)
    xs = jnp.concatenate([x_nhwc, x_shift], axis=-1).reshape(n, M, 2 * cin)

    kernel = functools.partial(_fused_net_kernel, H=H, W=W)
    out = pl.pallas_call(
        kernel,
        out_shape=jax.ShapeDtypeStruct((n, M, 2), jnp.float32),
        grid=(n,),
        in_specs=[
            pl.BlockSpec((1, M, 4), lambda i: (i, 0, 0)),        # xs
            pl.BlockSpec((11, 4, 64), lambda i: (0, 0, 0)),      # w1 (kh, kw*cin, cout)
            pl.BlockSpec((1, 64), lambda i: (0, 0)),             # shift1
            pl.BlockSpec((9, 64, 32), lambda i: (0, 0, 0)),      # w2
            pl.BlockSpec((1, 32), lambda i: (0, 0)),             # shift2
            pl.BlockSpec((7, 32, 16), lambda i: (0, 0, 0)),      # w3
            pl.BlockSpec((1, 16), lambda i: (0, 0)),             # shift3
            pl.BlockSpec((5, 16, 2), lambda i: (0, 0, 0)),       # w4
            pl.BlockSpec((1, 2), lambda i: (0, 0)),              # shift4
        ],
        out_specs=pl.BlockSpec((1, M, 2), lambda i: (i, 0, 0)),
        scratch_shapes=[
            pltpu.VMEM(((H + 10) * W, 4), jnp.float32),   # layer-1 padded input
            pltpu.VMEM(((H + 8) * W, 64), jnp.float32),   # layer-2 padded input
            pltpu.VMEM(((H + 6) * W, 32), jnp.float32),   # layer-3 padded input
            pltpu.VMEM(((H + 4) * W, 16), jnp.float32),   # layer-4 padded input
        ],
        compiler_params=pltpu.CompilerParams(
            dimension_semantics=("parallel",)),           # v7x: one TC per batch elem
    )(xs, w1, s1, w2, s2, w3, s3, w4, s4)

    out = out.reshape(n, H, W, 2)[:, :, :W - 1, :]   # drop the scratch column
    return jnp.transpose(out, (0, 3, 1, 2))          # NHWC -> NCHW


def init_params(key):
    """Deterministic synthetic raw parameters (conv + BN) per layer."""
    raw = []
    for (cin, cout, kh, kw, _ph, _act) in _LAYER_CFG:
        key, k_w, k_b, k_g, k_be, k_m, k_v = jax.random.split(key, 7)
        fan_in = cin * kh * kw
        # PyTorch conv weight layout is (Cout, Cin, KH, KW).
        w_oihw = jax.random.normal(k_w, (cout, cin, kh, kw), jnp.float32) / jnp.sqrt(fan_in)
        conv_b = 0.1 * jax.random.normal(k_b, (cout,), jnp.float32)
        gamma = 1.0 + 0.1 * jax.random.normal(k_g, (cout,), jnp.float32)
        beta = 0.1 * jax.random.normal(k_be, (cout,), jnp.float32)
        run_mean = 0.1 * jax.random.normal(k_m, (cout,), jnp.float32)
        run_var = 0.5 + jnp.abs(jax.random.normal(k_v, (cout,), jnp.float32))
        raw.append((w_oihw, conv_b, gamma, beta, run_mean, run_var))
    return raw


def fuse_params(raw):
    """Fold conv bias + inference BN into (scaled (kh, kw*cin, cout) weights, shift)."""
    fused = []
    for (cin, cout, kh, kw, _ph, _act), (w_oihw, b, g, be, mu, var) in zip(_LAYER_CFG, raw):
        scale = g / jnp.sqrt(var + _BN_EPS)                   # (cout,)
        shift = be + (b - mu) * scale                         # (cout,)
        w_hwio = jnp.transpose(w_oihw, (2, 3, 1, 0)) * scale  # (kh, kw, cin, cout)
        w_k = w_hwio.reshape(kh, kw * cin, cout)              # row order = (kw, cin)
        fused.append((w_k, shift.reshape(1, cout)))
    return fused


def reference_forward(x_nchw, raw):
    """Plain-JAX reference (conv + bias -> inference BN -> tanh)."""
    x = jnp.transpose(x_nchw, (0, 2, 3, 1))
    for (_cin, _cout, _kh, _kw, ph, act), (w_oihw, b, g, be, mu, var) in zip(_LAYER_CFG, raw):
        w_hwio = jnp.transpose(w_oihw, (2, 3, 1, 0))
        y = lax.conv_general_dilated(
            x, w_hwio, window_strides=(1, 1), padding=((ph, ph), (0, 0)),
            dimension_numbers=("NHWC", "HWIO", "NHWC"),
            precision=lax.Precision.HIGHEST) + b
        y = (y - mu) / jnp.sqrt(var + _BN_EPS) * g + be
        if act:
            y = jnp.tanh(y)
        x = y
    return jnp.transpose(x, (0, 3, 1, 2))


if __name__ == "__main__":
    root = jax.random.PRNGKey(0)
    k_x, k_p = jax.random.split(root)

    # Input matches the PyTorch module's NCHW convention: (N=2, C=2, H=16, W=16).
    x = jax.random.normal(k_x, (2, 2, 16, 16), jnp.float32)
    raw = init_params(k_p)
    kparams = fuse_params(raw)

    fwd = jax.jit(net_forward)
    out = jax.block_until_ready(fwd(x, kparams))
    assert out.shape == (2, 2, 16, 15), out.shape  # W shrinks by 1 (kernel width 2, no W pad)

    ref = jax.block_until_ready(reference_forward(x, raw))
    # Headroom for MXU f32-emulation passes / EUP tanh approximation.
    assert jnp.allclose(out, ref, atol=2e-2, rtol=2e-2), \
        float(jnp.max(jnp.abs(out - ref)))

    print("KERNEL_OK")
</pallas_src>

<mosaic_0001>
module attributes {stable_mosaic.version = 11 : i64} {
  func.func @_fused_net_kernel(%arg0: i32, %arg1: memref<1x256x4xf32, #tpu.memory_space<vmem>>, %arg2: memref<11x4x64xf32, #tpu.memory_space<vmem>>, %arg3: memref<1x64xf32, #tpu.memory_space<vmem>>, %arg4: memref<9x64x32xf32, #tpu.memory_space<vmem>>, %arg5: memref<1x32xf32, #tpu.memory_space<vmem>>, %arg6: memref<7x32x16xf32, #tpu.memory_space<vmem>>, %arg7: memref<1x16xf32, #tpu.memory_space<vmem>>, %arg8: memref<5x16x2xf32, #tpu.memory_space<vmem>>, %arg9: memref<1x2xf32, #tpu.memory_space<vmem>>, %arg10: memref<1x256x2xf32, #tpu.memory_space<vmem>>, %arg11: memref<416x4xf32, #tpu.memory_space<vmem>>, %arg12: memref<384x64xf32, #tpu.memory_space<vmem>>, %arg13: memref<352x32xf32, #tpu.memory_space<vmem>>, %arg14: memref<320x16xf32, #tpu.memory_space<vmem>>) attributes {dimension_semantics = [#tpu.dimension_semantics<parallel>], iteration_bounds = array<i64: 2>, scalar_prefetch = 0 : i64, scratch_operands = 4 : i64, tpu.core_type = #tpu.core_type<tc>, window_params = [{transform_indices = @transform_0, window_bounds = array<i64: 1, 256, 4>}, {pipeline_mode = #tpu.pipeline_mode<synchronous>, transform_indices = @transform_1, window_bounds = array<i64: 11, 4, 64>}, {pipeline_mode = #tpu.pipeline_mode<synchronous>, transform_indices = @transform_2, window_bounds = array<i64: 1, 64>}, {pipeline_mode = #tpu.pipeline_mode<synchronous>, transform_indices = @transform_3, window_bounds = array<i64: 9, 64, 32>}, {pipeline_mode = #tpu.pipeline_mode<synchronous>, transform_indices = @transform_4, window_bounds = array<i64: 1, 32>}, {pipeline_mode = #tpu.pipeline_mode<synchronous>, transform_indices = @transform_5, window_bounds = array<i64: 7, 32, 16>}, {pipeline_mode = #tpu.pipeline_mode<synchronous>, transform_indices = @transform_6, window_bounds = array<i64: 1, 16>}, {pipeline_mode = #tpu.pipeline_mode<synchronous>, transform_indices = @transform_7, window_bounds = array<i64: 5, 16, 2>}, {pipeline_mode = #tpu.pipeline_mode<synchronous>, transform_indices = @transform_8, window_bounds = array<i64: 1, 2>}, {transform_indices = @transform_9, window_bounds = array<i64: 1, 256, 2>}]} {
    %c0 = arith.constant 0 : index
    %c0_0 = arith.constant 0 : index
    %c0_1 = arith.constant 0 : index
    %0 = vector.load %arg1[%c0, %c0_0, %c0_1] : memref<1x256x4xf32, #tpu.memory_space<vmem>>, vector<1x256x4xf32>
    %1 = vector.shape_cast %0 : vector<1x256x4xf32> to vector<256x4xf32>
    %cst = arith.constant 0.000000e+00 : f32
    %2 = vector.broadcast %cst : f32 to vector<80x4xf32>
    %c0_2 = arith.constant 0 : index
    %c0_3 = arith.constant 0 : index
    %3 = vector.load %arg11[%c0_2, %c0_3] : memref<416x4xf32, #tpu.memory_space<vmem>>, vector<80x4xf32>
    tpu.vector_store %arg11[%c0_2, %c0_3], %2 {strides = array<i32>} : memref<416x4xf32, #tpu.memory_space<vmem>>, vector<80x4xf32>,
    %c336 = arith.constant 336 : index
    %c0_4 = arith.constant 0 : index
    %4 = vector.load %arg11[%c336, %c0_4] : memref<416x4xf32, #tpu.memory_space<vmem>>, vector<80x4xf32>
    tpu.vector_store %arg11[%c336, %c0_4], %2 {strides = array<i32>} : memref<416x4xf32, #tpu.memory_space<vmem>>, vector<80x4xf32>,
    %c80 = arith.constant 80 : index
    %c0_5 = arith.constant 0 : index
    %5 = vector.load %arg11[%c80, %c0_5] : memref<416x4xf32, #tpu.memory_space<vmem>>, vector<256x4xf32>
    tpu.vector_store %arg11[%c80, %c0_5], %1 {strides = array<i32>} : memref<416x4xf32, #tpu.memory_space<vmem>>, vector<256x4xf32>,
    %cst_6 = arith.constant 0.000000e+00 : f32
    %6 = vector.broadcast %cst_6 : f32 to vector<256x64xf32>
    %c0_7 = arith.constant 0 : index
    %c0_8 = arith.constant 0 : index
    %7 = vector.load %arg11[%c0_7, %c0_8] : memref<416x4xf32, #tpu.memory_space<vmem>>, vector<256x4xf32>
    %c0_9 = arith.constant 0 : index
    %c0_10 = arith.constant 0 : index
    %c0_11 = arith.constant 0 : index
    %8 = vector.load %arg2[%c0_9, %c0_10, %c0_11] : memref<11x4x64xf32, #tpu.memory_space<vmem>>, vector<1x4x64xf32>
    %9 = vector.shape_cast %8 : vector<1x4x64xf32> to vector<4x64xf32>
    %cst_12 = arith.constant dense<0.000000e+00> : vector<256x64xf32>
    %10 = tpu.matmul %7, %9, %cst_12 {dimension_numbers = #tpu.dot_dimension_numbers<[1], [0], [0], [1], [0, 0, 1, 1], [], []>} : vector<256x4xf32>, vector<4x64xf32>, vector<256x64xf32> -> vector<256x64xf32>
    %11 = arith.addf %6, %10 : vector<256x64xf32>
    %c16 = arith.constant 16 : index
    %c0_13 = arith.constant 0 : index
    %12 = vector.load %arg11[%c16, %c0_13] : memref<416x4xf32, #tpu.memory_space<vmem>>, vector<256x4xf32>
    %c1 = arith.constant 1 : index
    %c0_14 = arith.constant 0 : index
    %c0_15 = arith.constant 0 : index
    %13 = vector.load %arg2[%c1, %c0_14, %c0_15] : memref<11x4x64xf32, #tpu.memory_space<vmem>>, vector<1x4x64xf32>
    %14 = vector.shape_cast %13 : vector<1x4x64xf32> to vector<4x64xf32>
    %cst_16 = arith.constant dense<0.000000e+00> : vector<256x64xf32>
    %15 = tpu.matmul %12, %14, %cst_16 {dimension_numbers = #tpu.dot_dimension_numbers<[1], [0], [0], [1], [0, 0, 1, 1], [], []>} : vector<256x4xf32>, vector<4x64xf32>, vector<256x64xf32> -> vector<256x64xf32>
    %16 = arith.addf %11, %15 : vector<256x64xf32>
    %c32 = arith.constant 32 : index
    %c0_17 = arith.constant 0 : index
    %17 = vector.load %arg11[%c32, %c0_17] : memref<416x4xf32, #tpu.memory_space<vmem>>, vector<256x4xf32>
    %c2 = arith.constant 2 : index
    %c0_18 = arith.constant 0 : index
    %c0_19 = arith.constant 0 : index
    %18 = vector.load %arg2[%c2, %c0_18, %c0_19] : memref<11x4x64xf32, #tpu.memory_space<vmem>>, vector<1x4x64xf32>
    %19 = vector.shape_cast %18 : vector<1x4x64xf32> to vector<4x64xf32>
    %cst_20 = arith.constant dense<0.000000e+00> : vector<256x64xf32>
    %20 = tpu.matmul %17, %19, %cst_20 {dimension_numbers = #tpu.dot_dimension_numbers<[1], [0], [0], [1], [0, 0, 1, 1], [], []>} : vector<256x4xf32>, vector<4x64xf32>, vector<256x64xf32> -> vector<256x64xf32>
    %21 = arith.addf %16, %20 : vector<256x64xf32>
    %c48 = arith.constant 48 : index
    %c0_21 = arith.constant 0 : index
    %22 = vector.load %arg11[%c48, %c0_21] : memref<416x4xf32, #tpu.memory_space<vmem>>, vector<256x4xf32>
    %c3 = arith.constant 3 : index
    %c0_22 = arith.constant 0 : index
    %c0_23 = arith.constant 0 : index
    %23 = vector.load %arg2[%c3, %c0_22, %c0_23] : memref<11x4x64xf32, #tpu.memory_space<vmem>>, vector<1x4x64xf32>
    %24 = vector.shape_cast %23 : vector<1x4x64xf32> to vector<4x64xf32>
    %cst_24 = arith.constant dense<0.000000e+00> : vector<256x64xf32>
    %25 = tpu.matmul %22, %24, %cst_24 {dimension_numbers = #tpu.dot_dimension_numbers<[1], [0], [0], [1], [0, 0, 1, 1], [], []>} : vector<256x4xf32>, vector<4x64xf32>, vector<256x64xf32> -> vector<256x64xf32>
    %26 = arith.addf %21, %25 : vector<256x64xf32>
    %c64 = arith.constant 64 : index
    %c0_25 = arith.constant 0 : index
    %27 = vector.load %arg11[%c64, %c0_25] : memref<416x4xf32, #tpu.memory_space<vmem>>, vector<256x4xf32>
    %c4 = arith.constant 4 : index
    %c0_26 = arith.constant 0 : index
    %c0_27 = arith.constant 0 : index
    %28 = vector.load %arg2[%c4, %c0_26, %c0_27] : memref<11x4x64xf32, #tpu.memory_space<vmem>>, vector<1x4x64xf32>
    %29 = vector.shape_cast %28 : vector<1x4x64xf32> to vector<4x64xf32>
    %cst_28 = arith.constant dense<0.000000e+00> : vector<256x64xf32>
    %30 = tpu.matmul %27, %29, %cst_28 {dimension_numbers = #tpu.dot_dimension_numbers<[1], [0], [0], [1], [0, 0, 1, 1], [], []>} : vector<256x4xf32>, vector<4x64xf32>, vector<256x64xf32> -> vector<256x64xf32>
    %31 = arith.addf %26, %30 : vector<256x64xf32>
    %c80_29 = arith.constant 80 : index
    %c0_30 = arith.constant 0 : index
    %32 = vector.load %arg11[%c80_29, %c0_30] : memref<416x4xf32, #tpu.memory_space<vmem>>, vector<256x4xf32>
    %c5 = arith.constant 5 : index
    %c0_31 = arith.constant 0 : index
    %c0_32 = arith.constant 0 : index
    %33 = vector.load %arg2[%c5, %c0_31, %c0_32] : memref<11x4x64xf32, #tpu.memory_space<vmem>>, vector<1x4x64xf32>
    %34 = vector.shape_cast %33 : vector<1x4x64xf32> to vector<4x64xf32>
    %cst_33 = arith.constant dense<0.000000e+00> : vector<256x64xf32>
    %35 = tpu.matmul %32, %34, %cst_33 {dimension_numbers = #tpu.dot_dimension_numbers<[1], [0], [0], [1], [0, 0, 1, 1], [], []>} : vector<256x4xf32>, vector<4x64xf32>, vector<256x64xf32> -> vector<256x64xf32>
    %36 = arith.addf %31, %35 : vector<256x64xf32>
    %c96 = arith.constant 96 : index
    %c0_34 = arith.constant 0 : index
    %37 = vector.load %arg11[%c96, %c0_34] : memref<416x4xf32, #tpu.memory_space<vmem>>, vector<256x4xf32>
    %c6 = arith.constant 6 : index
    %c0_35 = arith.constant 0 : index
    %c0_36 = arith.constant 0 : index
    %38 = vector.load %arg2[%c6, %c0_35, %c0_36] : memref<11x4x64xf32, #tpu.memory_space<vmem>>, vector<1x4x64xf32>
    %39 = vector.shape_cast %38 : vector<1x4x64xf32> to vector<4x64xf32>
    %cst_37 = arith.constant dense<0.000000e+00> : vector<256x64xf32>
    %40 = tpu.matmul %37, %39, %cst_37 {dimension_numbers = #tpu.dot_dimension_numbers<[1], [0], [0], [1], [0, 0, 1, 1], [], []>} : vector<256x4xf32>, vector<4x64xf32>, vector<256x64xf32> -> vector<256x64xf32>
    %41 = arith.addf %36, %40 : vector<256x64xf32>
    %c112 = arith.constant 112 : index
    %c0_38 = arith.constant 0 : index
    %42 = vector.load %arg11[%c112, %c0_38] : memref<416x4xf32, #tpu.memory_space<vmem>>, vector<256x4xf32>
    %c7 = arith.constant 7 : index
    %c0_39 = arith.constant 0 : index
    %c0_40 = arith.constant 0 : index
    %43 = vector.load %arg2[%c7, %c0_39, %c0_40] : memref<11x4x64xf32, #tpu.memory_space<vmem>>, vector<1x4x64xf32>
    %44 = vector.shape_cast %43 : vector<1x4x64xf32> to vector<4x64xf32>
    %cst_41 = arith.constant dense<0.000000e+00> : vector<256x64xf32>
    %45 = tpu.matmul %42, %44, %cst_41 {dimension_numbers = #tpu.dot_dimension_numbers<[1], [0], [0], [1], [0, 0, 1, 1], [], []>} : vector<256x4xf32>, vector<4x64xf32>, vector<256x64xf32> -> vector<256x64xf32>
    %46 = arith.addf %41, %45 : vector<256x64xf32>
    %c128 = arith.constant 128 : index
    %c0_42 = arith.constant 0 : index
    %47 = vector.load %arg11[%c128, %c0_42] : memref<416x4xf32, #tpu.memory_space<vmem>>, vector<256x4xf32>
    %c8 = arith.constant 8 : index
    %c0_43 = arith.constant 0 : index
    %c0_44 = arith.constant 0 : index
    %48 = vector.load %arg2[%c8, %c0_43, %c0_44] : memref<11x4x64xf32, #tpu.memory_space<vmem>>, vector<1x4x64xf32>
    %49 = vector.shape_cast %48 : vector<1x4x64xf32> to vector<4x64xf32>
    %cst_45 = arith.constant dense<0.000000e+00> : vector<256x64xf32>
    %50 = tpu.matmul %47, %49, %cst_45 {dimension_numbers = #tpu.dot_dimension_numbers<[1], [0], [0], [1], [0, 0, 1, 1], [], []>} : vector<256x4xf32>, vector<4x64xf32>, vector<256x64xf32> -> vector<256x64xf32>
    %51 = arith.addf %46, %50 : vector<256x64xf32>
    %c144 = arith.constant 144 : index
    %c0_46 = arith.constant 0 : index
    %52 = vector.load %arg11[%c144, %c0_46] : memref<416x4xf32, #tpu.memory_space<vmem>>, vector<256x4xf32>
    %c9 = arith.constant 9 : index
    %c0_47 = arith.constant 0 : index
    %c0_48 = arith.constant 0 : index
    %53 = vector.load %arg2[%c9, %c0_47, %c0_48] : memref<11x4x64xf32, #tpu.memory_space<vmem>>, vector<1x4x64xf32>
    %54 = vector.shape_cast %53 : vector<1x4x64xf32> to vector<4x64xf32>
    %cst_49 = arith.constant dense<0.000000e+00> : vector<256x64xf32>
    %55 = tpu.matmul %52, %54, %cst_49 {dimension_numbers = #tpu.dot_dimension_numbers<[1], [0], [0], [1], [0, 0, 1, 1], [], []>} : vector<256x4xf32>, vector<4x64xf32>, vector<256x64xf32> -> vector<256x64xf32>
    %56 = arith.addf %51, %55 : vector<256x64xf32>
    %c160 = arith.constant 160 : index
    %c0_50 = arith.constant 0 : index
    %57 = vector.load %arg11[%c160, %c0_50] : memref<416x4xf32, #tpu.memory_space<vmem>>, vector<256x4xf32>
    %c10 = arith.constant 10 : index
    %c0_51 = arith.constant 0 : index
    %c0_52 = arith.constant 0 : index
    %58 = vector.load %arg2[%c10, %c0_51, %c0_52] : memref<11x4x64xf32, #tpu.memory_space<vmem>>, vector<1x4x64xf32>
    %59 = vector.shape_cast %58 : vector<1x4x64xf32> to vector<4x64xf32>
    %cst_53 = arith.constant dense<0.000000e+00> : vector<256x64xf32>
    %60 = tpu.matmul %57, %59, %cst_53 {dimension_numbers = #tpu.dot_dimension_numbers<[1], [0], [0], [1], [0, 0, 1, 1], [], []>} : vector<256x4xf32>, vector<4x64xf32>, vector<256x64xf32> -> vector<256x64xf32>
    %61 = arith.addf %56, %60 : vector<256x64xf32>
    %c0_54 = arith.constant 0 : index
    %c0_55 = arith.constant 0 : index
    %62 = vector.load %arg3[%c0_54, %c0_55] : memref<1x64xf32, #tpu.memory_space<vmem>>, vector<1x64xf32>
    %63 = vector.broadcast %62 : vector<1x64xf32> to vector<256x64xf32>
    %64 = arith.addf %61, %63 : vector<256x64xf32>
    %65 = math.tanh %64 : vector<256x64xf32>
    %cst_56 = arith.constant 0.000000e+00 : f32
    %66 = vector.broadcast %cst_56 : f32 to vector<64x64xf32>
    %c0_57 = arith.constant 0 : index
    %c0_58 = arith.constant 0 : index
    %67 = vector.load %arg12[%c0_57, %c0_58] : memref<384x64xf32, #tpu.memory_space<vmem>>, vector<64x64xf32>
    tpu.vector_store %arg12[%c0_57, %c0_58], %66 {strides = array<i32>} : memref<384x64xf32, #tpu.memory_space<vmem>>, vector<64x64xf32>,
    %c320 = arith.constant 320 : index
    %c0_59 = arith.constant 0 : index
    %68 = vector.load %arg12[%c320, %c0_59] : memref<384x64xf32, #tpu.memory_space<vmem>>, vector<64x64xf32>
    tpu.vector_store %arg12[%c320, %c0_59], %66 {strides = array<i32>} : memref<384x64xf32, #tpu.memory_space<vmem>>, vector<64x64xf32>,
    %c64_60 = arith.constant 64 : index
    %c0_61 = arith.constant 0 : index
    %69 = vector.load %arg12[%c64_60, %c0_61] : memref<384x64xf32, #tpu.memory_space<vmem>>, vector<256x64xf32>
    tpu.vector_store %arg12[%c64_60, %c0_61], %65 {strides = array<i32>} : memref<384x64xf32, #tpu.memory_space<vmem>>, vector<256x64xf32>,
    %cst_62 = arith.constant 0.000000e+00 : f32
    %70 = vector.broadcast %cst_62 : f32 to vector<256x32xf32>
    %c0_63 = arith.constant 0 : index
    %c0_64 = arith.constant 0 : index
    %71 = vector.load %arg12[%c0_63, %c0_64] : memref<384x64xf32, #tpu.memory_space<vmem>>, vector<256x64xf32>
    %c0_65 = arith.constant 0 : index
    %c0_66 = arith.constant 0 : index
    %c0_67 = arith.constant 0 : index
    %72 = vector.load %arg4[%c0_65, %c0_66, %c0_67] : memref<9x64x32xf32, #tpu.memory_space<vmem>>, vector<1x64x32xf32>
    %73 = vector.shape_cast %72 : vector<1x64x32xf32> to vector<64x32xf32>
    %cst_68 = arith.constant dense<0.000000e+00> : vector<256x32xf32>
    %74 = tpu.matmul %71, %73, %cst_68 {dimension_numbers = #tpu.dot_dimension_numbers<[1], [0], [0], [1], [0, 0, 1, 1], [], []>} : vector<256x64xf32>, vector<64x32xf32>, vector<256x32xf32> -> vector<256x32xf32>
    %75 = arith.addf %70, %74 : vector<256x32xf32>
    %c16_69 = arith.constant 16 : index
    %c0_70 = arith.constant 0 : index
    %76 = vector.load %arg12[%c16_69, %c0_70] : memref<384x64xf32, #tpu.memory_space<vmem>>, vector<256x64xf32>
    %c1_71 = arith.constant 1 : index
    %c0_72 = arith.constant 0 : index
    %c0_73 = arith.constant 0 : index
    %77 = vector.load %arg4[%c1_71, %c0_72, %c0_73] : memref<9x64x32xf32, #tpu.memory_space<vmem>>, vector<1x64x32xf32>
    %78 = vector.shape_cast %77 : vector<1x64x32xf32> to vector<64x32xf32>
    %cst_74 = arith.constant dense<0.000000e+00> : vector<256x32xf32>
    %79 = tpu.matmul %76, %78, %cst_74 {dimension_numbers = #tpu.dot_dimension_numbers<[1], [0], [0], [1], [0, 0, 1, 1], [], []>} : vector<256x64xf32>, vector<64x32xf32>, vector<256x32xf32> -> vector<256x32xf32>
    %80 = arith.addf %75, %79 : vector<256x32xf32>
    %c32_75 = arith.constant 32 : index
    %c0_76 = arith.constant 0 : index
    %81 = vector.load %arg12[%c32_75, %c0_76] : memref<384x64xf32, #tpu.memory_space<vmem>>, vector<256x64xf32>
    %c2_77 = arith.constant 2 : index
    %c0_78 = arith.constant 0 : index
    %c0_79 = arith.constant 0 : index
    %82 = vector.load %arg4[%c2_77, %c0_78, %c0_79] : memref<9x64x32xf32, #tpu.memory_space<vmem>>, vector<1x64x32xf32>
    %83 = vector.shape_cast %82 : vector<1x64x32xf32> to vector<64x32xf32>
    %cst_80 = arith.constant dense<0.000000e+00> : vector<256x32xf32>
    %84 = tpu.matmul %81, %83, %cst_80 {dimension_numbers = #tpu.dot_dimension_numbers<[1], [0], [0], [1], [0, 0, 1, 1], [], []>} : vector<256x64xf32>, vector<64x32xf32>, vector<256x32xf32> -> vector<256x32xf32>
    %85 = arith.addf %80, %84 : vector<256x32xf32>
    %c48_81 = arith.constant 48 : index
    %c0_82 = arith.constant 0 : index
    %86 = vector.load %arg12[%c48_81, %c0_82] : memref<384x64xf32, #tpu.memory_space<vmem>>, vector<256x64xf32>
    %c3_83 = arith.constant 3 : index
    %c0_84 = arith.constant 0 : index
    %c0_85 = arith.constant 0 : index
    %87 = vector.load %arg4[%c3_83, %c0_84, %c0_85] : memref<9x64x32xf32, #tpu.memory_space<vmem>>, vector<1x64x32xf32>
    %88 = vector.shape_cast %87 : vector<1x64x32xf32> to vector<64x32xf32>
    %cst_86 = arith.constant dense<0.000000e+00> : vector<256x32xf32>
    %89 = tpu.matmul %86, %88, %cst_86 {dimension_numbers = #tpu.dot_dimension_numbers<[1], [0], [0], [1], [0, 0, 1, 1], [], []>} : vector<256x64xf32>, vector<64x32xf32>, vector<256x32xf32> -> vector<256x32xf32>
    %90 = arith.addf %85, %89 : vector<256x32xf32>
    %c64_87 = arith.constant 64 : index
    %c0_88 = arith.constant 0 : index
    %91 = vector.load %arg12[%c64_87, %c0_88] : memref<384x64xf32, #tpu.memory_space<vmem>>, vector<256x64xf32>
    %c4_89 = arith.constant 4 : index
    %c0_90 = arith.constant 0 : index
    %c0_91 = arith.constant 0 : index
    %92 = vector.load %arg4[%c4_89, %c0_90, %c0_91] : memref<9x64x32xf32, #tpu.memory_space<vmem>>, vector<1x64x32xf32>
    %93 = vector.shape_cast %92 : vector<1x64x32xf32> to vector<64x32xf32>
    %cst_92 = arith.constant dense<0.000000e+00> : vector<256x32xf32>
    %94 = tpu.matmul %91, %93, %cst_92 {dimension_numbers = #tpu.dot_dimension_numbers<[1], [0], [0], [1], [0, 0, 1, 1], [], []>} : vector<256x64xf32>, vector<64x32xf32>, vector<256x32xf32> -> vector<256x32xf32>
    %95 = arith.addf %90, %94 : vector<256x32xf32>
    %c80_93 = arith.constant 80 : index
    %c0_94 = arith.constant 0 : index
    %96 = vector.load %arg12[%c80_93, %c0_94] : memref<384x64xf32, #tpu.memory_space<vmem>>, vector<256x64xf32>
    %c5_95 = arith.constant 5 : index
    %c0_96 = arith.constant 0 : index
    %c0_97 = arith.constant 0 : index
    %97 = vector.load %arg4[%c5_95, %c0_96, %c0_97] : memref<9x64x32xf32, #tpu.memory_space<vmem>>, vector<1x64x32xf32>
    %98 = vector.shape_cast %97 : vector<1x64x32xf32> to vector<64x32xf32>
    %cst_98 = arith.constant dense<0.000000e+00> : vector<256x32xf32>
    %99 = tpu.matmul %96, %98, %cst_98 {dimension_numbers = #tpu.dot_dimension_numbers<[1], [0], [0], [1], [0, 0, 1, 1], [], []>} : vector<256x64xf32>, vector<64x32xf32>, vector<256x32xf32> -> vector<256x32xf32>
    %100 = arith.addf %95, %99 : vector<256x32xf32>
    %c96_99 = arith.constant 96 : index
    %c0_100 = arith.constant 0 : index
    %101 = vector.load %arg12[%c96_99, %c0_100] : memref<384x64xf32, #tpu.memory_space<vmem>>, vector<256x64xf32>
    %c6_101 = arith.constant 6 : index
    %c0_102 = arith.constant 0 : index
    %c0_103 = arith.constant 0 : index
    %102 = vector.load %arg4[%c6_101, %c0_102, %c0_103] : memref<9x64x32xf32, #tpu.memory_space<vmem>>, vector<1x64x32xf32>
    %103 = vector.shape_cast %102 : vector<1x64x32xf32> to vector<64x32xf32>
    %cst_104 = arith.constant dense<0.000000e+00> : vector<256x32xf32>
    %104 = tpu.matmul %101, %103, %cst_104 {dimension_numbers = #tpu.dot_dimension_numbers<[1], [0], [0], [1], [0, 0, 1, 1], [], []>} : vector<256x64xf32>, vector<64x32xf32>, vector<256x32xf32> -> vector<256x32xf32>
    %105 = arith.addf %100, %104 : vector<256x32xf32>
    %c112_105 = arith.constant 112 : index
    %c0_106 = arith.constant 0 : index
    %106 = vector.load %arg12[%c112_105, %c0_106] : memref<384x64xf32, #tpu.memory_space<vmem>>, vector<256x64xf32>
    %c7_107 = arith.constant 7 : index
    %c0_108 = arith.constant 0 : index
    %c0_109 = arith.constant 0 : index
    %107 = vector.load %arg4[%c7_107, %c0_108, %c0_109] : memref<9x64x32xf32, #tpu.memory_space<vmem>>, vector<1x64x32xf32>
    %108 = vector.shape_cast %107 : vector<1x64x32xf32> to vector<64x32xf32>
    %cst_110 = arith.constant dense<0.000000e+00> : vector<256x32xf32>
    %109 = tpu.matmul %106, %108, %cst_110 {dimension_numbers = #tpu.dot_dimension_numbers<[1], [0], [0], [1], [0, 0, 1, 1], [], []>} : vector<256x64xf32>, vector<64x32xf32>, vector<256x32xf32> -> vector<256x32xf32>
    %110 = arith.addf %105, %109 : vector<256x32xf32>
    %c128_111 = arith.constant 128 : index
    %c0_112 = arith.constant 0 : index
    %111 = vector.load %arg12[%c128_111, %c0_112] : memref<384x64xf32, #tpu.memory_space<vmem>>, vector<256x64xf32>
    %c8_113 = arith.constant 8 : index
    %c0_114 = arith.constant 0 : index
    %c0_115 = arith.constant 0 : index
    %112 = vector.load %arg4[%c8_113, %c0_114, %c0_115] : memref<9x64x32xf32, #tpu.memory_space<vmem>>, vector<1x64x32xf32>
    %113 = vector.shape_cast %112 : vector<1x64x32xf32> to vector<64x32xf32>
    %cst_116 = arith.constant dense<0.000000e+00> : vector<256x32xf32>
    %114 = tpu.matmul %111, %113, %cst_116 {dimension_numbers = #tpu.dot_dimension_numbers<[1], [0], [0], [1], [0, 0, 1, 1], [], []>} : vector<256x64xf32>, vector<64x32xf32>, vector<256x32xf32> -> vector<256x32xf32>
    %115 = arith.addf %110, %114 : vector<256x32xf32>
    %c0_117 = arith.constant 0 : index
    %c0_118 = arith.constant 0 : index
    %116 = vector.load %arg5[%c0_117, %c0_118] : memref<1x32xf32, #tpu.memory_space<vmem>>, vector<1x32xf32>
    %117 = vector.broadcast %116 : vector<1x32xf32> to vector<256x32xf32>
    %118 = arith.addf %115, %117 : vector<256x32xf32>
    %119 = math.tanh %118 : vector<256x32xf32>
    %cst_119 = arith.constant 0.000000e+00 : f32
    %120 = vector.broadcast %cst_119 : f32 to vector<48x32xf32>
    %c0_120 = arith.constant 0 : index
    %c0_121 = arith.constant 0 : index
    %121 = vector.load %arg13[%c0_120, %c0_121] : memref<352x32xf32, #tpu.memory_space<vmem>>, vector<48x32xf32>
    tpu.vector_store %arg13[%c0_120, %c0_121], %120 {strides = array<i32>} : memref<352x32xf32, #tpu.memory_space<vmem>>, vector<48x32xf32>,
    %c304 = arith.constant 304 : index
    %c0_122 = arith.constant 0 : index
    %122 = vector.load %arg13[%c304, %c0_122] : memref<352x32xf32, #tpu.memory_space<vmem>>, vector<48x32xf32>
    tpu.vector_store %arg13[%c304, %c0_122], %120 {strides = array<i32>} : memref<352x32xf32, #tpu.memory_space<vmem>>, vector<48x32xf32>,
    %c48_123 = arith.constant 48 : index
    %c0_124 = arith.constant 0 : index
    %123 = vector.load %arg13[%c48_123, %c0_124] : memref<352x32xf32, #tpu.memory_space<vmem>>, vector<256x32xf32>
    tpu.vector_store %arg13[%c48_123, %c0_124], %119 {strides = array<i32>} : memref<352x32xf32, #tpu.memory_space<vmem>>, vector<256x32xf32>,
    %cst_125 = arith.constant 0.000000e+00 : f32
    %124 = vector.broadcast %cst_125 : f32 to vector<256x16xf32>
    %c0_126 = arith.constant 0 : index
    %c0_127 = arith.constant 0 : index
    %125 = vector.load %arg13[%c0_126, %c0_127] : memref<352x32xf32, #tpu.memory_space<vmem>>, vector<256x32xf32>
    %c0_128 = arith.constant 0 : index
    %c0_129 = arith.constant 0 : index
    %c0_130 = arith.constant 0 : index
    %126 = vector.load %arg6[%c0_128, %c0_129, %c0_130] : memref<7x32x16xf32, #tpu.memory_space<vmem>>, vector<1x32x16xf32>
    %127 = vector.shape_cast %126 : vector<1x32x16xf32> to vector<32x16xf32>
    %cst_131 = arith.constant dense<0.000000e+00> : vector<256x16xf32>
    %128 = tpu.matmul %125, %127, %cst_131 {dimension_numbers = #tpu.dot_dimension_numbers<[1], [0], [0], [1], [0, 0, 1, 1], [], []>} : vector<256x32xf32>, vector<32x16xf32>, vector<256x16xf32> -> vector<256x16xf32>
    %129 = arith.addf %124, %128 : vector<256x16xf32>
    %c16_132 = arith.constant 16 : index
    %c0_133 = arith.constant 0 : index
    %130 = vector.load %arg13[%c16_132, %c0_133] : memref<352x32xf32, #tpu.memory_space<vmem>>, vector<256x32xf32>
    %c1_134 = arith.constant 1 : index
    %c0_135 = arith.constant 0 : index
    %c0_136 = arith.constant 0 : index
    %131 = vector.load %arg6[%c1_134, %c0_135, %c0_136] : memref<7x32x16xf32, #tpu.memory_space<vmem>>, vector<1x32x16xf32>
    %132 = vector.shape_cast %131 : vector<1x32x16xf32> to vector<32x16xf32>
    %cst_137 = arith.constant dense<0.000000e+00> : vector<256x16xf32>
    %133 = tpu.matmul %130, %132, %cst_137 {dimension_numbers = #tpu.dot_dimension_numbers<[1], [0], [0], [1], [0, 0, 1, 1], [], []>} : vector<256x32xf32>, vector<32x16xf32>, vector<256x16xf32> -> vector<256x16xf32>
    %134 = arith.addf %129, %133 : vector<256x16xf32>
    %c32_138 = arith.constant 32 : index
    %c0_139 = arith.constant 0 : index
    %135 = vector.load %arg13[%c32_138, %c0_139] : memref<352x32xf32, #tpu.memory_space<vmem>>, vector<256x32xf32>
    %c2_140 = arith.constant 2 : index
    %c0_141 = arith.constant 0 : index
    %c0_142 = arith.constant 0 : index
    %136 = vector.load %arg6[%c2_140, %c0_141, %c0_142] : memref<7x32x16xf32, #tpu.memory_space<vmem>>, vector<1x32x16xf32>
    %137 = vector.shape_cast %136 : vector<1x32x16xf32> to vector<32x16xf32>
    %cst_143 = arith.constant dense<0.000000e+00> : vector<256x16xf32>
    %138 = tpu.matmul %135, %137, %cst_143 {dimension_numbers = #tpu.dot_dimension_numbers<[1], [0], [0], [1], [0, 0, 1, 1], [], []>} : vector<256x32xf32>, vector<32x16xf32>, vector<256x16xf32> -> vector<256x16xf32>
    %139 = arith.addf %134, %138 : vector<256x16xf32>
    %c48_144 = arith.constant 48 : index
    %c0_145 = arith.constant 0 : index
    %140 = vector.load %arg13[%c48_144, %c0_145] : memref<352x32xf32, #tpu.memory_space<vmem>>, vector<256x32xf32>
    %c3_146 = arith.constant 3 : index
    %c0_147 = arith.constant 0 : index
    %c0_148 = arith.constant 0 : index
    %141 = vector.load %arg6[%c3_146, %c0_147, %c0_148] : memref<7x32x16xf32, #tpu.memory_space<vmem>>, vector<1x32x16xf32>
    %142 = vector.shape_cast %141 : vector<1x32x16xf32> to vector<32x16xf32>
    %cst_149 = arith.constant dense<0.000000e+00> : vector<256x16xf32>
    %143 = tpu.matmul %140, %142, %cst_149 {dimension_numbers = #tpu.dot_dimension_numbers<[1], [0], [0], [1], [0, 0, 1, 1], [], []>} : vector<256x32xf32>, vector<32x16xf32>, vector<256x16xf32> -> vector<256x16xf32>
    %144 = arith.addf %139, %143 : vector<256x16xf32>
    %c64_150 = arith.constant 64 : index
    %c0_151 = arith.constant 0 : index
    %145 = vector.load %arg13[%c64_150, %c0_151] : memref<352x32xf32, #tpu.memory_space<vmem>>, vector<256x32xf32>
    %c4_152 = arith.constant 4 : index
    %c0_153 = arith.constant 0 : index
    %c0_154 = arith.constant 0 : index
    %146 = vector.load %arg6[%c4_152, %c0_153, %c0_154] : memref<7x32x16xf32, #tpu.memory_space<vmem>>, vector<1x32x16xf32>
    %147 = vector.shape_cast %146 : vector<1x32x16xf32> to vector<32x16xf32>
    %cst_155 = arith.constant dense<0.000000e+00> : vector<256x16xf32>
    %148 = tpu.matmul %145, %147, %cst_155 {dimension_numbers = #tpu.dot_dimension_numbers<[1], [0], [0], [1], [0, 0, 1, 1], [], []>} : vector<256x32xf32>, vector<32x16xf32>, vector<256x16xf32> -> vector<256x16xf32>
    %149 = arith.addf %144, %148 : vector<256x16xf32>
    %c80_156 = arith.constant 80 : index
    %c0_157 = arith.constant 0 : index
    %150 = vector.load %arg13[%c80_156, %c0_157] : memref<352x32xf32, #tpu.memory_space<vmem>>, vector<256x32xf32>
    %c5_158 = arith.constant 5 : index
    %c0_159 = arith.constant 0 : index
    %c0_160 = arith.constant 0 : index
    %151 = vector.load %arg6[%c5_158, %c0_159, %c0_160] : memref<7x32x16xf32, #tpu.memory_space<vmem>>, vector<1x32x16xf32>
    %152 = vector.shape_cast %151 : vector<1x32x16xf32> to vector<32x16xf32>
    %cst_161 = arith.constant dense<0.000000e+00> : vector<256x16xf32>
    %153 = tpu.matmul %150, %152, %cst_161 {dimension_numbers = #tpu.dot_dimension_numbers<[1], [0], [0], [1], [0, 0, 1, 1], [], []>} : vector<256x32xf32>, vector<32x16xf32>, vector<256x16xf32> -> vector<256x16xf32>
    %154 = arith.addf %149, %153 : vector<256x16xf32>
    %c96_162 = arith.constant 96 : index
    %c0_163 = arith.constant 0 : index
    %155 = vector.load %arg13[%c96_162, %c0_163] : memref<352x32xf32, #tpu.memory_space<vmem>>, vector<256x32xf32>
    %c6_164 = arith.constant 6 : index
    %c0_165 = arith.constant 0 : index
    %c0_166 = arith.constant 0 : index
    %156 = vector.load %arg6[%c6_164, %c0_165, %c0_166] : memref<7x32x16xf32, #tpu.memory_space<vmem>>, vector<1x32x16xf32>
    %157 = vector.shape_cast %156 : vector<1x32x16xf32> to vector<32x16xf32>
    %cst_167 = arith.constant dense<0.000000e+00> : vector<256x16xf32>
    %158 = tpu.matmul %155, %157, %cst_167 {dimension_numbers = #tpu.dot_dimension_numbers<[1], [0], [0], [1], [0, 0, 1, 1], [], []>} : vector<256x32xf32>, vector<32x16xf32>, vector<256x16xf32> -> vector<256x16xf32>
    %159 = arith.addf %154, %158 : vector<256x16xf32>
    %c0_168 = arith.constant 0 : index
    %c0_169 = arith.constant 0 : index
    %160 = vector.load %arg7[%c0_168, %c0_169] : memref<1x16xf32, #tpu.memory_space<vmem>>, vector<1x16xf32>
    %161 = vector.broadcast %160 : vector<1x16xf32> to vector<256x16xf32>
    %162 = arith.addf %159, %161 : vector<256x16xf32>
    %163 = math.tanh %162 : vector<256x16xf32>
    %cst_170 = arith.constant 0.000000e+00 : f32
    %164 = vector.broadcast %cst_170 : f32 to vector<32x16xf32>
    %c0_171 = arith.constant 0 : index
    %c0_172 = arith.constant 0 : index
    %165 = vector.load %arg14[%c0_171, %c0_172] : memref<320x16xf32, #tpu.memory_space<vmem>>, vector<32x16xf32>
    tpu.vector_store %arg14[%c0_171, %c0_172], %164 {strides = array<i32>} : memref<320x16xf32, #tpu.memory_space<vmem>>, vector<32x16xf32>,
    %c288 = arith.constant 288 : index
    %c0_173 = arith.constant 0 : index
    %166 = vector.load %arg14[%c288, %c0_173] : memref<320x16xf32, #tpu.memory_space<vmem>>, vector<32x16xf32>
    tpu.vector_store %arg14[%c288, %c0_173], %164 {strides = array<i32>} : memref<320x16xf32, #tpu.memory_space<vmem>>, vector<32x16xf32>,
    %c32_174 = arith.constant 32 : index
    %c0_175 = arith.constant 0 : index
    %167 = vector.load %arg14[%c32_174, %c0_175] : memref<320x16xf32, #tpu.memory_space<vmem>>, vector<256x16xf32>
    tpu.vector_store %arg14[%c32_174, %c0_175], %163 {strides = array<i32>} : memref<320x16xf32, #tpu.memory_space<vmem>>, vector<256x16xf32>,
    %cst_176 = arith.constant 0.000000e+00 : f32
    %168 = vector.broadcast %cst_176 : f32 to vector<256x2xf32>
    %c0_177 = arith.constant 0 : index
    %c0_178 = arith.constant 0 : index
    %169 = vector.load %arg14[%c0_177, %c0_178] : memref<320x16xf32, #tpu.memory_space<vmem>>, vector<256x16xf32>
    %c0_179 = arith.constant 0 : index
    %c0_180 = arith.constant 0 : index
    %c0_181 = arith.constant 0 : index
    %170 = vector.load %arg8[%c0_179, %c0_180, %c0_181] : memref<5x16x2xf32, #tpu.memory_space<vmem>>, vector<1x16x2xf32>
    %171 = vector.shape_cast %170 : vector<1x16x2xf32> to vector<16x2xf32>
    %cst_182 = arith.constant dense<0.000000e+00> : vector<256x2xf32>
    %172 = tpu.matmul %169, %171, %cst_182 {dimension_numbers = #tpu.dot_dimension_numbers<[1], [0], [0], [1], [0, 0, 1, 1], [], []>} : vector<256x16xf32>, vector<16x2xf32>, vector<256x2xf32> -> vector<256x2xf32>
    %173 = arith.addf %168, %172 : vector<256x2xf32>
    %c16_183 = arith.constant 16 : index
    %c0_184 = arith.constant 0 : index
    %174 = vector.load %arg14[%c16_183, %c0_184] : memref<320x16xf32, #tpu.memory_space<vmem>>, vector<256x16xf32>
    %c1_185 = arith.constant 1 : index
    %c0_186 = arith.constant 0 : index
    %c0_187 = arith.constant 0 : index
    %175 = vector.load %arg8[%c1_185, %c0_186, %c0_187] : memref<5x16x2xf32, #tpu.memory_space<vmem>>, vector<1x16x2xf32>
    %176 = vector.shape_cast %175 : vector<1x16x2xf32> to vector<16x2xf32>
    %cst_188 = arith.constant dense<0.000000e+00> : vector<256x2xf32>
    %177 = tpu.matmul %174, %176, %cst_188 {dimension_numbers = #tpu.dot_dimension_numbers<[1], [0], [0], [1], [0, 0, 1, 1], [], []>} : vector<256x16xf32>, vector<16x2xf32>, vector<256x2xf32> -> vector<256x2xf32>
    %178 = arith.addf %173, %177 : vector<256x2xf32>
    %c32_189 = arith.constant 32 : index
    %c0_190 = arith.constant 0 : index
    %179 = vector.load %arg14[%c32_189, %c0_190] : memref<320x16xf32, #tpu.memory_space<vmem>>, vector<256x16xf32>
    %c2_191 = arith.constant 2 : index
    %c0_192 = arith.constant 0 : index
    %c0_193 = arith.constant 0 : index
    %180 = vector.load %arg8[%c2_191, %c0_192, %c0_193] : memref<5x16x2xf32, #tpu.memory_space<vmem>>, vector<1x16x2xf32>
    %181 = vector.shape_cast %180 : vector<1x16x2xf32> to vector<16x2xf32>
    %cst_194 = arith.constant dense<0.000000e+00> : vector<256x2xf32>
    %182 = tpu.matmul %179, %181, %cst_194 {dimension_numbers = #tpu.dot_dimension_numbers<[1], [0], [0], [1], [0, 0, 1, 1], [], []>} : vector<256x16xf32>, vector<16x2xf32>, vector<256x2xf32> -> vector<256x2xf32>
    %183 = arith.addf %178, %182 : vector<256x2xf32>
    %c48_195 = arith.constant 48 : index
    %c0_196 = arith.constant 0 : index
    %184 = vector.load %arg14[%c48_195, %c0_196] : memref<320x16xf32, #tpu.memory_space<vmem>>, vector<256x16xf32>
    %c3_197 = arith.constant 3 : index
    %c0_198 = arith.constant 0 : index
    %c0_199 = arith.constant 0 : index
    %185 = vector.load %arg8[%c3_197, %c0_198, %c0_199] : memref<5x16x2xf32, #tpu.memory_space<vmem>>, vector<1x16x2xf32>
    %186 = vector.shape_cast %185 : vector<1x16x2xf32> to vector<16x2xf32>
    %cst_200 = arith.constant dense<0.000000e+00> : vector<256x2xf32>
    %187 = tpu.matmul %184, %186, %cst_200 {dimension_numbers = #tpu.dot_dimension_numbers<[1], [0], [0], [1], [0, 0, 1, 1], [], []>} : vector<256x16xf32>, vector<16x2xf32>, vector<256x2xf32> -> vector<256x2xf32>
    %188 = arith.addf %183, %187 : vector<256x2xf32>
    %c64_201 = arith.constant 64 : index
    %c0_202 = arith.constant 0 : index
    %189 = vector.load %arg14[%c64_201, %c0_202] : memref<320x16xf32, #tpu.memory_space<vmem>>, vector<256x16xf32>
    %c4_203 = arith.constant 4 : index
    %c0_204 = arith.constant 0 : index
    %c0_205 = arith.constant 0 : index
    %190 = vector.load %arg8[%c4_203, %c0_204, %c0_205] : memref<5x16x2xf32, #tpu.memory_space<vmem>>, vector<1x16x2xf32>
    %191 = vector.shape_cast %190 : vector<1x16x2xf32> to vector<16x2xf32>
    %cst_206 = arith.constant dense<0.000000e+00> : vector<256x2xf32>
    %192 = tpu.matmul %189, %191, %cst_206 {dimension_numbers = #tpu.dot_dimension_numbers<[1], [0], [0], [1], [0, 0, 1, 1], [], []>} : vector<256x16xf32>, vector<16x2xf32>, vector<256x2xf32> -> vector<256x2xf32>
    %193 = arith.addf %188, %192 : vector<256x2xf32>
    %c0_207 = arith.constant 0 : index
    %c0_208 = arith.constant 0 : index
    %194 = vector.load %arg9[%c0_207, %c0_208] : memref<1x2xf32, #tpu.memory_space<vmem>>, vector<1x2xf32>
    %195 = vector.broadcast %194 : vector<1x2xf32> to vector<256x2xf32>
    %196 = arith.addf %193, %195 : vector<256x2xf32>
    %c0_209 = arith.constant 0 : index
    %c0_210 = arith.constant 0 : index
    %c0_211 = arith.constant 0 : index
    %197 = vector.load %arg10[%c0_209, %c0_210, %c0_211] : memref<1x256x2xf32, #tpu.memory_space<vmem>>, vector<1x256x2xf32>
    %198 = vector.shape_cast %197 : vector<1x256x2xf32> to vector<256x2xf32>
    %199 = vector.shape_cast %196 : vector<256x2xf32> to vector<1x256x2xf32>
    tpu.vector_store %arg10[%c0_209, %c0_210, %c0_211], %199 {strides = array<i32>} : memref<1x256x2xf32, #tpu.memory_space<vmem>>, vector<1x256x2xf32>,
    return
  }
  func.func @transform_0(%arg0: i32) -> (i32, i32, i32) {
    %c0_i32 = arith.constant 0 : i32
    %c0_i32_0 = arith.constant 0 : i32
    %c0_i32_1 = arith.constant 0 : i32
    return %arg0, %c0_i32, %c0_i32_0 : i32, i32, i32
  }
  func.func @transform_1(%arg0: i32) -> (i32, i32, i32) {
    %c0_i32 = arith.constant 0 : i32
    %c0_i32_0 = arith.constant 0 : i32
    %c0_i32_1 = arith.constant 0 : i32
    %c0_i32_2 = arith.constant 0 : i32
    return %c0_i32, %c0_i32_0, %c0_i32_1 : i32, i32, i32
  }
  func.func @transform_2(%arg0: i32) -> (i32, i32) {
    %c0_i32 = arith.constant 0 : i32
    %c0_i32_0 = arith.constant 0 : i32
    %c0_i32_1 = arith.constant 0 : i32
    return %c0_i32, %c0_i32_0 : i32, i32
  }
  func.func @transform_3(%arg0: i32) -> (i32, i32, i32) {
    %c0_i32 = arith.constant 0 : i32
    %c0_i32_0 = arith.constant 0 : i32
    %c0_i32_1 = arith.constant 0 : i32
    %c0_i32_2 = arith.constant 0 : i32
    return %c0_i32, %c0_i32_0, %c0_i32_1 : i32, i32, i32
  }
  func.func @transform_4(%arg0: i32) -> (i32, i32) {
    %c0_i32 = arith.constant 0 : i32
    %c0_i32_0 = arith.constant 0 : i32
    %c0_i32_1 = arith.constant 0 : i32
    return %c0_i32, %c0_i32_0 : i32, i32
  }
  func.func @transform_5(%arg0: i32) -> (i32, i32, i32) {
    %c0_i32 = arith.constant 0 : i32
    %c0_i32_0 = arith.constant 0 : i32
    %c0_i32_1 = arith.constant 0 : i32
    %c0_i32_2 = arith.constant 0 : i32
    return %c0_i32, %c0_i32_0, %c0_i32_1 : i32, i32, i32
  }
  func.func @transform_6(%arg0: i32) -> (i32, i32) {
    %c0_i32 = arith.constant 0 : i32
    %c0_i32_0 = arith.constant 0 : i32
    %c0_i32_1 = arith.constant 0 : i32
    return %c0_i32, %c0_i32_0 : i32, i32
  }
  func.func @transform_7(%arg0: i32) -> (i32, i32, i32) {
    %c0_i32 = arith.constant 0 : i32
    %c0_i32_0 = arith.constant 0 : i32
    %c0_i32_1 = arith.constant 0 : i32
    %c0_i32_2 = arith.constant 0 : i32
    return %c0_i32, %c0_i32_0, %c0_i32_1 : i32, i32, i32
  }
  func.func @transform_8(%arg0: i32) -> (i32, i32) {
    %c0_i32 = arith.constant 0 : i32
    %c0_i32_0 = arith.constant 0 : i32
    %c0_i32_1 = arith.constant 0 : i32
    return %c0_i32, %c0_i32_0 : i32, i32
  }
  func.func @transform_9(%arg0: i32) -> (i32, i32, i32) {
    %c0_i32 = arith.constant 0 : i32
    %c0_i32_0 = arith.constant 0 : i32
    %c0_i32_1 = arith.constant 0 : i32
    return %arg0, %c0_i32, %c0_i32_0 : i32, i32, i32
  }
}

</mosaic_0001>

<bundles_post_ra>
// kernel: net_forward.1
= control target key start
LH: loop header
LB: loop body
LE: loop exit
PB: predicated region body
PF: predicated region fallthrough
CT: control target
= control target key end

     0   :  { %s18125_s30 = smov 0   ;;  %s21340_s0 = inlined_call_operand.vmem [shape: f32[2,256,4], index: 0, kind: input, shape index: {}]   ;;  %s21341_s1 = inlined_call_operand.vmem [shape: f32[11,4,64], index: 1, kind: input, shape index: {}]   ;;  %s21342_s2 = inlined_call_operand.vmem [shape: f32[1,64], index: 2, kind: input, shape index: {}]   ;;  %s21343_s3 = inlined_call_operand.vmem [shape: f32[9,64,32], index: 3, kind: input, shape index: {}]   ;;  %s21344_s4 = inlined_call_operand.vmem [shape: f32[1,32], index: 4, kind: input, shape index: {}]   ;;  %s21345_s5 = inlined_call_operand.vmem [shape: f32[7,32,16], index: 5, kind: input, shape index: {}]   ;;  %s21346_s6 = inlined_call_operand.vmem [shape: f32[1,16], index: 6, kind: input, shape index: {}]   ;;  %s21347_s7 = inlined_call_operand.vmem [shape: f32[5,16,2], index: 7, kind: input, shape index: {}]   ;;  %s21348_s8 = inlined_call_operand.vmem [shape: f32[1,2], index: 8, kind: input, shape index: {}]   ;;  %s21349_s9 = inlined_call_operand.vmem [shape: f32[2,256,2], index: 9, kind: output, shape index: {}]  }
   0x1 LB: > { %s12660_s10 = sadd.s32 4294967295, %s18072_s30   ;;  %p12664_p0 = scmp.ge.s32.totalorder %s18072_s30, 1  ;;  %s18072_s30 = sphi %s18125_s30, %s19_s30  }
   0x2   : > { %p287_p1 = scmp.lt.s32.totalorder %s18072_s30, 3 }
   0x4   : > { %p288_p2 = pnand %p12664_p0, %p287_p1 }
   0x5   : > { %v12669_v0 = vld [vmem:[%s21341_s1 + $0x4] sm:$0xf] (!%p288_p2)  ;;  %vm551_vm0 = vcmask (!%p288_p2), 1043456   ;;  %vm365_vm1 = vcmask (!%p288_p2), 31744   ;;  %p18138_p3 = scmp.lt.s32.totalorder (!%p288_p2), %s12660_s10, 1  ;;  %v18074_v1 = vmov (!%p288_p2), 0.0  }
   0x6   : > { %291 = sbr.rel (%p288_p2) target bundleno = 2768 (0xad0), region = 56  ;;  %14963 = vmatprep.subr.msk.mxu0 (!%p288_p2), %vm551_vm0, %v12669_v0  ;;  %368 = vst.msk [vmem:[#allocation2 + $0x10] sm:$0xff] (!%p288_p2), %vm365_vm1, %v18074_v1  ;;  %366 = vst.msk [vmem:[#allocation2] sm:$0xff] (!%p288_p2), %vm365_vm1, %v18074_v1  ;;  %v450_v2 = vld [vmem:[%s21341_s1] sm:$0xf] (!%p288_p2)  ;;  %vm4595_vm2 = vcmask (!%p288_p2), 523264  }
   0x7   : > { %367 = vst.msk [vmem:[#allocation2 + $0x8] sm:$0xff] (!%p288_p2), %vm365_vm1, %v18074_v1  ;;  %369 = vst.msk [vmem:[#allocation2 + $0x18] sm:$0xff] (!%p288_p2), %vm365_vm1, %v18074_v1  ;;  %14964 = vmatpush3.msk.msra.mxu0 (!%p288_p2), %vm551_vm0, %v12669_v0  ;;  %v18225_v12 = vld [vmem:[%s21341_s1 + $0x8] sm:$0xf] (!%p288_p2)  ;;  %v12770_v0 = vld [vmem:[%s21341_s1 + $0xc] sm:$0xf] (!%p288_p2) }
   0x8   : > { %370 = vst.msk [vmem:[#allocation2 + $0x20] sm:$0xff] (!%p288_p2), %vm365_vm1, %v18074_v1  ;;  %371 = vst.msk [vmem:[#allocation2 + $0x28] sm:$0xff] (!%p288_p2), %vm365_vm1, %v18074_v1  ;;  %15013 = vmatprep.subr.msk.mxu0 (!%p288_p2), %vm551_vm0, %v450_v2  ;;  %vm8076_vm3 = vcmask (!%p288_p2), 261120   ;;  %vm10737_vm4 = vcmask (!%p288_p2), 130048   ;;  %vm12572_vm5 = vcmask (!%p288_p2), 15360  }
   0x9   : > { %372 = vst.msk [vmem:[#allocation2 + $0x30] sm:$0xff] (!%p288_p2), %vm365_vm1, %v18074_v1  ;;  %373 = vst.msk [vmem:[#allocation2 + $0x38] sm:$0xff] (!%p288_p2), %vm365_vm1, %v18074_v1 }
   0xa   : > { %374 = vst.msk [vmem:[#allocation2 + $0x40] sm:$0xff] (!%p288_p2), %vm365_vm1, %v18074_v1  ;;  %375 = vst.msk [vmem:[#allocation2 + $0x48] sm:$0xff] (!%p288_p2), %vm365_vm1, %v18074_v1 }
   0xb   : > { %376 = vst.msk [vmem:[#allocation2 + $0x150] sm:$0xff] (!%p288_p2), %vm365_vm1, %v18074_v1  ;;  %377 = vst.msk [vmem:[#allocation2 + $0x158] sm:$0xff] (!%p288_p2), %vm365_vm1, %v18074_v1 }
   0xc   : > { %378 = vst.msk [vmem:[#allocation2 + $0x160] sm:$0xff] (!%p288_p2), %vm365_vm1, %v18074_v1  ;;  %379 = vst.msk [vmem:[#allocation2 + $0x168] sm:$0xff] (!%p288_p2), %vm365_vm1, %v18074_v1 }
   0xd   : > { %380 = vst.msk [vmem:[#allocation2 + $0x170] sm:$0xff] %vm365_vm1, %v18074_v1  ;;  %381 = vst.msk [vmem:[#allocation2 + $0x178] sm:$0xff] %vm365_vm1, %v18074_v1  ;;  %s21352_s10 = smov (!%p18138_p3, %s12660_s10), 1  ;;  %v18211_v9 = vld [vmem:[#allocation2 + $0x10] sm:$0xff]  ;;  %v418_v62 = vld [vmem:[#allocation2] sm:$0xff] }
   0xe   : > { %382 = vst.msk [vmem:[#allocation2 + $0x180] sm:$0xff] %vm365_vm1, %v18074_v1  ;;  %383 = vst.msk [vmem:[#allocation2 + $0x188] sm:$0xff] %vm365_vm1, %v18074_v1  ;;  %s13816_s16 = sshll.u32 %s21352_s10, 8  ;;  %v18213_v10 = vld [vmem:[#allocation2 + $0x18] sm:$0xff]  ;;  %14965 = vmatprep.mubr.msk.f32.mxu0 %vm365_vm1, %v18211_v9  ;;  %v419_v63 = vld [vmem:[#allocation2 + $0x8] sm:$0xff] }
   0xf   : > { %384 = vst.msk [vmem:[#allocation2 + $0x190] sm:$0xff] %vm365_vm1, %v18074_v1  ;;  %385 = vst.msk [vmem:[#allocation2 + $0x198] sm:$0xff] %vm365_vm1, %v18074_v1  ;;  %s18200_s19 = scalar_lea.vmem %s21340_s0, %s13816_s16  ;;  %v18215_v11 = vld [vmem:[#allocation2 + $0x20] sm:$0xff]  ;;  %14966 = vmatmul.mubr.msk.f32.vlgmr.msra.gmra.mrb[0].mxu0 %vm365_vm1, %v18213_v10  ;;  %v18229_v13 = vld [vmem:[#allocation2 + $0x28] sm:$0xff]  ;;  %s21239_s15 = scalar_lea.vmem %s21349_s9, %s13816_s16 }
  0x10   : > { %v333_v3 = vld [vmem:[%s18200_s19] sm:$0xff]  ;;  %v334_v4 = vld [vmem:[%s18200_s19 + $0x8] sm:$0xff]  ;;  %v335_v5 = vld [vmem:[%s18200_s19 + $0x10] sm:$0xff]  ;;  %15014 = vmatpush3.msk.msra.mxu0 %vm551_vm0, %v450_v2  ;;  %14968 = vmatprep.mubr.msk.f32.mxu0 %vm365_vm1, %v18215_v11  ;;  %4596 = vst.msk [vmem:[#allocation3] sm:$0xff] %vm4595_vm2, %v18074_v1 }
  0x11   : > { %386 = vst.msk [vmem:[#allocation2 + $0x50] sm:$0xff] %vm365_vm1, %v333_v3  ;;  %387 = vst.msk [vmem:[#allocation2 + $0x58] sm:$0xff] %vm365_vm1, %v334_v4  ;;  %v336_v6 = vld [vmem:[%s18200_s19 + $0x18] sm:$0xff]  ;;  %v337_v7 = vld [vmem:[%s18200_s19 + $0x20] sm:$0xff]  ;;  %15063 = vmatprep.subr.msk.mxu0 %vm551_vm0, %v18225_v12 }
  0x12   : > { %388 = vst.msk [vmem:[#allocation2 + $0x60] sm:$0xff] %vm365_vm1, %v335_v5  ;;  %v338_v8 = vld [vmem:[%s18200_s19 + $0x28] sm:$0xff]  ;;  %389 = vst.msk [vmem:[#allocation2 + $0x68] sm:$0xff] %vm365_vm1, %v336_v6  ;;  %v18231_v14 = vld [vmem:[#allocation2 + $0x30] sm:$0xff] }
  0x13   : > { %390 = vst.msk [vmem:[#allocation2 + $0x70] sm:$0xff] %vm365_vm1, %v337_v7  ;;  %391 = vst.msk [vmem:[#allocation2 + $0x78] sm:$0xff] %vm365_vm1, %v338_v8  ;;  %v339_v15 = vld [vmem:[%s18200_s19 + $0x30] sm:$0xff]  ;;  %v340_v16 = vld [vmem:[%s18200_s19 + $0x38] sm:$0xff]  ;;  %14969 = vmatmul.mubr.msk.f32.gmra.mrb[2].mxu0 %vm365_vm1, %v18229_v13 }
  0x14   : > { %392 = vst.msk [vmem:[#allocation2 + $0x80] sm:$0xff] %vm365_vm1, %v339_v15  ;;  %v341_v17 = vld [vmem:[%s18200_s19 + $0x40] sm:$0xff]  ;;  %v342_v18 = vld [vmem:[%s18200_s19 + $0x48] sm:$0xff]  ;;  %393 = vst.msk [vmem:[#allocation2 + $0x88] sm:$0xff] %vm365_vm1, %v340_v16  ;;  %14971 = vmatprep.mubr.msk.f32.mxu0 %vm365_vm1, %v18231_v14 }
  0x15   : > { %394 = vst.msk [vmem:[#allocation2 + $0x90] sm:$0xff] %vm365_vm1, %v341_v17  ;;  %395 = vst.msk [vmem:[#allocation2 + $0x98] sm:$0xff] %vm365_vm1, %v342_v18  ;;  %v343_v19 = vld [vmem:[%s18200_s19 + $0x50] sm:$0xff]  ;;  %v344_v20 = vld [vmem:[%s18200_s19 + $0x58] sm:$0xff] }
  0x16   : > { %v345_v21 = vld [vmem:[%s18200_s19 + $0x60] sm:$0xff]  ;;  %396 = vst.msk [vmem:[#allocation2 + $0xa0] sm:$0xff] %vm365_vm1, %v343_v19  ;;  %397 = vst.msk [vmem:[#allocation2 + $0xa8] sm:$0xff] %vm365_vm1, %v344_v20  ;;  %v346_v22 = vld [vmem:[%s18200_s19 + $0x68] sm:$0xff] }
  0x17   : > { %398 = vst.msk [vmem:[#allocation2 + $0xb0] sm:$0xff] %vm365_vm1, %v345_v21  ;;  %v347_v23 = vld [vmem:[%s18200_s19 + $0x70] sm:$0xff]  ;;  %v348_v24 = vld [vmem:[%s18200_s19 + $0x78] sm:$0xff]  ;;  %399 = vst.msk [vmem:[#allocation2 + $0xb8] sm:$0xff] %vm365_vm1, %v346_v22 }
  0x18   : > { %400 = vst.msk [vmem:[#allocation2 + $0xc0] sm:$0xff] %vm365_vm1, %v347_v23  ;;  %401 = vst.msk [vmem:[#allocation2 + $0xc8] sm:$0xff] %vm365_vm1, %v348_v24  ;;  %v18262_v25 = vld [vmem:[#allocation2 + $0x38] sm:$0xff]  ;;  %v18264_v26 = vld [vmem:[#allocation2 + $0x40] sm:$0xff] }
  0x19   : > { %v349_v27 = vld [vmem:[%s18200_s19 + $0x80] sm:$0xff]  ;;  %v350_v28 = vld [vmem:[%s18200_s19 + $0x88] sm:$0xff]  ;;  %v351_v29 = vld [vmem:[%s18200_s19 + $0x90] sm:$0xff]  ;;  %14972 = vmatmul.mubr.msk.f32.gmra.mrb[4].mxu0 %vm365_vm1, %v18262_v25  ;;  %4597 = vst.msk [vmem:[#allocation3 + $0x8] sm:$0xff] %vm4595_vm2, %v18074_v1 }
  0x1a   : > { %402 = vst.msk [vmem:[#allocation2 + $0xd0] sm:$0xff] %vm365_vm1, %v349_v27  ;;  %403 = vst.msk [vmem:[#allocation2 + $0xd8] sm:$0xff] %vm365_vm1, %v350_v28  ;;  %v352_v30 = vld [vmem:[%s18200_s19 + $0x98] sm:$0xff]  ;;  %v353_v31 = vld [vmem:[%s18200_s19 + $0xa0] sm:$0xff]  ;;  %14974 = vmatprep.mubr.msk.f32.mxu0 %vm365_vm1, %v18264_v26 }
  0x1b   : > { %404 = vst.msk [vmem:[#allocation2 + $0xe0] sm:$0xff] %vm365_vm1, %v351_v29  ;;  %v354_v32 = vld [vmem:[%s18200_s19 + $0xa8] sm:$0xff]  ;;  %405 = vst.msk [vmem:[#allocation2 + $0xe8] sm:$0xff] %vm365_vm1, %v352_v30  ;;  %v355_v33 = vld [vmem:[%s18200_s19 + $0xb0] sm:$0xff] }
  0x1c   : > { %406 = vst.msk [vmem:[#allocation2 + $0xf0] sm:$0xff] %vm365_vm1, %v353_v31  ;;  %407 = vst.msk [vmem:[#allocation2 + $0xf8] sm:$0xff] %vm365_vm1, %v354_v32  ;;  %v356_v34 = vld [vmem:[%s18200_s19 + $0xb8] sm:$0xff]  ;;  %v18284_v35 = vld [vmem:[#allocation2 + $0x48] sm:$0xff] }
  0x1d   : > { %408 = vst.msk [vmem:[#allocation2 + $0x100] sm:$0xff] %vm365_vm1, %v355_v33  ;;  %409 = vst.msk [vmem:[#allocation2 + $0x108] sm:$0xff] %vm365_vm1, %v356_v34  ;;  %v18288_v36 = vld [vmem:[#allocation2 + $0x50] sm:$0xff]  ;;  %14975 = vmatmul.mubr.msk.f32.gmra.mrb[6].mxu0 %vm365_vm1, %v18284_v35  ;;  %v18294_v37 = vld [vmem:[#allocation2 + $0x58] sm:$0xff] }
  0x1e   : > { %14977 = vmatprep.mubr.msk.f32.mxu0 %vm365_vm1, %v18288_v36  ;;  %v18296_v38 = vld [vmem:[#allocation2 + $0x60] sm:$0xff]  ;;  %v18302_v39 = vld [vmem:[#allocation2 + $0x68] sm:$0xff]  ;;  %v18304_v40 = vld [vmem:[#allocation2 + $0x70] sm:$0xff]  ;;  %4598 = vst.msk [vmem:[#allocation3 + $0x10] sm:$0xff] %vm4595_vm2, %v18074_v1 }
  0x1f   : > { %v18310_v41 = vld [vmem:[#allocation2 + $0x78] sm:$0xff]  ;;  %v18312_v42 = vld [vmem:[#allocation2 + $0x80] sm:$0xff]  ;;  %v18318_v43 = vld [vmem:[#allocation2 + $0x88] sm:$0xff]  ;;  %4599 = vst.msk [vmem:[#allocation3 + $0x18] sm:$0xff] %vm4595_vm2, %v18074_v1 }
  0x20   : > { %v18320_v44 = vld [vmem:[#allocation2 + $0x90] sm:$0xff]  ;;  %v18326_v45 = vld [vmem:[#allocation2 + $0x98] sm:$0xff]  ;;  %v18328_v46 = vld [vmem:[#allocation2 + $0xa0] sm:$0xff]  ;;  %4600 = vst.msk [vmem:[#allocation3 + $0x20] sm:$0xff] %vm4595_vm2, %v18074_v1 }
  0x21   : > { %14978 = vmatmul.mubr.msk.f32.gmra.mrb[8].mxu0 %vm365_vm1, %v18294_v37  ;;  %v18334_v47 = vld [vmem:[#allocation2 + $0xa8] sm:$0xff]  ;;  %v18336_v48 = vld [vmem:[#allocation2 + $0xb0] sm:$0xff]  ;;  %v18342_v49 = vld [vmem:[#allocation2 + $0xb8] sm:$0xff]  ;;  %4601 = vst.msk [vmem:[#allocation3 + $0x28] sm:$0xff] %vm4595_vm2, %v18074_v1 }
  0x22   : > { %14980 = vmatprep.mubr.msk.f32.mxu0 %vm365_vm1, %v18296_v38  ;;  %v18344_v50 = vld [vmem:[#allocation2 + $0xc0] sm:$0xff]  ;;  %v18350_v51 = vld [vmem:[#allocation2 + $0xc8] sm:$0xff]  ;;  %v18352_v52 = vld [vmem:[#allocation2 + $0xd0] sm:$0xff]  ;;  %4602 = vst.msk [vmem:[#allocation3 + $0x30] sm:$0xff] %vm4595_vm2, %v18074_v1 }
  0x23   : > { %v18358_v53 = vld [vmem:[#allocation2 + $0xd8] sm:$0xff]  ;;  %v18360_v54 = vld [vmem:[#allocation2 + $0xe0] sm:$0xff]  ;;  %v18366_v55 = vld [vmem:[#allocation2 + $0xe8] sm:$0xff]  ;;  %4603 = vst.msk [vmem:[#allocation3 + $0x38] sm:$0xff] %vm4595_vm2, %v18074_v1 }
  0x24   : > { %v18368_v56 = vld [vmem:[#allocation2 + $0xf0] sm:$0xff]  ;;  %v357_v57 = vld [vmem:[%s18200_s19 + $0xc0] sm:$0xff]  ;;  %v358_v58 = vld [vmem:[%s18200_s19 + $0xc8] sm:$0xff]  ;;  %4604 = vst.msk [vmem:[#allocation3 + $0x140] sm:$0xff] %vm4595_vm2, %v18074_v1 }
  0x25   : > { %14981 = vmatmul.mubr.msk.f32.gmra.mrb[10].mxu0 %vm365_vm1, %v18302_v39  ;;  %410 = vst.msk [vmem:[#allocation2 + $0x110] sm:$0xff] %vm365_vm1, %v357_v57  ;;  %411 = vst.msk [vmem:[#allocation2 + $0x118] sm:$0xff] %vm365_vm1, %v358_v58  ;;  %v18378_v59 = vld [vmem:[#allocation2 + $0xf8] sm:$0xff]  ;;  %v18380_v60 = vld [vmem:[#allocation2 + $0x100] sm:$0xff] }
  0x26   : > { %14983 = vmatprep.mubr.msk.f32.mxu0 %vm365_vm1, %v18304_v40  ;;  %v18386_v61 = vld [vmem:[#allocation2 + $0x108] sm:$0xff]  ;;  %v359_v2 = vld [vmem:[%s18200_s19 + $0xd0] sm:$0xff]  ;;  %v360_v3 = vld [vmem:[%s18200_s19 + $0xd8] sm:$0xff]  ;;  %4605 = vst.msk [vmem:[#allocation3 + $0x148] sm:$0xff] %vm4595_vm2, %v18074_v1 }
  0x27   : > { %412 = vst.msk [vmem:[#allocation2 + $0x120] sm:$0xff] %vm365_vm1, %v359_v2  ;;  %413 = vst.msk [vmem:[#allocation2 + $0x128] sm:$0xff] %vm365_vm1, %v360_v3  ;;  %v12804_v4 = vld [vmem:[%s21341_s1 + $0x10] sm:$0xf]  ;;  %v361_v5 = vld [vmem:[%s18200_s19 + $0xe0] sm:$0xff] }
  0x28   : > { %414 = vst.msk [vmem:[#allocation2 + $0x130] sm:$0xff] %vm365_vm1, %v361_v5  ;;  %v362_v6 = vld [vmem:[%s18200_s19 + $0xe8] sm:$0xff]  ;;  %v12906_v17 = vld [vmem:[%s21341_s1 + $0x1c] sm:$0xf]  ;;  %v12940_v20 = vld [vmem:[%s21341_s1 + $0x20] sm:$0xf] }
  0x29   : > { %14984 = vmatmul.mubr.msk.f32.gmra.mrb[12].mxu0 %vm365_vm1, %v18310_v41  ;;  %415 = vst.msk [vmem:[#allocation2 + $0x138] sm:$0xff] %vm365_vm1, %v362_v6  ;;  %v18825_v21 = vld [vmem:[#allocation2 + $0x150] sm:$0xff]  ;;  %v18831_v22 = vld [vmem:[#allocation2 + $0x158] sm:$0xff]  ;;  %v12974_v23 = vld [vmem:[%s21341_s1 + $0x24] sm:$0xf] }
  0x2a   : > { %14986 = vmatprep.mubr.msk.f32.mxu0 %vm365_vm1, %v18312_v42  ;;  %v18898_v24 = vld [vmem:[#allocation2 + $0x160] sm:$0xff]  ;;  %v3355_v27 = vld [vmem:[#allocation2 + $0x88] sm:$0xff]  ;;  %v3356_v28 = vld [vmem:[#allocation2 + $0x90] sm:$0xff]  ;;  %4606 = vst.msk [vmem:[#allocation3 + $0x150] sm:$0xff] %vm4595_vm2, %v18074_v1 }
  0x2b   : > { %v13008_v29 = vld [vmem:[%s21341_s1 + $0x28] sm:$0xf]  ;;  %v3357_v30 = vld [vmem:[#allocation2 + $0x98] sm:$0xff]  ;;  %v18915_v31 = vld [vmem:[#allocation2 + $0xa0] sm:$0xff]  ;;  %4607 = vst.msk [vmem:[#allocation3 + $0x158] sm:$0xff] %vm4595_vm2, %v18074_v1 }
  0x2c   : > { %v18529_v7 = vld [vmem:[#allocation2 + $0x110] sm:$0xff]  ;;  %v18535_v8 = vld [vmem:[#allocation2 + $0x118] sm:$0xff]  ;;  %v18921_v32 = vld [vmem:[#allocation2 + $0xa8] sm:$0xff]  ;;  %4608 = vst.msk [vmem:[#allocation3 + $0x160] sm:$0xff] %vm4595_vm2, %v18074_v1 }
  0x2d   : > { %14987 = vmatmul.mubr.msk.f32.gmra.mrb[14].mxu0 %vm365_vm1, %v18318_v43  ;;  %v18923_v33 = vld [vmem:[#allocation2 + $0xb0] sm:$0xff]  ;;  %v18929_v34 = vld [vmem:[#allocation2 + $0xb8] sm:$0xff]  ;;  %4609 = vst.msk [vmem:[#allocation3 + $0x168] sm:$0xff] %vm4595_vm2, %v18074_v1  ;;  %4610 = vst.msk [vmem:[#allocation3 + $0x170] sm:$0xff] %vm4595_vm2, %v18074_v1 }
  0x2e   : > { %14989 = vmatprep.mubr.msk.f32.mxu0 %vm365_vm1, %v18320_v44  ;;  %v13046_v57 = vld [vmem:[%s21343_s3 + $0x58] sm:$0xff]  ;;  %4611 = vst.msk [vmem:[#allocation3 + $0x178] sm:$0xff] %vm4595_vm2, %v18074_v1  ;;  %v19140_v2 = vld [vmem:[#allocation3 + $0x20] sm:$0xff]  ;;  %v19144_v3 = vld [vmem:[#allocation3 + $0x28] sm:$0xff] }
  0x2f   : > { %v18679_v15 = vld [vmem:[#allocation2 + $0x130] sm:$0xff]  ;;  %15532 = vmatprep.mubr.msk.f32.mxu1 %vm4595_vm2, %v19140_v2  ;;  %v19152_v5 = vld [vmem:[#allocation3 + $0x38] sm:$0xff]  ;;  %v4676_v6 = vld [vmem:[%s21343_s3] sm:$0xff]  ;;  %8077 = vst.msk [vmem:[#allocation4] sm:$0xff] %vm8076_vm3, %v18074_v1 }
  0x30   : > { %v18685_v16 = vld [vmem:[#allocation2 + $0x138] sm:$0xff]  ;;  %8078 = vst.msk [vmem:[#allocation4 + $0x8] sm:$0xff] %vm8076_vm3, %v18074_v1  ;;  %8079 = vst.msk [vmem:[#allocation4 + $0x10] sm:$0xff] %vm8076_vm3, %v18074_v1 }
  0x31   : > { %14990 = vmatmul.mubr.msk.f32.gmra.mrb[16].mxu0 %vm365_vm1, %v18326_v45  ;;  %8080 = vst.msk [vmem:[#allocation4 + $0x18] sm:$0xff] %vm8076_vm3, %v18074_v1  ;;  %8081 = vst.msk [vmem:[#allocation4 + $0x20] sm:$0xff] %vm8076_vm3, %v18074_v1 }
  0x32   : > { %14992 = vmatprep.mubr.msk.f32.mxu0 %vm365_vm1, %v18328_v46  ;;  %8082 = vst.msk [vmem:[#allocation4 + $0x28] sm:$0xff] %vm8076_vm3, %v18074_v1  ;;  %8083 = vst.msk [vmem:[#allocation4 + $0x130] sm:$0xff] %vm8076_vm3, %v18074_v1 }
  0x33   : > { %8084 = vst.msk [vmem:[#allocation4 + $0x138] sm:$0xff] %vm8076_vm3, %v18074_v1  ;;  %8085 = vst.msk [vmem:[#allocation4 + $0x140] sm:$0xff] %vm8076_vm3, %v18074_v1 }
  0x34   : > { %8086 = vst.msk [vmem:[#allocation4 + $0x148] sm:$0xff] %vm8076_vm3, %v18074_v1  ;;  %8087 = vst.msk [vmem:[#allocation4 + $0x150] sm:$0xff] %vm8076_vm3, %v18074_v1 }
  0x35   : > { %14993 = vmatmul.mubr.msk.f32.gmra.mrb[18].mxu0 %vm365_vm1, %v18334_v47  ;;  %8088 = vst.msk [vmem:[#allocation4 + $0x158] sm:$0xff] %vm8076_vm3, %v18074_v1 }
  0x36   : > { %14995 = vmatprep.mubr.msk.f32.mxu0 %vm365_vm1, %v18336_v48  ;;  %10738 = vst.msk [vmem:[#allocation5] sm:$0xff] %vm10737_vm4, %v18074_v1  ;;  %10739 = vst.msk [vmem:[#allocation5 + $0x8] sm:$0xff] %vm10737_vm4, %v18074_v1 }
  0x37   : > { %10740 = vst.msk [vmem:[#allocation5 + $0x10] sm:$0xff] %vm10737_vm4, %v18074_v1  ;;  %10741 = vst.msk [vmem:[#allocation5 + $0x18] sm:$0xff] %vm10737_vm4, %v18074_v1 }
  0x38   : > { %10742 = vst.msk [vmem:[#allocation5 + $0x120] sm:$0xff] %vm10737_vm4, %v18074_v1  ;;  %10743 = vst.msk [vmem:[#allocation5 + $0x128] sm:$0xff] %vm10737_vm4, %v18074_v1 }
  0x39   : > { %14996 = vmatmul.mubr.msk.f32.gmra.mrb[20].mxu0 %vm365_vm1, %v18342_v49  ;;  %10744 = vst.msk [vmem:[#allocation5 + $0x130] sm:$0xff] %vm10737_vm4, %v18074_v1  ;;  %10745 = vst.msk [vmem:[#allocation5 + $0x138] sm:$0xff] %vm10737_vm4, %v18074_v1  ;;  %v10810_v1 = vld [vmem:[%s21347_s7] sm:$0xff] }
  0x3a   : > { %14998 = vmatprep.mubr.msk.f32.mxu0 %vm365_vm1, %v18344_v50 }
  0x3d   : > { %14999 = vmatmul.mubr.msk.f32.gmra.mrb[22].mxu0 %vm365_vm1, %v18350_v51 }
  0x3e   : > { %15001 = vmatprep.mubr.msk.f32.mxu0 %vm365_vm1, %v18352_v52 }
  0x41   : > { %15002 = vmatmul.mubr.msk.f32.gmra.mrb[24].mxu0 %vm365_vm1, %v18358_v53 }
  0x42   : > { %15004 = vmatprep.mubr.msk.f32.mxu0 %vm365_vm1, %v18360_v54 }
  0x45   : > { %15005 = vmatmul.mubr.msk.f32.gmra.mrb[26].mxu0 %vm365_vm1, %v18366_v55 }
  0x46   : > { %15007 = vmatprep.mubr.msk.f32.mxu0 %vm365_vm1, %v18368_v56 }
  0x49   : > { %15008 = vmatmul.mubr.msk.f32.gmra.mrb[28].mxu0 %vm365_vm1, %v18378_v59 }
  0x4a   : > { %15010 = vmatprep.mubr.msk.f32.mxu0 %vm365_vm1, %v18380_v60 }
  0x4d   : > { %15011 = vmatmul.mubr.msk.f32.gmra.mrb[30].mxu0 %vm365_vm1, %v18386_v61 }
  0x4e   : > { %15015 = vmatprep.mubr.msk.f32.mxu0 %vm365_vm1, %v418_v62  ;;  %v13049_v62 = vld [vmem:[%s21343_s3 + $0x70] sm:$0xff] }
  0x51   : > { %15016 = vmatmul.mubr.msk.f32.vlgmr.msra.gmra.mrb[0].mxu0 %vm365_vm1, %v419_v63  ;;  %v13050_v63 = vld [vmem:[%s21343_s3 + $0x78] sm:$0xff] }
  0x52   : > { %15064 = vmatpush3.msk.msra.mxu0 %vm551_vm0, %v18225_v12  ;;  %15018 = vmatprep.mubr.msk.f32.mxu0 %vm365_vm1, %v18211_v9  ;;  %v12838_v9 = vld [vmem:[%s21341_s1 + $0x14] sm:$0xf]  ;;  %v18606_v12 = vld [vmem:[#allocation2 + $0x120] sm:$0xff] }
  0x53   : > { %15113 = vmatprep.subr.msk.mxu0 %vm551_vm0, %v12770_v0 }
  0x55   : > { %15019 = vmatmul.mubr.msk.f32.gmra.mrb[2].mxu0 %vm365_vm1, %v18213_v10  ;;  %v363_v10 = vld [vmem:[%s18200_s19 + $0xf0] sm:$0xff] }
  0x56   : > { %15021 = vmatprep.mubr.msk.f32.mxu0 %vm365_vm1, %v18215_v11  ;;  %416 = vst.msk [vmem:[#allocation2 + $0x140] sm:$0xff] %vm365_vm1, %v363_v10  ;;  %v4679_v10 = vld [vmem:[%s21343_s3 + $0x18] sm:$0xff] }
  0x59   : > { %15022 = vmatmul.mubr.msk.f32.gmra.mrb[4].mxu0 %vm365_vm1, %v18229_v13 }
  0x5a   : > { %15024 = vmatprep.mubr.msk.f32.mxu0 %vm365_vm1, %v18231_v14 }
  0x5d   : > { %15025 = vmatmul.mubr.msk.f32.gmra.mrb[6].mxu0 %vm365_vm1, %v18262_v25  ;;  %v18752_v18 = vld [vmem:[#allocation2 + $0x140] sm:$0xff] }
  0x5e   : > { %15027 = vmatprep.mubr.msk.f32.mxu0 %vm365_vm1, %v18264_v26 }
  0x61   : > { %15028 = vmatmul.mubr.msk.f32.gmra.mrb[8].mxu0 %vm365_vm1, %v18284_v35 }
  0x62   : > { %15030 = vmatprep.mubr.msk.f32.mxu0 %vm365_vm1, %v18288_v36 }
  0x65   : > { %15031 = vmatmul.mubr.msk.f32.gmra.mrb[10].mxu0 %vm365_vm1, %v18294_v37 }
  0x66   : > { %15033 = vmatprep.mubr.msk.f32.mxu0 %vm365_vm1, %v18296_v38 }
  0x69   : > { %15034 = vmatmul.mubr.msk.f32.gmra.mrb[12].mxu0 %vm365_vm1, %v18302_v39 }
  0x6a   : > { %15036 = vmatprep.mubr.msk.f32.mxu0 %vm365_vm1, %v18304_v40 }
  0x6d   : > { %15037 = vmatmul.mubr.msk.f32.gmra.mrb[14].mxu0 %vm365_vm1, %v18310_v41 }
  0x6e   : > { %15039 = vmatprep.mubr.msk.f32.mxu0 %vm365_vm1, %v18312_v42 }
  0x71   : > { %15040 = vmatmul.mubr.msk.f32.gmra.mrb[16].mxu0 %vm365_vm1, %v18318_v43 }
  0x72   : > { %15042 = vmatprep.mubr.msk.f32.mxu0 %vm365_vm1, %v18320_v44 }
  0x75   : > { %15043 = vmatmul.mubr.msk.f32.gmra.mrb[18].mxu0 %vm365_vm1, %v18326_v45 }
  0x76   : > { %15045 = vmatprep.mubr.msk.f32.mxu0 %vm365_vm1, %v18328_v46 }
  0x79   : > { %15046 = vmatmul.mubr.msk.f32.gmra.mrb[20].mxu0 %vm365_vm1, %v18334_v47 }
  0x7a   : > { %15048 = vmatprep.mubr.msk.f32.mxu0 %vm365_vm1, %v18336_v48 }
  0x7d   : > { %15049 = vmatmul.mubr.msk.f32.gmra.mrb[22].mxu0 %vm365_vm1, %v18342_v49 }
  0x7e   : > { %15051 = vmatprep.mubr.msk.f32.mxu0 %vm365_vm1, %v18344_v50 }
  0x81   : > { %15052 = vmatmul.mubr.msk.f32.gmra.mrb[24].mxu0 %vm365_vm1, %v18350_v51 }
  0x82   : > { %15054 = vmatprep.mubr.msk.f32.mxu0 %vm365_vm1, %v18352_v52 }
  0x85   : > { %15055 = vmatmul.mubr.msk.f32.gmra.mrb[26].mxu0 %vm365_vm1, %v18358_v53 }
  0x86   : > { %15057 = vmatprep.mubr.msk.f32.mxu0 %vm365_vm1, %v18360_v54 }
  0x89   : > { %15058 = vmatmul.mubr.msk.f32.gmra.mrb[28].mxu0 %vm365_vm1, %v18366_v55 }
  0x8a   : > { %15060 = vmatprep.mubr.msk.f32.mxu0 %vm365_vm1, %v18368_v56 }
  0x8d   : > { %15061 = vmatmul.mubr.msk.f32.gmra.mrb[30].mxu0 %vm365_vm1, %v18378_v59 }
  0x8e   : > { %15065 = vmatprep.mubr.msk.f32.mxu0 %vm365_vm1, %v18215_v11  ;;  %v364_v11 = vld [vmem:[%s18200_s19 + $0xf8] sm:$0xff] }
  0x8f   : > { %417 = vst.msk [vmem:[#allocation2 + $0x148] sm:$0xff] %vm365_vm1, %v364_v11 }
  0x91   : > { %15066 = vmatmul.mubr.msk.f32.vlgmr.msra.gmra.mrb[0].mxu0 %vm365_vm1, %v18229_v13  ;;  %v18612_v13 = vld [vmem:[#allocation2 + $0x128] sm:$0xff] }
  0x92   : > { %15114 = vmatpush3.msk.msra.mxu0 %vm551_vm0, %v12770_v0  ;;  %15068 = vmatprep.mubr.msk.f32.mxu0 %vm365_vm1, %v18231_v14  ;;  %v16753_v0 = vpack.c.bf16 %v13050_v63, %v13049_v62 }
  0x93   : > { %15163 = vmatprep.subr.msk.mxu0 %vm551_vm0, %v12804_v4 }
  0x95   : > { %15069 = vmatmul.mubr.msk.f32.gmra.mrb[2].mxu0 %vm365_vm1, %v18262_v25 }
  0x96   : > { %15071 = vmatprep.mubr.msk.f32.mxu0 %vm365_vm1, %v18264_v26  ;;  %v18758_v19 = vld [vmem:[#allocation2 + $0x148] sm:$0xff] }
  0x99   : > { %15072 = vmatmul.mubr.msk.f32.gmra.mrb[4].mxu0 %vm365_vm1, %v18284_v35 }
  0x9a   : > { %15074 = vmatprep.mubr.msk.f32.mxu0 %vm365_vm1, %v18288_v36 }
  0x9d   : > { %15075 = vmatmul.mubr.msk.f32.gmra.mrb[6].mxu0 %vm365_vm1, %v18294_v37 }
  0x9e   : > { %15077 = vmatprep.mubr.msk.f32.mxu0 %vm365_vm1, %v18296_v38 }
  0xa1   : > { %15078 = vmatmul.mubr.msk.f32.gmra.mrb[8].mxu0 %vm365_vm1, %v18302_v39 }
  0xa2   : > { %15080 = vmatprep.mubr.msk.f32.mxu0 %vm365_vm1, %v18304_v40 }
  0xa5   : > { %15081 = vmatmul.mubr.msk.f32.gmra.mrb[10].mxu0 %vm365_vm1, %v18310_v41 }
  0xa6   : > { %15083 = vmatprep.mubr.msk.f32.mxu0 %vm365_vm1, %v18312_v42 }
  0xa9   : > { %15084 = vmatmul.mubr.msk.f32.gmra.mrb[12].mxu0 %vm365_vm1, %v18318_v43 }
  0xaa   : > { %15086 = vmatprep.mubr.msk.f32.mxu0 %vm365_vm1, %v18320_v44 }
  0xad   : > { %15087 = vmatmul.mubr.msk.f32.gmra.mrb[14].mxu0 %vm365_vm1, %v18326_v45 }
  0xae   : > { %15089 = vmatprep.mubr.msk.f32.mxu0 %vm365_vm1, %v18328_v46 }
  0xb1   : > { %15090 = vmatmul.mubr.msk.f32.gmra.mrb[16].mxu0 %vm365_vm1, %v18334_v47 }
  0xb2   : > { %15092 = vmatprep.mubr.msk.f32.mxu0 %vm365_vm1, %v18336_v48 }
  0xb5   : > { %15093 = vmatmul.mubr.msk.f32.gmra.mrb[18].mxu0 %vm365_vm1, %v18342_v49 }
  0xb6   : > { %15095 = vmatprep.mubr.msk.f32.mxu0 %vm365_vm1, %v18344_v50 }
  0xb9   : > { %15096 = vmatmul.mubr.msk.f32.gmra.mrb[20].mxu0 %vm365_vm1, %v18350_v51 }
  0xba   : > { %15098 = vmatprep.mubr.msk.f32.mxu0 %vm365_vm1, %v18352_v52 }
  0xbd   : > { %15099 = vmatmul.mubr.msk.f32.gmra.mrb[22].mxu0 %vm365_vm1, %v18358_v53 }
  0xbe   : > { %15101 = vmatprep.mubr.msk.f32.mxu0 %vm365_vm1, %v18360_v54 }
  0xc1   : > { %15102 = vmatmul.mubr.msk.f32.gmra.mrb[24].mxu0 %vm365_vm1, %v18366_v55 }
  0xc2   : > { %15104 = vmatprep.mubr.msk.f32.mxu0 %vm365_vm1, %v18368_v56 }
  0xc5   : > { %15105 = vmatmul.mubr.msk.f32.gmra.mrb[26].mxu0 %vm365_vm1, %v18378_v59 }
  0xc6   : > { %15107 = vmatprep.mubr.msk.f32.mxu0 %vm365_vm1, %v18380_v60 }
  0xc9   : > { %15108 = vmatmul.mubr.msk.f32.gmra.mrb[28].mxu0 %vm365_vm1, %v18386_v61 }
  0xca   : > { %15110 = vmatprep.mubr.msk.f32.mxu0 %vm365_vm1, %v18529_v7 }
  0xcd   : > { %15111 = vmatmul.mubr.msk.f32.gmra.mrb[30].mxu0 %vm365_vm1, %v18535_v8 }
  0xce   : > { %15115 = vmatprep.mubr.msk.f32.mxu0 %vm365_vm1, %v18231_v14  ;;  %v12872_v14 = vld [vmem:[%s21341_s1 + $0x18] sm:$0xf] }
  0xd1   : > { %15116 = vmatmul.mubr.msk.f32.vlgmr.msra.gmra.mrb[0].mxu0 %vm365_vm1, %v18262_v25  ;;  %v18904_v25 = vld [vmem:[#allocation2 + $0x168] sm:$0xff] }
  0xd2   : > { %15164 = vmatpush3.msk.msra.mxu0 %vm551_vm0, %v12804_v4  ;;  %15118 = vmatprep.mubr.msk.f32.mxu0 %vm365_vm1, %v18264_v26  ;;  %v19148_v4 = vld [vmem:[#allocation3 + $0x30] sm:$0xff] }
  0xd3   : > { %15213 = vmatprep.subr.msk.mxu0 %vm551_vm0, %v12838_v9 }
  0xd5   : > { %15119 = vmatmul.mubr.msk.f32.gmra.mrb[2].mxu0 %vm365_vm1, %v18284_v35 }
  0xd6   : > { %15121 = vmatprep.mubr.msk.f32.mxu0 %vm365_vm1, %v18288_v36 }
  0xd9   : > { %15122 = vmatmul.mubr.msk.f32.gmra.mrb[4].mxu0 %vm365_vm1, %v18294_v37 }
  0xda   : > { %15124 = vmatprep.mubr.msk.f32.mxu0 %vm365_vm1, %v18296_v38 }
  0xdd   : > { %15125 = vmatmul.mubr.msk.f32.gmra.mrb[6].mxu0 %vm365_vm1, %v18302_v39 }
  0xde   : > { %15127 = vmatprep.mubr.msk.f32.mxu0 %vm365_vm1, %v18304_v40 }
  0xe1   : > { %15128 = vmatmul.mubr.msk.f32.gmra.mrb[8].mxu0 %vm365_vm1, %v18310_v41 }
  0xe2   : > { %15130 = vmatprep.mubr.msk.f32.mxu0 %vm365_vm1, %v18312_v42 }
  0xe5   : > { %15131 = vmatmul.mubr.msk.f32.gmra.mrb[10].mxu0 %vm365_vm1, %v18318_v43 }
  0xe6   : > { %15133 = vmatprep.mubr.msk.f32.mxu0 %vm365_vm1, %v18320_v44 }
  0xe9   : > { %15134 = vmatmul.mubr.msk.f32.gmra.mrb[12].mxu0 %vm365_vm1, %v18326_v45 }
  0xea   : > { %15136 = vmatprep.mubr.msk.f32.mxu0 %vm365_vm1, %v18328_v46 }
  0xed   : > { %15137 = vmatmul.mubr.msk.f32.gmra.mrb[14].mxu0 %vm365_vm1, %v18334_v47 }
  0xee   : > { %15139 = vmatprep.mubr.msk.f32.mxu0 %vm365_vm1, %v18336_v48 }
  0xf1   : > { %15140 = vmatmul.mubr.msk.f32.gmra.mrb[16].mxu0 %vm365_vm1, %v18342_v49 }
  0xf2   : > { %15142 = vmatprep.mubr.msk.f32.mxu0 %vm365_vm1, %v18344_v50 }
  0xf5   : > { %15143 = vmatmul.mubr.msk.f32.gmra.mrb[18].mxu0 %vm365_vm1, %v18350_v51 }
  0xf6   : > { %15145 = vmatprep.mubr.msk.f32.mxu0 %vm365_vm1, %v18352_v52 }
  0xf9   : > { %15146 = vmatmul.mubr.msk.f32.gmra.mrb[20].mxu0 %vm365_vm1, %v18358_v53 }
  0xfa   : > { %15148 = vmatprep.mubr.msk.f32.mxu0 %vm365_vm1, %v18360_v54 }
  0xfd   : > { %15149 = vmatmul.mubr.msk.f32.gmra.mrb[22].mxu0 %vm365_vm1, %v18366_v55 }
  0xfe   : > { %15151 = vmatprep.mubr.msk.f32.mxu0 %vm365_vm1, %v18368_v56 }
 0x101   : > { %15152 = vmatmul.mubr.msk.f32.gmra.mrb[24].mxu0 %vm365_vm1, %v18378_v59 }
 0x102   : > { %15154 = vmatprep.mubr.msk.f32.mxu0 %vm365_vm1, %v18380_v60 }
 0x105   : > { %15155 = vmatmul.mubr.msk.f32.gmra.mrb[26].mxu0 %vm365_vm1, %v18386_v61 }
 0x106   : > { %15157 = vmatprep.mubr.msk.f32.mxu0 %vm365_vm1, %v18529_v7 }
 0x109   : > { %15158 = vmatmul.mubr.msk.f32.gmra.mrb[28].mxu0 %vm365_vm1, %v18535_v8 }
 0x10a   : > { %15160 = vmatprep.mubr.msk.f32.mxu0 %vm365_vm1, %v18606_v12 }
 0x10d   : > { %15161 = vmatmul.mubr.msk.f32.gmra.mrb[30].mxu0 %vm365_vm1, %v18612_v13 }
 0x10e   : > { %15165 = vmatprep.mubr.msk.f32.mxu0 %vm365_vm1, %v18264_v26  ;;  %v3354_v26 = vld [vmem:[#allocation2 + $0x80] sm:$0xff] }
 0x111   : > { %15166 = vmatmul.mubr.msk.f32.vlgmr.msra.gmra.mrb[0].mxu0 %vm365_vm1, %v18284_v35  ;;  %v18975_v35 = vld [vmem:[#allocation2 + $0x170] sm:$0xff] }
 0x112   : > { %15214 = vmatpush3.msk.msra.mxu0 %vm551_vm0, %v12838_v9  ;;  %15168 = vmatprep.mubr.msk.f32.mxu0 %vm365_vm1, %v18288_v36  ;;  %v4678_v9 = vld [vmem:[%s21343_s3 + $0x10] sm:$0xff] }
 0x113   : > { %15263 = vmatprep.subr.msk.mxu0 %vm551_vm0, %v12872_v14  ;;  %v16761_v11 = vpack.c.bf16 %v4679_v10, %v4678_v9 }
 0x115   : > { %15169 = vmatmul.mubr.msk.f32.gmra.mrb[2].mxu0 %vm365_vm1, %v18294_v37 }
 0x116   : > { %15171 = vmatprep.mubr.msk.f32.mxu0 %vm365_vm1, %v18296_v38 }
 0x119   : > { %15172 = vmatmul.mubr.msk.f32.gmra.mrb[4].mxu0 %vm365_vm1, %v18302_v39 }
 0x11a   : > { %15174 = vmatprep.mubr.msk.f32.mxu0 %vm365_vm1, %v18304_v40 }
 0x11d   : > { %15175 = vmatmul.mubr.msk.f32.gmra.mrb[6].mxu0 %vm365_vm1, %v18310_v41 }
 0x11e   : > { %15177 = vmatprep.mubr.msk.f32.mxu0 %vm365_vm1, %v18312_v42 }
 0x121   : > { %15178 = vmatmul.mubr.msk.f32.gmra.mrb[8].mxu0 %vm365_vm1, %v18318_v43 }
 0x122   : > { %15180 = vmatprep.mubr.msk.f32.mxu0 %vm365_vm1, %v18320_v44 }
 0x125   : > { %15181 = vmatmul.mubr.msk.f32.gmra.mrb[10].mxu0 %vm365_vm1, %v18326_v45 }
 0x126   : > { %15183 = vmatprep.mubr.msk.f32.mxu0 %vm365_vm1, %v18328_v46 }
 0x129   : > { %15184 = vmatmul.mubr.msk.f32.gmra.mrb[12].mxu0 %vm365_vm1, %v18334_v47 }
 0x12a   : > { %15186 = vmatprep.mubr.msk.f32.mxu0 %vm365_vm1, %v18336_v48 }
 0x12d   : > { %15187 = vmatmul.mubr.msk.f32.gmra.mrb[14].mxu0 %vm365_vm1, %v18342_v49 }
 0x12e   : > { %15189 = vmatprep.mubr.msk.f32.mxu0 %vm365_vm1, %v18344_v50 }
 0x131   : > { %15190 = vmatmul.mubr.msk.f32.gmra.mrb[16].mxu0 %vm365_vm1, %v18350_v51 }
 0x132   : > { %15192 = vmatprep.mubr.msk.f32.mxu0 %vm365_vm1, %v18352_v52 }
 0x135   : > { %15193 = vmatmul.mubr.msk.f32.gmra.mrb[18].mxu0 %vm365_vm1, %v18358_v53 }
 0x136   : > { %15195 = vmatprep.mubr.msk.f32.mxu0 %vm365_vm1, %v18360_v54 }
 0x139   : > { %15196 = vmatmul.mubr.msk.f32.gmra.mrb[20].mxu0 %vm365_vm1, %v18366_v55 }
 0x13a   : > { %15198 = vmatprep.mubr.msk.f32.mxu0 %vm365_vm1, %v18368_v56 }
 0x13d   : > { %15199 = vmatmul.mubr.msk.f32.gmra.mrb[22].mxu0 %vm365_vm1, %v18378_v59 }
 0x13e   : > { %15201 = vmatprep.mubr.msk.f32.mxu0 %vm365_vm1, %v18380_v60 }
 0x141   : > { %15202 = vmatmul.mubr.msk.f32.gmra.mrb[24].mxu0 %vm365_vm1, %v18386_v61 }
 0x142   : > { %15204 = vmatprep.mubr.msk.f32.mxu0 %vm365_vm1, %v18529_v7 }
 0x145   : > { %15205 = vmatmul.mubr.msk.f32.gmra.mrb[26].mxu0 %vm365_vm1, %v18535_v8 }
 0x146   : > { %15207 = vmatprep.mubr.msk.f32.mxu0 %vm365_vm1, %v18606_v12 }
 0x149   : > { %15208 = vmatmul.mubr.msk.f32.gmra.mrb[28].mxu0 %vm365_vm1, %v18612_v13 }
 0x14a   : > { %15210 = vmatprep.mubr.msk.f32.mxu0 %vm365_vm1, %v18679_v15 }
 0x14d   : > { %15211 = vmatmul.mubr.msk.f32.gmra.mrb[30].mxu0 %vm365_vm1, %v18685_v16 }
 0x14e   : > { %15215 = vmatprep.mubr.msk.f32.mxu0 %vm365_vm1, %v18288_v36  ;;  %v18981_v36 = vld [vmem:[#allocation2 + $0x178] sm:$0xff] }
 0x151   : > { %15216 = vmatmul.mubr.msk.f32.vlgmr.msra.gmra.mrb[0].mxu0 %vm365_vm1, %v18294_v37  ;;  %v13043_v37 = vld [vmem:[%s21343_s3 + $0x40] sm:$0xff] }
 0x152   : > { %15264 = vmatpush3.msk.msra.mxu0 %vm551_vm0, %v12872_v14  ;;  %15218 = vmatprep.mubr.msk.f32.mxu0 %vm365_vm1, %v18296_v38 }
 0x153   : > { %15313 = vmatprep.subr.msk.mxu0 %vm551_vm0, %v12906_v17 }
 0x155   : > { %15219 = vmatmul.mubr.msk.f32.gmra.mrb[2].mxu0 %vm365_vm1, %v18302_v39 }
 0x156   : > { %15221 = vmatprep.mubr.msk.f32.mxu0 %vm365_vm1, %v18304_v40 }
 0x159   : > { %15222 = vmatmul.mubr.msk.f32.gmra.mrb[4].mxu0 %vm365_vm1, %v18310_v41 }
 0x15a   : > { %15224 = vmatprep.mubr.msk.f32.mxu0 %vm365_vm1, %v18312_v42 }
 0x15d   : > { %15225 = vmatmul.mubr.msk.f32.gmra.mrb[6].mxu0 %vm365_vm1, %v18318_v43 }
 0x15e   : > { %15227 = vmatprep.mubr.msk.f32.mxu0 %vm365_vm1, %v18320_v44 }
 0x161   : > { %15228 = vmatmul.mubr.msk.f32.gmra.mrb[8].mxu0 %vm365_vm1, %v18326_v45 }
 0x162   : > { %15230 = vmatprep.mubr.msk.f32.mxu0 %vm365_vm1, %v18328_v46 }
 0x165   : > { %15231 = vmatmul.mubr.msk.f32.gmra.mrb[10].mxu0 %vm365_vm1, %v18334_v47 }
 0x166   : > { %15233 = vmatprep.mubr.msk.f32.mxu0 %vm365_vm1, %v18336_v48 }
 0x169   : > { %15234 = vmatmul.mubr.msk.f32.gmra.mrb[12].mxu0 %vm365_vm1, %v18342_v49 }
 0x16a   : > { %15236 = vmatprep.mubr.msk.f32.mxu0 %vm365_vm1, %v18344_v50 }
 0x16d   : > { %15237 = vmatmul.mubr.msk.f32.gmra.mrb[14].mxu0 %vm365_vm1, %v18350_v51 }
 0x16e   : > { %15239 = vmatprep.mubr.msk.f32.mxu0 %vm365_vm1, %v18352_v52 }
 0x171   : > { %15240 = vmatmul.mubr.msk.f32.gmra.mrb[16].mxu0 %vm365_vm1, %v18358_v53 }
 0x172   : > { %15242 = vmatprep.mubr.msk.f32.mxu0 %vm365_vm1, %v18360_v54 }
 0x175   : > { %15243 = vmatmul.mubr.msk.f32.gmra.mrb[18].mxu0 %vm365_vm1, %v18366_v55 }
 0x176   : > { %15245 = vmatprep.mubr.msk.f32.mxu0 %vm365_vm1, %v18368_v56 }
 0x179   : > { %15246 = vmatmul.mubr.msk.f32.gmra.mrb[20].mxu0 %vm365_vm1, %v18378_v59 }
 0x17a   : > { %15248 = vmatprep.mubr.msk.f32.mxu0 %vm365_vm1, %v18380_v60 }
 0x17d   : > { %15249 = vmatmul.mubr.msk.f32.gmra.mrb[22].mxu0 %vm365_vm1, %v18386_v61 }
 0x17e   : > { %15251 = vmatprep.mubr.msk.f32.mxu0 %vm365_vm1, %v18529_v7 }
 0x181   : > { %15252 = vmatmul.mubr.msk.f32.gmra.mrb[24].mxu0 %vm365_vm1, %v18535_v8 }
 0x182   : > { %15254 = vmatprep.mubr.msk.f32.mxu0 %vm365_vm1, %v18606_v12 }
 0x185   : > { %15255 = vmatmul.mubr.msk.f32.gmra.mrb[26].mxu0 %vm365_vm1, %v18612_v13 }
 0x186   : > { %15257 = vmatprep.mubr.msk.f32.mxu0 %vm365_vm1, %v18679_v15 }
 0x189   : > { %15258 = vmatmul.mubr.msk.f32.gmra.mrb[28].mxu0 %vm365_vm1, %v18685_v16 }
 0x18a   : > { %15260 = vmatprep.mubr.msk.f32.mxu0 %vm365_vm1, %v18752_v18 }
 0x18d   : > { %15261 = vmatmul.mubr.msk.f32.gmra.mrb[30].mxu0 %vm365_vm1, %v18758_v19 }
 0x18e   : > { %15265 = vmatprep.mubr.msk.f32.mxu0 %vm365_vm1, %v18296_v38  ;;  %v13044_v38 = vld [vmem:[%s21343_s3 + $0x48] sm:$0xff] }
 0x191   : > { %15266 = vmatmul.mubr.msk.f32.vlgmr.msra.gmra.mrb[0].mxu0 %vm365_vm1, %v18302_v39  ;;  %v16741_v39 = vpack.c.bf16 %v13044_v38, %v13043_v37 }
 0x192   : > { %15314 = vmatpush3.msk.msra.mxu0 %vm551_vm0, %v12906_v17  ;;  %15268 = vmatprep.mubr.msk.f32.mxu0 %vm365_vm1, %v18304_v40 }
 0x193   : > { %15363 = vmatprep.subr.msk.mxu0 %vm551_vm0, %v12940_v20  ;;  %16961 = vmatprep.subr.bf16.mxu1 %v16741_v39 }
 0x194   : > { %16965 = vmatpush3.bf16.msra.mxu1 %v16741_v39 }
 0x195   : > { %15269 = vmatmul.mubr.msk.f32.gmra.mrb[2].mxu0 %vm365_vm1, %v18310_v41 }
 0x196   : > { %15271 = vmatprep.mubr.msk.f32.mxu0 %vm365_vm1, %v18312_v42 }
 0x199   : > { %15272 = vmatmul.mubr.msk.f32.gmra.mrb[4].mxu0 %vm365_vm1, %v18318_v43 }
 0x19a   : > { %15274 = vmatprep.mubr.msk.f32.mxu0 %vm365_vm1, %v18320_v44 }
 0x19d   : > { %15275 = vmatmul.mubr.msk.f32.gmra.mrb[6].mxu0 %vm365_vm1, %v18326_v45 }
 0x19e   : > { %15277 = vmatprep.mubr.msk.f32.mxu0 %vm365_vm1, %v18328_v46 }
 0x1a1   : > { %15278 = vmatmul.mubr.msk.f32.gmra.mrb[8].mxu0 %vm365_vm1, %v18334_v47 }
 0x1a2   : > { %15280 = vmatprep.mubr.msk.f32.mxu0 %vm365_vm1, %v18336_v48 }
 0x1a5   : > { %15281 = vmatmul.mubr.msk.f32.gmra.mrb[10].mxu0 %vm365_vm1, %v18342_v49 }
 0x1a6   : > { %15283 = vmatprep.mubr.msk.f32.mxu0 %vm365_vm1, %v18344_v50 }
 0x1a9   : > { %15284 = vmatmul.mubr.msk.f32.gmra.mrb[12].mxu0 %vm365_vm1, %v18350_v51 }
 0x1aa   : > { %15286 = vmatprep.mubr.msk.f32.mxu0 %vm365_vm1, %v18352_v52 }
 0x1ad   : > { %15287 = vmatmul.mubr.msk.f32.gmra.mrb[14].mxu0 %vm365_vm1, %v18358_v53 }
 0x1ae   : > { %15289 = vmatprep.mubr.msk.f32.mxu0 %vm365_vm1, %v18360_v54 }
 0x1b1   : > { %15290 = vmatmul.mubr.msk.f32.gmra.mrb[16].mxu0 %vm365_vm1, %v18366_v55 }
 0x1b2   : > { %15292 = vmatprep.mubr.msk.f32.mxu0 %vm365_vm1, %v18368_v56 }
 0x1b5   : > { %15293 = vmatmul.mubr.msk.f32.gmra.mrb[18].mxu0 %vm365_vm1, %v18378_v59 }
 0x1b6   : > { %15295 = vmatprep.mubr.msk.f32.mxu0 %vm365_vm1, %v18380_v60 }
 0x1b9   : > { %15296 = vmatmul.mubr.msk.f32.gmra.mrb[20].mxu0 %vm365_vm1, %v18386_v61 }
 0x1ba   : > { %15298 = vmatprep.mubr.msk.f32.mxu0 %vm365_vm1, %v18529_v7 }
 0x1bd   : > { %15299 = vmatmul.mubr.msk.f32.gmra.mrb[22].mxu0 %vm365_vm1, %v18535_v8 }
 0x1be   : > { %15301 = vmatprep.mubr.msk.f32.mxu0 %vm365_vm1, %v18606_v12 }
 0x1c1   : > { %15302 = vmatmul.mubr.msk.f32.gmra.mrb[24].mxu0 %vm365_vm1, %v18612_v13 }
 0x1c2   : > { %15304 = vmatprep.mubr.msk.f32.mxu0 %vm365_vm1, %v18679_v15 }
 0x1c5   : > { %15305 = vmatmul.mubr.msk.f32.gmra.mrb[26].mxu0 %vm365_vm1, %v18685_v16 }
 0x1c6   : > { %15307 = vmatprep.mubr.msk.f32.mxu0 %vm365_vm1, %v18752_v18 }
 0x1c9   : > { %15308 = vmatmul.mubr.msk.f32.gmra.mrb[28].mxu0 %vm365_vm1, %v18758_v19 }
 0x1ca   : > { %15310 = vmatprep.mubr.msk.f32.mxu0 %vm365_vm1, %v18825_v21 }
 0x1cd   : > { %15311 = vmatmul.mubr.msk.f32.gmra.mrb[30].mxu0 %vm365_vm1, %v18831_v22 }
 0x1ce   : > { %15315 = vmatprep.mubr.msk.f32.mxu0 %vm365_vm1, %v18304_v40  ;;  %v3750_v40 = vld [vmem:[#allocation2 + $0xc0] sm:$0xff] }
 0x1d1   : > { %15316 = vmatmul.mubr.msk.f32.vlgmr.msra.gmra.mrb[0].mxu0 %vm365_vm1, %v18310_v41  ;;  %v3751_v41 = vld [vmem:[#allocation2 + $0xc8] sm:$0xff] }
 0x1d2   : > { %15364 = vmatpush3.msk.msra.mxu0 %vm551_vm0, %v12940_v20  ;;  %15318 = vmatprep.mubr.msk.f32.mxu0 %vm365_vm1, %v18312_v42  ;;  %v3752_v42 = vld [vmem:[#allocation2 + $0xd0] sm:$0xff] }
 0x1d3   : > { %15413 = vmatprep.subr.msk.mxu0 %vm551_vm0, %v12974_v23 }
 0x1d5   : > { %15319 = vmatmul.mubr.msk.f32.gmra.mrb[2].mxu0 %vm365_vm1, %v18318_v43  ;;  %v3753_v43 = vld [vmem:[#allocation2 + $0xd8] sm:$0xff] }
 0x1d6   : > { %15321 = vmatprep.mubr.msk.f32.mxu0 %vm365_vm1, %v18320_v44  ;;  %v3754_v44 = vld [vmem:[#allocation2 + $0xe0] sm:$0xff] }
 0x1d9   : > { %15322 = vmatmul.mubr.msk.f32.gmra.mrb[4].mxu0 %vm365_vm1, %v18326_v45  ;;  %v3755_v45 = vld [vmem:[#allocation2 + $0xe8] sm:$0xff] }
 0x1da   : > { %15324 = vmatprep.mubr.msk.f32.mxu0 %vm365_vm1, %v18328_v46  ;;  %v3756_v46 = vld [vmem:[#allocation2 + $0xf0] sm:$0xff] }
 0x1dd   : > { %15325 = vmatmul.mubr.msk.f32.gmra.mrb[6].mxu0 %vm365_vm1, %v18334_v47  ;;  %v3757_v47 = vld [vmem:[#allocation2 + $0xf8] sm:$0xff] }
 0x1de   : > { %15327 = vmatprep.mubr.msk.f32.mxu0 %vm365_vm1, %v18336_v48  ;;  %v3758_v48 = vld [vmem:[#allocation2 + $0x100] sm:$0xff] }
 0x1e1   : > { %15328 = vmatmul.mubr.msk.f32.gmra.mrb[8].mxu0 %vm365_vm1, %v18342_v49  ;;  %v3759_v49 = vld [vmem:[#allocation2 + $0x108] sm:$0xff] }
 0x1e2   : > { %15330 = vmatprep.mubr.msk.f32.mxu0 %vm365_vm1, %v18344_v50 }
 0x1e5   : > { %15331 = vmatmul.mubr.msk.f32.gmra.mrb[10].mxu0 %vm365_vm1, %v18350_v51 }
 0x1e6   : > { %15333 = vmatprep.mubr.msk.f32.mxu0 %vm365_vm1, %v18352_v52 }
 0x1e9   : > { %15334 = vmatmul.mubr.msk.f32.gmra.mrb[12].mxu0 %vm365_vm1, %v18358_v53 }
 0x1ea   : > { %15336 = vmatprep.mubr.msk.f32.mxu0 %vm365_vm1, %v18360_v54 }
 0x1ed   : > { %15337 = vmatmul.mubr.msk.f32.gmra.mrb[14].mxu0 %vm365_vm1, %v18366_v55 }
 0x1ee   : > { %15339 = vmatprep.mubr.msk.f32.mxu0 %vm365_vm1, %v18368_v56 }
 0x1f1   : > { %15340 = vmatmul.mubr.msk.f32.gmra.mrb[16].mxu0 %vm365_vm1, %v18378_v59 }
 0x1f2   : > { %15342 = vmatprep.mubr.msk.f32.mxu0 %vm365_vm1, %v18380_v60 }
 0x1f5   : > { %15343 = vmatmul.mubr.msk.f32.gmra.mrb[18].mxu0 %vm365_vm1, %v18386_v61 }
 0x1f6   : > { %15345 = vmatprep.mubr.msk.f32.mxu0 %vm365_vm1, %v18529_v7 }
 0x1f9   : > { %15346 = vmatmul.mubr.msk.f32.gmra.mrb[20].mxu0 %vm365_vm1, %v18535_v8 }
 0x1fa   : > { %15348 = vmatprep.mubr.msk.f32.mxu0 %vm365_vm1, %v18606_v12 }
 0x1fd   : > { %15349 = vmatmul.mubr.msk.f32.gmra.mrb[22].mxu0 %vm365_vm1, %v18612_v13 }
 0x1fe   : > { %15351 = vmatprep.mubr.msk.f32.mxu0 %vm365_vm1, %v18679_v15 }
 0x201   : > { %15352 = vmatmul.mubr.msk.f32.gmra.mrb[24].mxu0 %vm365_vm1, %v18685_v16 }
 0x202   : > { %15354 = vmatprep.mubr.msk.f32.mxu0 %vm365_vm1, %v18752_v18 }
 0x205   : > { %15355 = vmatmul.mubr.msk.f32.gmra.mrb[26].mxu0 %vm365_vm1, %v18758_v19 }
 0x206   : > { %15357 = vmatprep.mubr.msk.f32.mxu0 %vm365_vm1, %v18825_v21 }
 0x209   : > { %15358 = vmatmul.mubr.msk.f32.gmra.mrb[28].mxu0 %vm365_vm1, %v18831_v22 }
 0x20a   : > { %15360 = vmatprep.mubr.msk.f32.mxu0 %vm365_vm1, %v18898_v24 }
 0x20d   : > { %15361 = vmatmul.mubr.msk.f32.gmra.mrb[30].mxu0 %vm365_vm1, %v18904_v25 }
 0x20e   : > { %15365 = vmatprep.mubr.msk.f32.mxu0 %vm365_vm1, %v3354_v26 }
 0x211   : > { %15366 = vmatmul.mubr.msk.f32.vlgmr.msra.gmra.mrb[0].mxu0 %vm365_vm1, %v3355_v27 }
 0x212   : > { %15414 = vmatpush3.msk.msra.mxu0 %vm551_vm0, %v12974_v23  ;;  %15368 = vmatprep.mubr.msk.f32.mxu0 %vm365_vm1, %v3356_v28  ;;  %v19200_v23 = vld [vmem:[%s21342_s2] ss:$0 sm:$0xff] }
 0x213   : > { %15463 = vmatprep.subr.msk.mxu0 %vm551_vm0, %v13008_v29 }
 0x215   : > { %15369 = vmatmul.mubr.msk.f32.gmra.mrb[2].mxu0 %vm365_vm1, %v3357_v30 }
 0x216   : > { %15371 = vmatprep.mubr.msk.f32.mxu0 %vm365_vm1, %v18915_v31 }
 0x219   : > { %15372 = vmatmul.mubr.msk.f32.gmra.mrb[4].mxu0 %vm365_vm1, %v18921_v32 }
 0x21a   : > { %15374 = vmatprep.mubr.msk.f32.mxu0 %vm365_vm1, %v18923_v33 }
 0x21d   : > { %15375 = vmatmul.mubr.msk.f32.gmra.mrb[6].mxu0 %vm365_vm1, %v18929_v34 }
 0x21e   : > { %15377 = vmatprep.mubr.msk.f32.mxu0 %vm365_vm1, %v18344_v50  ;;  %v3774_v50 = vld [vmem:[#allocation2 + $0x180] sm:$0xff] }
 0x221   : > { %15378 = vmatmul.mubr.msk.f32.gmra.mrb[8].mxu0 %vm365_vm1, %v18350_v51  ;;  %v3775_v51 = vld [vmem:[#allocation2 + $0x188] sm:$0xff] }
 0x222   : > { %15380 = vmatprep.mubr.msk.f32.mxu0 %vm365_vm1, %v18352_v52  ;;  %v4148_v52 = vld [vmem:[#allocation2 + $0x110] sm:$0xff] }
 0x225   : > { %15381 = vmatmul.mubr.msk.f32.gmra.mrb[10].mxu0 %vm365_vm1, %v18358_v53  ;;  %v4149_v53 = vld [vmem:[#allocation2 + $0x118] sm:$0xff] }
 0x226   : > { %15383 = vmatprep.mubr.msk.f32.mxu0 %vm365_vm1, %v18360_v54  ;;  %v4164_v54 = vld [vmem:[#allocation2 + $0x190] sm:$0xff] }
 0x229   : > { %15384 = vmatmul.mubr.msk.f32.gmra.mrb[12].mxu0 %vm365_vm1, %v18366_v55  ;;  %v4165_v55 = vld [vmem:[#allocation2 + $0x198] sm:$0xff] }
 0x22a   : > { %15386 = vmatprep.mubr.msk.f32.mxu0 %vm365_vm1, %v18368_v56  ;;  %v13045_v56 = vld [vmem:[%s21343_s3 + $0x50] sm:$0xff] }
 0x22b   : > { %v16745_v58 = vpack.c.bf16 %v13046_v57, %v13045_v56 }
 0x22d   : > { %15387 = vmatmul.mubr.msk.f32.gmra.mrb[14].mxu0 %vm365_vm1, %v18378_v59  ;;  %16962 = vmatprep.subr.bf16.mxu1 %v16745_v58  ;;  %v13047_v59 = vld [vmem:[%s21343_s3 + $0x60] sm:$0xff] }
 0x22e   : > { %15389 = vmatprep.mubr.msk.f32.mxu0 %vm365_vm1, %v18380_v60  ;;  %16966 = vmatpush3.bf16.msra.mxu1 %v16745_v58  ;;  %v13048_v60 = vld [vmem:[%s21343_s3 + $0x68] sm:$0xff] }
 0x231   : > { %15390 = vmatmul.mubr.msk.f32.gmra.mrb[16].mxu0 %vm365_vm1, %v18386_v61  ;;  %v16749_v61 = vpack.c.bf16 %v13048_v60, %v13047_v59 }
 0x232   : > { %15392 = vmatprep.mubr.msk.f32.mxu0 %vm365_vm1, %v18529_v7 }
 0x233   : > { %16963 = vmatprep.subr.bf16.mxu1 %v16749_v61 }
 0x234   : > { %16967 = vmatpush3.bf16.msra.mxu1 %v16749_v61 }
 0x235   : > { %15393 = vmatmul.mubr.msk.f32.gmra.mrb[18].mxu0 %vm365_vm1, %v18535_v8  ;;  %16964 = vmatprep.subr.bf16.mxu1 %v16753_v0 }
 0x236   : > { %15395 = vmatprep.mubr.msk.f32.mxu0 %vm365_vm1, %v18606_v12 }
 0x238   : > { %16968 = vmatpush3.bf16.msra.mxu1 %v16753_v0 }
 0x239   : > { %15396 = vmatmul.mubr.msk.f32.gmra.mrb[20].mxu0 %vm365_vm1, %v18612_v13 }
 0x23a   : > { %15398 = vmatprep.mubr.msk.f32.mxu0 %vm365_vm1, %v18679_v15 }
 0x23b   : > { %15533 = vmatmul.mubr.msk.f32.vlgmr.msra.gmra.mrb[0].mxu1 %vm4595_vm2, %v19144_v3 }
 0x23c   : > { %15535 = vmatprep.mubr.msk.f32.mxu1 %vm4595_vm2, %v19148_v4 }
 0x23d   : > { %15399 = vmatmul.mubr.msk.f32.gmra.mrb[22].mxu0 %vm365_vm1, %v18685_v16 }
 0x23e   : > { %15401 = vmatprep.mubr.msk.f32.mxu0 %vm365_vm1, %v18752_v18 }
 0x23f   : > { %15536 = vmatmul.mubr.msk.f32.gmra.mrb[2].mxu1 %vm4595_vm2, %v19152_v5 }
 0x241   : > { %15402 = vmatmul.mubr.msk.f32.gmra.mrb[24].mxu0 %vm365_vm1, %v18758_v19 }
 0x242   : > { %15404 = vmatprep.mubr.msk.f32.mxu0 %vm365_vm1, %v18825_v21 }
 0x245   : > { %15405 = vmatmul.mubr.msk.f32.gmra.mrb[26].mxu0 %vm365_vm1, %v18831_v22 }
 0x246   : > { %15407 = vmatprep.mubr.msk.f32.mxu0 %vm365_vm1, %v18898_v24 }
 0x249   : > { %15408 = vmatmul.mubr.msk.f32.gmra.mrb[28].mxu0 %vm365_vm1, %v18904_v25 }
 0x24a   : > { %15410 = vmatprep.mubr.msk.f32.mxu0 %vm365_vm1, %v18975_v35 }
 0x24d   : > { %15411 = vmatmul.mubr.msk.f32.gmra.mrb[30].mxu0 %vm365_vm1, %v18981_v36 }
 0x24e   : > { %15415 = vmatprep.mubr.msk.f32.mxu0 %vm365_vm1, %v3356_v28 }
 0x251   : > { %15416 = vmatmul.mubr.msk.f32.vlgmr.msra.gmra.mrb[0].mxu0 %vm365_vm1, %v3357_v30 }
 0x252   : > { %15464 = vmatpush3.msk.msra.mxu0 %vm551_vm0, %v13008_v29  ;;  %15418 = vmatprep.mubr.msk.f32.mxu0 %vm365_vm1, %v18915_v31 }
 0x253   : > { %16742 = vmatprep.subr.bf16.mxu0 %v16741_v39 }
 0x255   : > { %15419 = vmatmul.mubr.msk.f32.gmra.mrb[2].mxu0 %vm365_vm1, %v18921_v32 }
 0x256   : > { %15421 = vmatprep.mubr.msk.f32.mxu0 %vm365_vm1, %v18923_v33 }
 0x259   : > { %15422 = vmatmul.mubr.msk.f32.gmra.mrb[4].mxu0 %vm365_vm1, %v18929_v34 }
 0x25a   : > { %15424 = vmatprep.mubr.msk.f32.mxu0 %vm365_vm1, %v3750_v40 }
 0x25d   : > { %15425 = vmatmul.mubr.msk.f32.gmra.mrb[6].mxu0 %vm365_vm1, %v3751_v41 }
 0x25e   : > { %15427 = vmatprep.mubr.msk.f32.mxu0 %vm365_vm1, %v3752_v42 }
 0x261   : > { %15428 = vmatmul.mubr.msk.f32.gmra.mrb[8].mxu0 %vm365_vm1, %v3753_v43 }
 0x262   : > { %15430 = vmatprep.mubr.msk.f32.mxu0 %vm365_vm1, %v3754_v44 }
 0x265   : > { %15431 = vmatmul.mubr.msk.f32.gmra.mrb[10].mxu0 %vm365_vm1, %v3755_v45 }
 0x266   : > { %15433 = vmatprep.mubr.msk.f32.mxu0 %vm365_vm1, %v3756_v46 }
 0x269   : > { %15434 = vmatmul.mubr.msk.f32.gmra.mrb[12].mxu0 %vm365_vm1, %v3757_v47 }
 0x26a   : > { %15436 = vmatprep.mubr.msk.f32.mxu0 %vm365_vm1, %v3758_v48 }
 0x26d   : > { %15437 = vmatmul.mubr.msk.f32.gmra.mrb[14].mxu0 %vm365_vm1, %v3759_v49 }
 0x26e   : > { %15439 = vmatprep.mubr.msk.f32.mxu0 %vm365_vm1, %v18529_v7  ;;  %v4677_v7 = vld [vmem:[%s21343_s3 + $0x8] sm:$0xff] }
 0x271   : > { %15440 = vmatmul.mubr.msk.f32.gmra.mrb[16].mxu0 %vm365_vm1, %v18535_v8  ;;  %v16757_v8 = vpack.c.bf16 %v4677_v7, %v4676_v6 }
 0x272   : > { %15442 = vmatprep.mubr.msk.f32.mxu0 %vm365_vm1, %v18606_v12 }
 0x273   : > { %16758 = vmatprep.subr.bf16.mxu1 %v16757_v8 }
 0x274   : > { %16760 = vmatpush3.bf16.msra.mxu1 %v16757_v8 }
 0x275   : > { %15443 = vmatmul.mubr.msk.f32.gmra.mrb[18].mxu0 %vm365_vm1, %v18612_v13  ;;  %16762 = vmatprep.subr.bf16.mxu1 %v16761_v11 }
 0x276   : > { %15445 = vmatprep.mubr.msk.f32.mxu0 %vm365_vm1, %v18679_v15 }
 0x278   : > { %16764 = vmatpush3.bf16.msra.mxu1 %v16761_v11 }
 0x279   : > { %15446 = vmatmul.mubr.msk.f32.gmra.mrb[20].mxu0 %vm365_vm1, %v18685_v16 }
 0x27a   : > { %15448 = vmatprep.mubr.msk.f32.mxu0 %vm365_vm1, %v18752_v18 }
 0x27d   : > { %15449 = vmatmul.mubr.msk.f32.gmra.mrb[22].mxu0 %vm365_vm1, %v18758_v19 }
 0x27e   : > { %15451 = vmatprep.mubr.msk.f32.mxu0 %vm365_vm1, %v18825_v21 }
 0x281   : > { %15452 = vmatmul.mubr.msk.f32.gmra.mrb[24].mxu0 %vm365_vm1, %v18831_v22 }
 0x282   : > { %15454 = vmatprep.mubr.msk.f32.mxu0 %vm365_vm1, %v18898_v24 }
 0x285   : > { %15455 = vmatmul.mubr.msk.f32.gmra.mrb[26].mxu0 %vm365_vm1, %v18904_v25 }
 0x286   : > { %15457 = vmatprep.mubr.msk.f32.mxu0 %vm365_vm1, %v18975_v35 }
 0x289   : > { %15458 = vmatmul.mubr.msk.f32.gmra.mrb[28].mxu0 %vm365_vm1, %v18981_v36 }
 0x28a   : > { %15460 = vmatprep.mubr.msk.f32.mxu0 %vm365_vm1, %v3774_v50 }
 0x28d   : > { %15461 = vmatmul.mubr.msk.f32.gmra.mrb[30].mxu0 %vm365_vm1, %v3775_v51 }
 0x28e   : > { %15465 = vmatprep.mubr.msk.f32.mxu0 %vm365_vm1, %v18915_v31 }
 0x291   : > { %15466 = vmatmul.mubr.msk.f32.vlgmr.msra.gmra.mrb[0].mxu0 %vm365_vm1, %v18921_v32 }
 0x292   : > { %15468 = vmatprep.mubr.msk.f32.mxu0 %vm365_vm1, %v18923_v33  ;;  %16744 = vmatpush3.bf16.msra.mxu0 %v16741_v39 }
 0x293   : > { %16746 = vmatprep.subr.bf16.mxu0 %v16745_v58 }
 0x295   : > { %15469 = vmatmul.mubr.msk.f32.gmra.mrb[2].mxu0 %vm365_vm1, %v18929_v34 }
 0x296   : > { %15471 = vmatprep.mubr.msk.f32.mxu0 %vm365_vm1, %v3750_v40  ;;  %16748 = vmatpush3.bf16.msra.mxu0 %v16745_v58 }
 0x297   : > { %16750 = vmatprep.subr.bf16.mxu0 %v16749_v61 }
 0x299   : > { %15472 = vmatmul.mubr.msk.f32.gmra.mrb[4].mxu0 %vm365_vm1, %v3751_v41 }
 0x29a   : > { %15474 = vmatprep.mubr.msk.f32.mxu0 %vm365_vm1, %v3752_v42  ;;  %16752 = vmatpush3.bf16.msra.mxu0 %v16749_v61 }
 0x29b   : > { %16754 = vmatprep.subr.bf16.mxu0 %v16753_v0 }
 0x29d   : > { %15475 = vmatmul.mubr.msk.f32.gmra.mrb[6].mxu0 %vm365_vm1, %v3753_v43 }
 0x29e   : > { %15477 = vmatprep.mubr.msk.f32.mxu0 %vm365_vm1, %v3754_v44  ;;  %16756 = vmatpush3.bf16.msra.mxu0 %v16753_v0 }
 0x2a1   : > { %15478 = vmatmul.mubr.msk.f32.gmra.mrb[8].mxu0 %vm365_vm1, %v3755_v45 }
 0x2a2   : > { %15480 = vmatprep.mubr.msk.f32.mxu0 %vm365_vm1, %v3756_v46 }
 0x2a5   : > { %15481 = vmatmul.mubr.msk.f32.gmra.mrb[10].mxu0 %vm365_vm1, %v3757_v47 }
 0x2a6   : > { %15483 = vmatprep.mubr.msk.f32.mxu0 %vm365_vm1, %v3758_v48 }
 0x2a9   : > { %15484 = vmatmul.mubr.msk.f32.gmra.mrb[12].mxu0 %vm365_vm1, %v3759_v49 }
 0x2aa   : > { %15486 = vmatprep.mubr.msk.f32.mxu0 %vm365_vm1, %v4148_v52 }
 0x2ad   : > { %15487 = vmatmul.mubr.msk.f32.gmra.mrb[14].mxu0 %vm365_vm1, %v4149_v53 }
 0x2ae   : > { %15489 = vmatprep.mubr.msk.f32.mxu0 %vm365_vm1, %v18606_v12  ;;  %v4680_v12 = vld [vmem:[%s21343_s3 + $0x20] sm:$0xff] }
 0x2b1   : > { %15490 = vmatmul.mubr.msk.f32.gmra.mrb[16].mxu0 %vm365_vm1, %v18612_v13  ;;  %v4681_v13 = vld [vmem:[%s21343_s3 + $0x28] sm:$0xff] }
 0x2b2   : > { %15492 = vmatprep.mubr.msk.f32.mxu0 %vm365_vm1, %v18679_v15  ;;  %v16765_v14 = vpack.c.bf16 %v4681_v13, %v4680_v12  ;;  %v4682_v15 = vld [vmem:[%s21343_s3 + $0x30] sm:$0xff] }
 0x2b4   : > { %16766 = vmatprep.subr.bf16.mxu1 %v16765_v14 }
 0x2b5   : > { %15493 = vmatmul.mubr.msk.f32.gmra.mrb[18].mxu0 %vm365_vm1, %v18685_v16  ;;  %16768 = vmatpush3.bf16.msra.mxu1 %v16765_v14  ;;  %v4683_v16 = vld [vmem:[%s21343_s3 + $0x38] sm:$0xff] }
 0x2b6   : > { %15495 = vmatprep.mubr.msk.f32.mxu0 %vm365_vm1, %v18752_v18  ;;  %v16769_v17 = vpack.c.bf16 %v4683_v16, %v4682_v15  ;;  %v13115_v18 = vld [vmem:[%s21343_s3 + $0x80] sm:$0xff] }
 0x2b8   : > { %16770 = vmatprep.subr.bf16.mxu1 %v16769_v17 }
 0x2b9   : > { %15496 = vmatmul.mubr.msk.f32.gmra.mrb[20].mxu0 %vm365_vm1, %v18758_v19  ;;  %16772 = vmatpush3.bf16.msra.mxu1 %v16769_v17  ;;  %v13116_v19 = vld [vmem:[%s21343_s3 + $0x88] sm:$0xff] }
 0x2ba   : > { %15498 = vmatprep.mubr.msk.f32.mxu0 %vm365_vm1, %v18825_v21  ;;  %v19186_v20 = vpack.c.bf16 %v13116_v19, %v13115_v18  ;;  %v19188_v21 = vld [vmem:[#allocation3 + $0x10] sm:$0xff] }
 0x2bc   : > { %16774 = vmatprep.subr.bf16.mxu1 %v19186_v20 }
 0x2bd   : > { %15499 = vmatmul.mubr.msk.f32.gmra.mrb[22].mxu0 %vm365_vm1, %v18831_v22  ;;  %v19191_v22 = vld [vmem:[#allocation3 + $0x18] sm:$0xff] }
 0x2be   : > { %15501 = vmatprep.mubr.msk.f32.mxu0 %vm365_vm1, %v18898_v24 }
 0x2c1   : > { %15502 = vmatmul.mubr.msk.f32.gmra.mrb[24].mxu0 %vm365_vm1, %v18904_v25 }
 0x2c2   : > { %15504 = vmatprep.mubr.msk.f32.mxu0 %vm365_vm1, %v18975_v35 }
 0x2c5   : > { %15505 = vmatmul.mubr.msk.f32.gmra.mrb[26].mxu0 %vm365_vm1, %v18981_v36 }
 0x2c6   : > { %15507 = vmatprep.mubr.msk.f32.mxu0 %vm365_vm1, %v3774_v50 }
 0x2c9   : > { %15508 = vmatmul.mubr.msk.f32.gmra.mrb[28].mxu0 %vm365_vm1, %v3775_v51 }
 0x2ca   : > { %15510 = vmatprep.mubr.msk.f32.mxu0 %vm365_vm1, %v4164_v54 }
 0x2cd   : > { %15511 = vmatmul.mubr.msk.f32.gmra.mrb[30].mxu0 %vm365_vm1, %v4165_v55 }
 0x2ce   : > { %15529 = vmatprep.mubr.msk.f32.mxu0 %vm4595_vm2, %v19188_v21 }
 0x2d1   : > { %15530 = vmatmul.mubr.msk.f32.vlgmr.msra.gmra.mrb[32].mxu0 %vm4595_vm2, %v19191_v22 }
 0x364   : > { %v15467_v24 = vpop.f32.mrb[0].mxu0 }
 0x365   : > { %v4532_v25 = vadd.f32 %v15467_v24, %v19200_v23  ;;  %v4333_v26 = vpop.f32.mrb[1].mxu0 }
 0x366   : > { %v4531_v27 = vadd.f32 %v19200_v23, %v4333_v26 }
 0x367   : > { %17874 = vtanh.f32 %v4532_v25 }
 0x368   : > { %17876 = vtanh.f32 %v4531_v27  ;;  %v15470_v28 = vpop.f32.mrb[2].mxu0 }
 0x369   : > { %v4534_v29 = vadd.f32 %v15470_v28, %v19200_v23  ;;  %v4343_v30 = vpop.f32.mrb[3].mxu0 }
 0x36a   : > { %v4533_v31 = vadd.f32 %v19200_v23, %v4343_v30 }
 0x36b   : > { %17878 = vtanh.f32 %v4534_v29 }
 0x36c   : > { %17880 = vtanh.f32 %v4533_v31  ;;  %v15473_v32 = vpop.f32.mrb[4].mxu0 }
 0x36d   : > { %v4536_v33 = vadd.f32 %v15473_v32, %v19200_v23  ;;  %v4353_v34 = vpop.f32.mrb[5].mxu0 }
 0x36e   : > { %v4535_v35 = vadd.f32 %v19200_v23, %v4353_v34 }
 0x36f   : > { %17882 = vtanh.f32 %v4536_v33 }
 0x370   : > { %17884 = vtanh.f32 %v4535_v35  ;;  %v15476_v36 = vpop.f32.mrb[6].mxu0 }
 0x371   : > { %v17875_v37 = vpop.eup %17874  ;;  %v4538_v38 = vadd.f32 %v15476_v36, %v19200_v23  ;;  %v4363_v39 = vpop.f32.mrb[7].mxu0 }
 0x372   : > { %v17877_v40 = vpop.eup %17876  ;;  %4613 = vst.msk [vmem:[#allocation3 + $0x48] sm:$0xff] %vm4595_vm2, %v17875_v37  ;;  %v4537_v41 = vadd.f32 %v19200_v23, %v4363_v39 }
 0x373   : > { %4612 = vst.msk [vmem:[#allocation3 + $0x40] sm:$0xff] %vm4595_vm2, %v17877_v40  ;;  %17886 = vtanh.f32 %v4538_v38 }
 0x374   : > { %17888 = vtanh.f32 %v4537_v41  ;;  %v15479_v42 = vpop.f32.mrb[8].mxu0 }
 0x375   : > { %v17879_v43 = vpop.eup %17878  ;;  %v4540_v44 = vadd.f32 %v15479_v42, %v19200_v23  ;;  %v4373_v45 = vpop.f32.mrb[9].mxu0 }
 0x376   : > { %v17881_v46 = vpop.eup %17880  ;;  %4615 = vst.msk [vmem:[#allocation3 + $0x58] sm:$0xff] %vm4595_vm2, %v17879_v43  ;;  %v4539_v47 = vadd.f32 %v19200_v23, %v4373_v45 }
 0x377   : > { %4614 = vst.msk [vmem:[#allocation3 + $0x50] sm:$0xff] %vm4595_vm2, %v17881_v46  ;;  %17890 = vtanh.f32 %v4540_v44 }
 0x378   : > { %17892 = vtanh.f32 %v4539_v47  ;;  %v15482_v48 = vpop.f32.mrb[10].mxu0 }
 0x379   : > { %v17883_v49 = vpop.eup %17882  ;;  %v4542_v50 = vadd.f32 %v15482_v48, %v19200_v23  ;;  %v4383_v51 = vpop.f32.mrb[11].mxu0  ;;  %v19224_v55 = vld [vmem:[#allocation3 + $0x48] sm:$0xff] }
 0x37a   : > { %v17885_v52 = vpop.eup %17884  ;;  %4617 = vst.msk [vmem:[#allocation3 + $0x68] sm:$0xff] %vm4595_vm2, %v17883_v49  ;;  %v4541_v53 = vadd.f32 %v19200_v23, %v4383_v51  ;;  %v19219_v54 = vld [vmem:[#allocation3 + $0x40] sm:$0xff] }
 0x37b   : > { %4616 = vst.msk [vmem:[#allocation3 + $0x60] sm:$0xff] %vm4595_vm2, %v17885_v52  ;;  %17894 = vtanh.f32 %v4542_v50  ;;  %15538 = vmatprep.mubr.msk.f32.mxu1 %vm4595_vm2, %v19219_v54 }
 0x37c   : > { %17896 = vtanh.f32 %v4541_v53  ;;  %v15485_v56 = vpop.f32.mrb[12].mxu0  ;;  %15539 = vmatmul.mubr.msk.f32.gmra.mrb[4].mxu1 %vm4595_vm2, %v19224_v55 }
 0x37d   : > { %v17887_v57 = vpop.eup %17886  ;;  %v4544_v58 = vadd.f32 %v15485_v56, %v19200_v23  ;;  %v4393_v59 = vpop.f32.mrb[13].mxu0  ;;  %v19236_v63 = vld [vmem:[#allocation3 + $0x58] sm:$0xff] }
 0x37e   : > { %v17889_v60 = vpop.eup %17888  ;;  %4619 = vst.msk [vmem:[#allocation3 + $0x78] sm:$0xff] %vm4595_vm2, %v17887_v57  ;;  %v4543_v61 = vadd.f32 %v19200_v23, %v4393_v59  ;;  %v19231_v62 = vld [vmem:[#allocation3 + $0x50] sm:$0xff] }
 0x37f   : > { %4618 = vst.msk [vmem:[#allocation3 + $0x70] sm:$0xff] %vm4595_vm2, %v17889_v60  ;;  %17898 = vtanh.f32 %v4544_v58  ;;  %15541 = vmatprep.mubr.msk.f32.mxu1 %vm4595_vm2, %v19231_v62 }
 0x380   : > { %17900 = vtanh.f32 %v4543_v61  ;;  %v15488_v0 = vpop.f32.mrb[14].mxu0  ;;  %15542 = vmatmul.mubr.msk.f32.gmra.mrb[6].mxu1 %vm4595_vm2, %v19236_v63 }
 0x381   : > { %v17891_v6 = vpop.eup %17890  ;;  %v4546_v7 = vadd.f32 %v15488_v0, %v19200_v23  ;;  %v4403_v8 = vpop.f32.mrb[15].mxu0  ;;  %v19248_v12 = vld [vmem:[#allocation3 + $0x68] sm:$0xff] }
 0x382   : > { %v17893_v9 = vpop.eup %17892  ;;  %4621 = vst.msk [vmem:[#allocation3 + $0x88] sm:$0xff] %vm4595_vm2, %v17891_v6  ;;  %v4545_v10 = vadd.f32 %v19200_v23, %v4403_v8  ;;  %v19243_v11 = vld [vmem:[#allocation3 + $0x60] sm:$0xff] }
 0x383   : > { %4620 = vst.msk [vmem:[#allocation3 + $0x80] sm:$0xff] %vm4595_vm2, %v17893_v9  ;;  %17902 = vtanh.f32 %v4546_v7  ;;  %15544 = vmatprep.mubr.msk.f32.mxu1 %vm4595_vm2, %v19243_v11 }
 0x384   : > { %17904 = vtanh.f32 %v4545_v10  ;;  %v15491_v13 = vpop.f32.mrb[16].mxu0  ;;  %15545 = vmatmul.mubr.msk.f32.gmra.mrb[8].mxu1 %vm4595_vm2, %v19248_v12 }
 0x385   : > { %v17895_v14 = vpop.eup %17894  ;;  %v4548_v15 = vadd.f32 %v15491_v13, %v19200_v23  ;;  %v4413_v16 = vpop.f32.mrb[17].mxu0  ;;  %v19260_v24 = vld [vmem:[#allocation3 + $0x78] sm:$0xff] }
 0x386   : > { %v17897_v17 = vpop.eup %17896  ;;  %4623 = vst.msk [vmem:[#allocation3 + $0x98] sm:$0xff] %vm4595_vm2, %v17895_v14  ;;  %v4547_v18 = vadd.f32 %v19200_v23, %v4413_v16  ;;  %v19255_v19 = vld [vmem:[#allocation3 + $0x70] sm:$0xff] }
 0x387   : > { %4622 = vst.msk [vmem:[#allocation3 + $0x90] sm:$0xff] %vm4595_vm2, %v17897_v17  ;;  %17906 = vtanh.f32 %v4548_v15  ;;  %15547 = vmatprep.mubr.msk.f32.mxu1 %vm4595_vm2, %v19255_v19 }
 0x388   : > { %17908 = vtanh.f32 %v4547_v18  ;;  %v15494_v25 = vpop.f32.mrb[18].mxu0  ;;  %15548 = vmatmul.mubr.msk.f32.gmra.mrb[10].mxu1 %vm4595_vm2, %v19260_v24 }
 0x389   : > { %v17899_v26 = vpop.eup %17898  ;;  %v4550_v27 = vadd.f32 %v15494_v25, %v19200_v23  ;;  %v4423_v28 = vpop.f32.mrb[19].mxu0  ;;  %v19272_v32 = vld [vmem:[#allocation3 + $0x88] sm:$0xff] }
 0x38a   : > { %v17901_v29 = vpop.eup %17900  ;;  %4625 = vst.msk [vmem:[#allocation3 + $0xa8] sm:$0xff] %vm4595_vm2, %v17899_v26  ;;  %v4549_v30 = vadd.f32 %v19200_v23, %v4423_v28  ;;  %v19267_v31 = vld [vmem:[#allocation3 + $0x80] sm:$0xff] }
 0x38b   : > { %4624 = vst.msk [vmem:[#allocation3 + $0xa0] sm:$0xff] %vm4595_vm2, %v17901_v29  ;;  %17910 = vtanh.f32 %v4550_v27  ;;  %15550 = vmatprep.mubr.msk.f32.mxu1 %vm4595_vm2, %v19267_v31 }
 0x38c   : > { %17912 = vtanh.f32 %v4549_v30  ;;  %v15497_v33 = vpop.f32.mrb[20].mxu0  ;;  %15551 = vmatmul.mubr.msk.f32.gmra.mrb[12].mxu1 %vm4595_vm2, %v19272_v32 }
 0x38d   : > { %v17903_v34 = vpop.eup %17902  ;;  %v4552_v35 = vadd.f32 %v15497_v33, %v19200_v23  ;;  %v4433_v36 = vpop.f32.mrb[21].mxu0  ;;  %v19284_v40 = vld [vmem:[#allocation3 + $0x98] sm:$0xff] }
 0x38e   : > { %v17905_v37 = vpop.eup %17904  ;;  %4627 = vst.msk [vmem:[#allocation3 + $0xb8] sm:$0xff] %vm4595_vm2, %v17903_v34  ;;  %v4551_v38 = vadd.f32 %v19200_v23, %v4433_v36  ;;  %v19279_v39 = vld [vmem:[#allocation3 + $0x90] sm:$0xff] }
 0x38f   : > { %4626 = vst.msk [vmem:[#allocation3 + $0xb0] sm:$0xff] %vm4595_vm2, %v17905_v37  ;;  %17914 = vtanh.f32 %v4552_v35  ;;  %15553 = vmatprep.mubr.msk.f32.mxu1 %vm4595_vm2, %v19279_v39 }
 0x390   : > { %17916 = vtanh.f32 %v4551_v38  ;;  %v15500_v41 = vpop.f32.mrb[22].mxu0  ;;  %15554 = vmatmul.mubr.msk.f32.gmra.mrb[14].mxu1 %vm4595_vm2, %v19284_v40 }
 0x391   : > { %v17907_v42 = vpop.eup %17906  ;;  %v4554_v43 = vadd.f32 %v15500_v41, %v19200_v23  ;;  %v4443_v44 = vpop.f32.mrb[23].mxu0  ;;  %v19296_v48 = vld [vmem:[#allocation3 + $0xa8] sm:$0xff] }
 0x392   : > { %v17909_v45 = vpop.eup %17908  ;;  %4629 = vst.msk [vmem:[#allocation3 + $0xc8] sm:$0xff] %vm4595_vm2, %v17907_v42  ;;  %v4553_v46 = vadd.f32 %v19200_v23, %v4443_v44  ;;  %v19291_v47 = vld [vmem:[#allocation3 + $0xa0] sm:$0xff] }
 0x393   : > { %4628 = vst.msk [vmem:[#allocation3 + $0xc0] sm:$0xff] %vm4595_vm2, %v17909_v45  ;;  %17918 = vtanh.f32 %v4554_v43  ;;  %15556 = vmatprep.mubr.msk.f32.mxu1 %vm4595_vm2, %v19291_v47  ;;  %v4644_v44 = vld [vmem:[#allocation3] sm:$0xff] }
 0x394   : > { %17920 = vtanh.f32 %v4553_v46  ;;  %v15503_v49 = vpop.f32.mrb[24].mxu0  ;;  %15557 = vmatmul.mubr.msk.f32.gmra.mrb[16].mxu1 %vm4595_vm2, %v19296_v48  ;;  %v13117_v46 = vld [vmem:[%s21343_s3 + $0x90] sm:$0xff] }
 0x395   : > { %v17911_v50 = vpop.eup %17910  ;;  %v4556_v51 = vadd.f32 %v15503_v49, %v19200_v23  ;;  %v4453_v52 = vpop.f32.mrb[25].mxu0  ;;  %v19308_v58 = vld [vmem:[#allocation3 + $0xb8] sm:$0xff] }
 0x396   : > { %v17913_v53 = vpop.eup %17912  ;;  %4631 = vst.msk [vmem:[#allocation3 + $0xd8] sm:$0xff] %vm4595_vm2, %v17911_v50  ;;  %v4555_v56 = vadd.f32 %v19200_v23, %v4453_v52  ;;  %v19303_v57 = vld [vmem:[#allocation3 + $0xb0] sm:$0xff]  ;;  %v13118_v49 = vld [vmem:[%s21343_s3 + $0x98] sm:$0xff] }
 0x397   : > { %4630 = vst.msk [vmem:[#allocation3 + $0xd0] sm:$0xff] %vm4595_vm2, %v17913_v53  ;;  %17922 = vtanh.f32 %v4556_v51  ;;  %15559 = vmatprep.mubr.msk.f32.mxu1 %vm4595_vm2, %v19303_v57  ;;  %v4645_v51 = vld [vmem:[#allocation3 + $0x8] sm:$0xff]  ;;  %v16777_v53 = vpack.c.bf16 %v13118_v49, %v13117_v46  ;;  %v13202_v46 = vld [vmem:[%s21343_s3 + $0x138] sm:$0xff]  ;;  %v13235_v49 = vld [vmem:[%s21343_s3 + $0x140] sm:$0xff] }
 0x398   : > { %17924 = vtanh.f32 %v4555_v56  ;;  %v15506_v59 = vpop.f32.mrb[26].mxu0  ;;  %15560 = vmatmul.mubr.msk.f32.gmra.mrb[18].mxu1 %vm4595_vm2, %v19308_v58  ;;  %v13119_v56 = vld [vmem:[%s21343_s3 + $0xa0] sm:$0xff] }
 0x399   : > { %v17915_v60 = vpop.eup %17914  ;;  %v4558_v61 = vadd.f32 %v15506_v59, %v19200_v23  ;;  %v4463_v0 = vpop.f32.mrb[27].mxu0  ;;  %v19320_v9 = vld [vmem:[#allocation3 + $0xc8] sm:$0xff] }
 0x39a   : > { %v17917_v6 = vpop.eup %17916  ;;  %4633 = vst.msk [vmem:[#allocation3 + $0xe8] sm:$0xff] %vm4595_vm2, %v17915_v60  ;;  %v4557_v7 = vadd.f32 %v19200_v23, %v4463_v0  ;;  %v19315_v8 = vld [vmem:[#allocation3 + $0xc0] sm:$0xff]  ;;  %v13120_v59 = vld [vmem:[%s21343_s3 + $0xa8] sm:$0xff]  ;;  %v13122_v0 = vld [vmem:[%s21343_s3 + $0xb8] sm:$0xff] }
 0x39b   : > { %4632 = vst.msk [vmem:[#allocation3 + $0xe0] sm:$0xff] %vm4595_vm2, %v17917_v6  ;;  %17926 = vtanh.f32 %v4558_v61  ;;  %15562 = vmatprep.mubr.msk.f32.mxu1 %vm4595_vm2, %v19315_v8  ;;  %v16781_v60 = vpack.c.bf16 %v13120_v59, %v13119_v56  ;;  %v13121_v61 = vld [vmem:[%s21343_s3 + $0xb0] sm:$0xff]  ;;  %v13156_v6 = vld [vmem:[%s21343_s3 + $0xc8] sm:$0xff]  ;;  %v13238_v59 = vld [vmem:[%s21343_s3 + $0x158] sm:$0xff] }
 0x39c   : > { %17928 = vtanh.f32 %v4557_v7  ;;  %v15509_v10 = vpop.f32.mrb[28].mxu0  ;;  %15563 = vmatmul.mubr.msk.f32.gmra.mrb[20].mxu1 %vm4595_vm2, %v19320_v9  ;;  %v13157_v7 = vld [vmem:[%s21343_s3 + $0xd0] sm:$0xff] }
 0x39d   : > { %v17919_v13 = vpop.eup %17918  ;;  %v4560_v14 = vadd.f32 %v15509_v10, %v19200_v23  ;;  %v4473_v15 = vpop.f32.mrb[29].mxu0  ;;  %v19332_v25 = vld [vmem:[#allocation3 + $0xd8] sm:$0xff]  ;;  %v13237_v56 = vld [vmem:[%s21343_s3 + $0x150] sm:$0xff] }
 0x39e   : > { %v17921_v16 = vpop.eup %17920  ;;  %4635 = vst.msk [vmem:[#allocation3 + $0xf8] sm:$0xff] %vm4595_vm2, %v17919_v13  ;;  %v4559_v17 = vadd.f32 %v19200_v23, %v4473_v15  ;;  %v19327_v18 = vld [vmem:[#allocation3 + $0xd0] sm:$0xff]  ;;  %v13158_v10 = vld [vmem:[%s21343_s3 + $0xd8] sm:$0xff]  ;;  %v13160_v15 = vld [vmem:[%s21343_s3 + $0xe8] sm:$0xff] }
 0x39f   : > { %4634 = vst.msk [vmem:[#allocation3 + $0xf0] sm:$0xff] %vm4595_vm2, %v17921_v16  ;;  %17930 = vtanh.f32 %v4560_v14  ;;  %15565 = vmatprep.mubr.msk.f32.mxu1 %vm4595_vm2, %v19327_v18  ;;  %v16793_v13 = vpack.c.bf16 %v13158_v10, %v13157_v7  ;;  %v13159_v14 = vld [vmem:[%s21343_s3 + $0xe0] sm:$0xff] }
 0x3a0   : > { %17932 = vtanh.f32 %v4559_v17  ;;  %v15512_v26 = vpop.f32.mrb[30].mxu0  ;;  %15566 = vmatmul.mubr.msk.f32.gmra.mrb[22].mxu1 %vm4595_vm2, %v19332_v25  ;;  %v16797_v16 = vpack.c.bf16 %v13160_v15, %v13159_v14  ;;  %v13162_v17 = vld [vmem:[%s21343_s3 + $0xf8] sm:$0xff]  ;;  %v13277_v14 = vld [vmem:[%s21343_s3 + $0x190] sm:$0xff] }
 0x3a1   : > { %v17923_v27 = vpop.eup %17922  ;;  %v4562_v28 = vadd.f32 %v15512_v26, %v19200_v23  ;;  %v4483_v29 = vpop.f32.mrb[31].mxu0  ;;  %v19344_v35 = vld [vmem:[#allocation3 + $0xe8] sm:$0xff]  ;;  %v13195_v26 = vld [vmem:[%s21343_s3 + $0x100] sm:$0xff]  ;;  %v13278_v15 = vld [vmem:[%s21343_s3 + $0x198] sm:$0xff] }
 0x3a2   : > { %v17925_v30 = vpop.eup %17924  ;;  %4637 = vst.msk [vmem:[#allocation3 + $0x108] sm:$0xff] %vm4595_vm2, %v17923_v27  ;;  %v4561_v33 = vadd.f32 %v19200_v23, %v4483_v29  ;;  %v19339_v34 = vld [vmem:[#allocation3 + $0xe0] sm:$0xff]  ;;  %v13196_v27 = vld [vmem:[%s21343_s3 + $0x108] sm:$0xff] }
 0x3a3   : > { %4636 = vst.msk [vmem:[#allocation3 + $0x100] sm:$0xff] %vm4595_vm2, %v17925_v30  ;;  %17934 = vtanh.f32 %v4562_v28  ;;  %15568 = vmatprep.mubr.msk.f32.mxu1 %vm4595_vm2, %v19339_v34  ;;  %v16805_v28 = vpack.c.bf16 %v13196_v27, %v13195_v26  ;;  %v13282_v26 = vld [vmem:[%s21343_s3 + $0x1b8] sm:$0xff]  ;;  %v13315_v27 = vld [vmem:[%s21343_s3 + $0x1c0] sm:$0xff] }
 0x3a4   : > { %17936 = vtanh.f32 %v4561_v33  ;;  %15569 = vmatmul.mubr.msk.f32.gmra.mrb[24].mxu1 %vm4595_vm2, %v19344_v35  ;;  %v13197_v33 = vld [vmem:[%s21343_s3 + $0x110] sm:$0xff] }
 0x3a5   : > { %v17927_v36 = vpop.eup %17926  ;;  %v19354_v23 = vld [vmem:[#allocation3 + $0xf8] sm:$0xff] }
 0x3a6   : > { %v17929_v37 = vpop.eup %17928  ;;  %4639 = vst.msk [vmem:[#allocation3 + $0x118] sm:$0xff] %vm4595_vm2, %v17927_v36  ;;  %v19349_v38 = vld [vmem:[#allocation3 + $0xf0] sm:$0xff]  ;;  %v13198_v36 = vld [vmem:[%s21343_s3 + $0x118] sm:$0xff] }
 0x3a7   : > { %4638 = vst.msk [vmem:[#allocation3 + $0x110] sm:$0xff] %vm4595_vm2, %v17929_v37  ;;  %15571 = vmatprep.mubr.msk.f32.mxu1 %vm4595_vm2, %v19349_v38  ;;  %v16809_v37 = vpack.c.bf16 %v13198_v36, %v13197_v33  ;;  %v19815_v36 = vld [vmem:[#allocation3 + $0x140] sm:$0xff] }
 0x3a8   : > { %15572 = vmatmul.mubr.msk.f32.gmra.mrb[26].mxu1 %vm4595_vm2, %v19354_v23 }
 0x3a9   : > { %v17931_v41 = vpop.eup %17930  ;;  %v19364_v45 = vld [vmem:[#allocation3 + $0x108] sm:$0xff] }
 0x3aa   : > { %v17933_v42 = vpop.eup %17932  ;;  %4641 = vst.msk [vmem:[#allocation3 + $0x128] sm:$0xff] %vm4595_vm2, %v17931_v41  ;;  %v19359_v43 = vld [vmem:[#allocation3 + $0x100] sm:$0xff] }
 0x3ab   : > { %4640 = vst.msk [vmem:[#allocation3 + $0x120] sm:$0xff] %vm4595_vm2, %v17933_v42  ;;  %15574 = vmatprep.mubr.msk.f32.mxu1 %vm4595_vm2, %v19359_v43  ;;  %v13199_v41 = vld [vmem:[%s21343_s3 + $0x120] sm:$0xff]  ;;  %v13200_v42 = vld [vmem:[%s21343_s3 + $0x128] sm:$0xff] }
 0x3ac   : > { %15575 = vmatmul.mubr.msk.f32.gmra.mrb[28].mxu1 %vm4595_vm2, %v19364_v45 }
 0x3ad   : > { %v17935_v50 = vpop.eup %17934  ;;  %15593 = vmatprep.mubr.msk.f32.mxu1 %vm4595_vm2, %v4644_v44  ;;  %v19545_v30 = vld [vmem:[#allocation3 + $0x118] sm:$0xff]  ;;  %v16813_v44 = vpack.c.bf16 %v13200_v42, %v13199_v41  ;;  %v13317_v41 = vld [vmem:[%s21343_s3 + $0x1d0] sm:$0xff] }
 0x3ae   : > { %v17937_v52 = vpop.eup %17936  ;;  %4643 = vst.msk [vmem:[#allocation3 + $0x138] sm:$0xff] %vm4595_vm2, %v17935_v50  ;;  %v19541_v29 = vld [vmem:[#allocation3 + $0x110] sm:$0xff]  ;;  %v13236_v50 = vld [vmem:[%s21343_s3 + $0x148] sm:$0xff]  ;;  %v13318_v42 = vld [vmem:[%s21343_s3 + $0x1d8] sm:$0xff] }
 0x3af   : > { %4642 = vst.msk [vmem:[#allocation3 + $0x130] sm:$0xff] %vm4595_vm2, %v17937_v52 }
 0x3b0   : > { %15594 = vmatmul.mubr.msk.f32.vlgmr.msra.gmra.mrb[30].mxu1 %vm4595_vm2, %v4645_v51  ;;  %v16821_v51 = vpack.c.bf16 %v13236_v50, %v13235_v49  ;;  %v13322_v49 = vld [vmem:[%s21343_s3 + $0x1f8] sm:$0xff]  ;;  %v13356_v50 = vld [vmem:[%s21343_s3 + $0x208] sm:$0xff] }
 0x3b1   : > { %16776 = vmatpush3.bf16.msra.mxu1 %v19186_v20  ;;  %15596 = vmatprep.mubr.msk.f32.mxu1 %vm4595_vm2, %v19188_v21  ;;  %v16785_v20 = vpack.c.bf16 %v13122_v0, %v13121_v61  ;;  %v13155_v21 = vld [vmem:[%s21343_s3 + $0xc0] sm:$0xff]  ;;  %v13240_v0 = vld [vmem:[%s21343_s3 + $0x168] sm:$0xff] }
 0x3b2   : > { %16778 = vmatprep.subr.bf16.mxu1 %v16777_v53  ;;  %v19633_v52 = vld [vmem:[#allocation3 + $0x120] sm:$0xff] }
 0x3b3   : > { %v13239_v61 = vld [vmem:[%s21343_s3 + $0x160] sm:$0xff] }
 0x3b4   : > { %15597 = vmatmul.mubr.msk.f32.gmra.mrb[0].mxu1 %vm4595_vm2, %v19191_v22  ;;  %v16789_v22 = vpack.c.bf16 %v13156_v6, %v13155_v21  ;;  %v13242_v21 = vld [vmem:[%s21343_s3 + $0x178] sm:$0xff]  ;;  %v13275_v6 = vld [vmem:[%s21343_s3 + $0x180] sm:$0xff] }
 0x3b5   : > { %15599 = vmatprep.mubr.msk.f32.mxu1 %vm4595_vm2, %v19140_v2  ;;  %16780 = vmatpush3.bf16.msra.mxu1 %v16777_v53  ;;  %v19637_v53 = vld [vmem:[#allocation3 + $0x128] sm:$0xff] }
 0x3b6   : > { %16782 = vmatprep.subr.bf16.mxu1 %v16781_v60  ;;  %v19725_v10 = vld [vmem:[#allocation3 + $0x130] sm:$0xff] }
 0x3b8   : > { %15600 = vmatmul.mubr.msk.f32.gmra.mrb[2].mxu1 %vm4595_vm2, %v19144_v3 }
 0x3b9   : > { %15602 = vmatprep.mubr.msk.f32.mxu1 %vm4595_vm2, %v19148_v4  ;;  %16784 = vmatpush3.bf16.msra.mxu1 %v16781_v60  ;;  %v16825_v60 = vpack.c.bf16 %v13238_v59, %v13237_v56  ;;  %v13396_v56 = vld [vmem:[%s21345_s5 + $0x20] sm:$0xff]  ;;  %v13397_v59 = vld [vmem:[%s21345_s5 + $0x28] sm:$0xff] }
 0x3ba   : > { %16786 = vmatprep.subr.bf16.mxu1 %v16785_v20 }
 0x3bc   : > { %15603 = vmatmul.mubr.msk.f32.gmra.mrb[4].mxu1 %vm4595_vm2, %v19152_v5 }
 0x3bd   : > { %15605 = vmatprep.mubr.msk.f32.mxu1 %vm4595_vm2, %v19219_v54  ;;  %16788 = vmatpush3.bf16.msra.mxu1 %v16785_v20  ;;  %v16829_v20 = vpack.c.bf16 %v13240_v0, %v13239_v61  ;;  %v16885_v61 = vpack.c.bf16 %v13397_v59, %v13396_v56  ;;  %v7224_v0 = vld [vmem:[#allocation3 + $0xa8] sm:$0xff] }
 0x3be   : > { %16790 = vmatprep.subr.bf16.mxu1 %v16789_v22 }
 0x3c0   : > { %15606 = vmatmul.mubr.msk.f32.gmra.mrb[6].mxu1 %vm4595_vm2, %v19224_v55 }
 0x3c1   : > { %15608 = vmatprep.mubr.msk.f32.mxu1 %vm4595_vm2, %v19231_v62 }
 0x3c4   : > { %15609 = vmatmul.mubr.msk.f32.gmra.mrb[8].mxu1 %vm4595_vm2, %v19236_v63 }
 0x3c5   : > { %15611 = vmatprep.mubr.msk.f32.mxu1 %vm4595_vm2, %v19243_v11 }
 0x3c8   : > { %15612 = vmatmul.mubr.msk.f32.gmra.mrb[10].mxu1 %vm4595_vm2, %v19248_v12 }
 0x3c9   : > { %15614 = vmatprep.mubr.msk.f32.mxu1 %vm4595_vm2, %v19255_v19 }
 0x3cc   : > { %15615 = vmatmul.mubr.msk.f32.gmra.mrb[12].mxu1 %vm4595_vm2, %v19260_v24 }
 0x3cd   : > { %15617 = vmatprep.mubr.msk.f32.mxu1 %vm4595_vm2, %v19267_v31 }
 0x3d0   : > { %15618 = vmatmul.mubr.msk.f32.gmra.mrb[14].mxu1 %vm4595_vm2, %v19272_v32 }
 0x3d1   : > { %15620 = vmatprep.mubr.msk.f32.mxu1 %vm4595_vm2, %v19279_v39 }
 0x3d4   : > { %15621 = vmatmul.mubr.msk.f32.gmra.mrb[16].mxu1 %vm4595_vm2, %v19284_v40 }
 0x3d5   : > { %15623 = vmatprep.mubr.msk.f32.mxu1 %vm4595_vm2, %v19291_v47 }
 0x3d8   : > { %15624 = vmatmul.mubr.msk.f32.gmra.mrb[18].mxu1 %vm4595_vm2, %v19296_v48 }
 0x3d9   : > { %15626 = vmatprep.mubr.msk.f32.mxu1 %vm4595_vm2, %v19303_v57 }
 0x3dc   : > { %15627 = vmatmul.mubr.msk.f32.gmra.mrb[20].mxu1 %vm4595_vm2, %v19308_v58 }
 0x3dd   : > { %15629 = vmatprep.mubr.msk.f32.mxu1 %vm4595_vm2, %v19315_v8 }
 0x3e0   : > { %15630 = vmatmul.mubr.msk.f32.gmra.mrb[22].mxu1 %vm4595_vm2, %v19320_v9 }
 0x3e1   : > { %15632 = vmatprep.mubr.msk.f32.mxu1 %vm4595_vm2, %v19327_v18 }
 0x3e4   : > { %15633 = vmatmul.mubr.msk.f32.gmra.mrb[24].mxu1 %vm4595_vm2, %v19332_v25 }
 0x3e5   : > { %15635 = vmatprep.mubr.msk.f32.mxu1 %vm4595_vm2, %v19339_v34 }
 0x3e8   : > { %15636 = vmatmul.mubr.msk.f32.gmra.mrb[26].mxu1 %vm4595_vm2, %v19344_v35 }
 0x3e9   : > { %15638 = vmatprep.mubr.msk.f32.mxu1 %vm4595_vm2, %v19349_v38 }
 0x3ec   : > { %15639 = vmatmul.mubr.msk.f32.gmra.mrb[28].mxu1 %vm4595_vm2, %v19354_v23 }
 0x3ed   : > { %15657 = vmatprep.mubr.msk.f32.mxu1 %vm4595_vm2, %v19140_v2  ;;  %v13161_v2 = vld [vmem:[%s21343_s3 + $0xf0] sm:$0xff] }
 0x3f0   : > { %15658 = vmatmul.mubr.msk.f32.vlgmr.msra.gmra.mrb[30].mxu1 %vm4595_vm2, %v19144_v3  ;;  %v16801_v3 = vpack.c.bf16 %v13162_v17, %v13161_v2  ;;  %v13279_v2 = vld [vmem:[%s21343_s3 + $0x1a0] sm:$0xff]  ;;  %v13280_v17 = vld [vmem:[%s21343_s3 + $0x1a8] sm:$0xff] }
 0x3f1   : > { %16792 = vmatpush3.bf16.msra.mxu1 %v16789_v22  ;;  %15660 = vmatprep.mubr.msk.f32.mxu1 %vm4595_vm2, %v19148_v4  ;;  %v13276_v22 = vld [vmem:[%s21343_s3 + $0x188] sm:$0xff] }
 0x3f2   : > { %16794 = vmatprep.subr.bf16.mxu1 %v16793_v13  ;;  %v16837_v7 = vpack.c.bf16 %v13276_v22, %v13275_v6  ;;  %v7229_v6 = vld [vmem:[#allocation3 + $0xd0] sm:$0xff]  ;;  %v7230_v22 = vld [vmem:[#allocation3 + $0xd8] sm:$0xff] }
 0x3f4   : > { %15661 = vmatmul.mubr.msk.f32.gmra.mrb[0].mxu1 %vm4595_vm2, %v19152_v5 }
 0x3f5   : > { %15663 = vmatprep.mubr.msk.f32.mxu1 %vm4595_vm2, %v19219_v54  ;;  %16796 = vmatpush3.bf16.msra.mxu1 %v16793_v13  ;;  %v19729_v13 = vld [vmem:[#allocation3 + $0x138] sm:$0xff] }
 0x3f6   : > { %16798 = vmatprep.subr.bf16.mxu1 %v16797_v16 }
 0x3f8   : > { %15664 = vmatmul.mubr.msk.f32.gmra.mrb[2].mxu1 %vm4595_vm2, %v19224_v55 }
 0x3f9   : > { %15666 = vmatprep.mubr.msk.f32.mxu1 %vm4595_vm2, %v19231_v62  ;;  %16800 = vmatpush3.bf16.msra.mxu1 %v16797_v16  ;;  %v16841_v16 = vpack.c.bf16 %v13278_v15, %v13277_v14  ;;  %v7232_v14 = vld [vmem:[#allocation3 + $0xe8] sm:$0xff]  ;;  %v7233_v15 = vld [vmem:[#allocation3 + $0xf0] sm:$0xff] }
 0x3fa   : > { %16802 = vmatprep.subr.bf16.mxu1 %v16801_v3 }
 0x3fc   : > { %15667 = vmatmul.mubr.msk.f32.gmra.mrb[4].mxu1 %vm4595_vm2, %v19236_v63 }
 0x3fd   : > { %15669 = vmatprep.mubr.msk.f32.mxu1 %vm4595_vm2, %v19243_v11  ;;  %16804 = vmatpush3.bf16.msra.mxu1 %v16801_v3  ;;  %v16845_v3 = vpack.c.bf16 %v13280_v17, %v13279_v2  ;;  %v7235_v2 = vld [vmem:[#allocation3 + $0x100] sm:$0xff]  ;;  %v7236_v17 = vld [vmem:[#allocation3 + $0x108] sm:$0xff] }
 0x3fe   : > { %16806 = vmatprep.subr.bf16.mxu1 %v16805_v28 }
 0x400   : > { %15670 = vmatmul.mubr.msk.f32.gmra.mrb[6].mxu1 %vm4595_vm2, %v19248_v12 }
 0x401   : > { %15672 = vmatprep.mubr.msk.f32.mxu1 %vm4595_vm2, %v19255_v19 }
 0x404   : > { %15673 = vmatmul.mubr.msk.f32.gmra.mrb[8].mxu1 %vm4595_vm2, %v19260_v24 }
 0x405   : > { %15675 = vmatprep.mubr.msk.f32.mxu1 %vm4595_vm2, %v19267_v31 }
 0x408   : > { %15676 = vmatmul.mubr.msk.f32.gmra.mrb[10].mxu1 %vm4595_vm2, %v19272_v32 }
 0x409   : > { %15678 = vmatprep.mubr.msk.f32.mxu1 %vm4595_vm2, %v19279_v39 }
 0x40c   : > { %15679 = vmatmul.mubr.msk.f32.gmra.mrb[12].mxu1 %vm4595_vm2, %v19284_v40 }
 0x40d   : > { %15681 = vmatprep.mubr.msk.f32.mxu1 %vm4595_vm2, %v19291_v47 }
 0x410   : > { %15682 = vmatmul.mubr.msk.f32.gmra.mrb[14].mxu1 %vm4595_vm2, %v19296_v48 }
 0x411   : > { %15684 = vmatprep.mubr.msk.f32.mxu1 %vm4595_vm2, %v19303_v57 }
 0x414   : > { %15685 = vmatmul.mubr.msk.f32.gmra.mrb[16].mxu1 %vm4595_vm2, %v19308_v58 }
 0x415   : > { %15687 = vmatprep.mubr.msk.f32.mxu1 %vm4595_vm2, %v19315_v8 }
 0x418   : > { %15688 = vmatmul.mubr.msk.f32.gmra.mrb[18].mxu1 %vm4595_vm2, %v19320_v9 }
 0x419   : > { %15690 = vmatprep.mubr.msk.f32.mxu1 %vm4595_vm2, %v19327_v18 }
 0x41c   : > { %15691 = vmatmul.mubr.msk.f32.gmra.mrb[20].mxu1 %vm4595_vm2, %v19332_v25 }
 0x41d   : > { %15693 = vmatprep.mubr.msk.f32.mxu1 %vm4595_vm2, %v19339_v34 }
 0x420   : > { %15694 = vmatmul.mubr.msk.f32.gmra.mrb[22].mxu1 %vm4595_vm2, %v19344_v35 }
 0x421   : > { %15696 = vmatprep.mubr.msk.f32.mxu1 %vm4595_vm2, %v19349_v38 }
 0x424   : > { %15697 = vmatmul.mubr.msk.f32.gmra.mrb[24].mxu1 %vm4595_vm2, %v19354_v23 }
 0x425   : > { %15699 = vmatprep.mubr.msk.f32.mxu1 %vm4595_vm2, %v19359_v43 }
 0x428   : > { %15700 = vmatmul.mubr.msk.f32.gmra.mrb[26].mxu1 %vm4595_vm2, %v19364_v45 }
 0x429   : > { %15702 = vmatprep.mubr.msk.f32.mxu1 %vm4595_vm2, %v19541_v29 }
 0x42c   : > { %15703 = vmatmul.mubr.msk.f32.gmra.mrb[28].mxu1 %vm4595_vm2, %v19545_v30 }
 0x42d   : > { %15721 = vmatprep.mubr.msk.f32.mxu1 %vm4595_vm2, %v19148_v4  ;;  %v13201_v4 = vld [vmem:[%s21343_s3 + $0x130] sm:$0xff] }
 0x430   : > { %15722 = vmatmul.mubr.msk.f32.vlgmr.msra.gmra.mrb[30].mxu1 %vm4595_vm2, %v19152_v5  ;;  %v16817_v5 = vpack.c.bf16 %v13202_v46, %v13201_v4  ;;  %v13319_v4 = vld [vmem:[%s21343_s3 + $0x1e0] sm:$0xff]  ;;  %v13320_v46 = vld [vmem:[%s21343_s3 + $0x1e8] sm:$0xff] }
 0x431   : > { %16808 = vmatpush3.bf16.msra.mxu1 %v16805_v28  ;;  %15724 = vmatprep.mubr.msk.f32.mxu1 %vm4595_vm2, %v19219_v54  ;;  %v13316_v28 = vld [vmem:[%s21343_s3 + $0x1c8] sm:$0xff] }
 0x432   : > { %16810 = vmatprep.subr.bf16.mxu1 %v16809_v37  ;;  %v16853_v33 = vpack.c.bf16 %v13316_v28, %v13315_v27  ;;  %v8153_v28 = vld [vmem:[%s21345_s5] sm:$0xff] }
 0x434   : > { %15725 = vmatmul.mubr.msk.f32.gmra.mrb[0].mxu1 %vm4595_vm2, %v19224_v55 }
 0x435   : > { %15727 = vmatprep.mubr.msk.f32.mxu1 %vm4595_vm2, %v19231_v62  ;;  %16812 = vmatpush3.bf16.msra.mxu1 %v16809_v37  ;;  %v19821_v37 = vld [vmem:[#allocation3 + $0x148] sm:$0xff] }
 0x436   : > { %16814 = vmatprep.subr.bf16.mxu1 %v16813_v44 }
 0x438   : > { %15728 = vmatmul.mubr.msk.f32.gmra.mrb[2].mxu1 %vm4595_vm2, %v19236_v63 }
 0x439   : > { %15730 = vmatprep.mubr.msk.f32.mxu1 %vm4595_vm2, %v19243_v11  ;;  %16816 = vmatpush3.bf16.msra.mxu1 %v16813_v44  ;;  %v16857_v44 = vpack.c.bf16 %v13318_v42, %v13317_v41  ;;  %v8156_v41 = vld [vmem:[%s21345_s5 + $0x18] sm:$0xff] }
 0x43a   : > { %16818 = vmatprep.subr.bf16.mxu1 %v16817_v5 }
 0x43c   : > { %15731 = vmatmul.mubr.msk.f32.gmra.mrb[4].mxu1 %vm4595_vm2, %v19248_v12 }
 0x43d   : > { %15733 = vmatprep.mubr.msk.f32.mxu1 %vm4595_vm2, %v19255_v19  ;;  %16820 = vmatpush3.bf16.msra.mxu1 %v16817_v5  ;;  %v16861_v5 = vpack.c.bf16 %v13320_v46, %v13319_v4  ;;  %v13465_v4 = vld [vmem:[%s21345_s5 + $0x48] sm:$0xff] }
 0x43e   : > { %16822 = vmatprep.subr.bf16.mxu1 %v16821_v51 }
 0x440   : > { %15734 = vmatmul.mubr.msk.f32.gmra.mrb[6].mxu1 %vm4595_vm2, %v19260_v24 }
 0x441   : > { %15736 = vmatprep.mubr.msk.f32.mxu1 %vm4595_vm2, %v19267_v31 }
 0x444   : > { %15737 = vmatmul.mubr.msk.f32.gmra.mrb[8].mxu1 %vm4595_vm2, %v19272_v32 }
 0x445   : > { %15739 = vmatprep.mubr.msk.f32.mxu1 %vm4595_vm2, %v19279_v39 }
 0x448   : > { %15740 = vmatmul.mubr.msk.f32.gmra.mrb[10].mxu1 %vm4595_vm2, %v19284_v40 }
 0x449   : > { %15742 = vmatprep.mubr.msk.f32.mxu1 %vm4595_vm2, %v19291_v47 }
 0x44c   : > { %15743 = vmatmul.mubr.msk.f32.gmra.mrb[12].mxu1 %vm4595_vm2, %v19296_v48 }
 0x44d   : > { %15745 = vmatprep.mubr.msk.f32.mxu1 %vm4595_vm2, %v19303_v57 }
 0x450   : > { %15746 = vmatmul.mubr.msk.f32.gmra.mrb[14].mxu1 %vm4595_vm2, %v19308_v58 }
 0x451   : > { %15748 = vmatprep.mubr.msk.f32.mxu1 %vm4595_vm2, %v19315_v8 }
 0x454   : > { %15749 = vmatmul.mubr.msk.f32.gmra.mrb[16].mxu1 %vm4595_vm2, %v19320_v9 }
 0x455   : > { %15751 = vmatprep.mubr.msk.f32.mxu1 %vm4595_vm2, %v19327_v18 }
 0x458   : > { %15752 = vmatmul.mubr.msk.f32.gmra.mrb[18].mxu1 %vm4595_vm2, %v19332_v25 }
 0x459   : > { %15754 = vmatprep.mubr.msk.f32.mxu1 %vm4595_vm2, %v19339_v34 }
 0x45c   : > { %15755 = vmatmul.mubr.msk.f32.gmra.mrb[20].mxu1 %vm4595_vm2, %v19344_v35 }
 0x45d   : > { %15757 = vmatprep.mubr.msk.f32.mxu1 %vm4595_vm2, %v19349_v38 }
 0x460   : > { %15758 = vmatmul.mubr.msk.f32.gmra.mrb[22].mxu1 %vm4595_vm2, %v19354_v23 }
 0x461   : > { %15760 = vmatprep.mubr.msk.f32.mxu1 %vm4595_vm2, %v19359_v43 }
 0x464   : > { %15761 = vmatmul.mubr.msk.f32.gmra.mrb[24].mxu1 %vm4595_vm2, %v19364_v45 }
 0x465   : > { %15763 = vmatprep.mubr.msk.f32.mxu1 %vm4595_vm2, %v19541_v29 }
 0x468   : > { %15764 = vmatmul.mubr.msk.f32.gmra.mrb[26].mxu1 %vm4595_vm2, %v19545_v30 }
 0x469   : > { %15766 = vmatprep.mubr.msk.f32.mxu1 %vm4595_vm2, %v19633_v52 }
 0x46c   : > { %15767 = vmatmul.mubr.msk.f32.gmra.mrb[28].mxu1 %vm4595_vm2, %v19637_v53 }
 0x46d   : > { %15785 = vmatprep.mubr.msk.f32.mxu1 %vm4595_vm2, %v19219_v54  ;;  %v13241_v54 = vld [vmem:[%s21343_s3 + $0x170] sm:$0xff] }
 0x470   : > { %15786 = vmatmul.mubr.msk.f32.vlgmr.msra.gmra.mrb[30].mxu1 %vm4595_vm2, %v19224_v55  ;;  %v16833_v55 = vpack.c.bf16 %v13242_v21, %v13241_v54  ;;  %v7226_v54 = vld [vmem:[#allocation3 + $0xb8] sm:$0xff]  ;;  %v7227_v21 = vld [vmem:[#allocation3 + $0xc0] sm:$0xff] }
 0x471   : > { %16824 = vmatpush3.bf16.msra.mxu1 %v16821_v51  ;;  %15788 = vmatprep.mubr.msk.f32.mxu1 %vm4595_vm2, %v19231_v62  ;;  %v7222_v51 = vld [vmem:[#allocation3 + $0x98] sm:$0xff] }
 0x472   : > { %16826 = vmatprep.subr.bf16.mxu1 %v16825_v60 }
 0x474   : > { %15789 = vmatmul.mubr.msk.f32.gmra.mrb[0].mxu1 %vm4595_vm2, %v19236_v63 }
 0x475   : > { %15791 = vmatprep.mubr.msk.f32.mxu1 %vm4595_vm2, %v19243_v11  ;;  %16828 = vmatpush3.bf16.msra.mxu1 %v16825_v60  ;;  %v7223_v60 = vld [vmem:[#allocation3 + $0xa0] sm:$0xff] }
 0x476   : > { %16830 = vmatprep.subr.bf16.mxu1 %v16829_v20 }
 0x478   : > { %15792 = vmatmul.mubr.msk.f32.gmra.mrb[2].mxu1 %vm4595_vm2, %v19248_v12 }
 0x479   : > { %15794 = vmatprep.mubr.msk.f32.mxu1 %vm4595_vm2, %v19255_v19  ;;  %16832 = vmatpush3.bf16.msra.mxu1 %v16829_v20  ;;  %v7225_v20 = vld [vmem:[#allocation3 + $0xb0] sm:$0xff] }
 0x47a   : > { %16834 = vmatprep.subr.bf16.mxu1 %v16833_v55 }
 0x47c   : > { %15795 = vmatmul.mubr.msk.f32.gmra.mrb[4].mxu1 %vm4595_vm2, %v19260_v24 }
 0x47d   : > { %15797 = vmatprep.mubr.msk.f32.mxu1 %vm4595_vm2, %v19267_v31  ;;  %16836 = vmatpush3.bf16.msra.mxu1 %v16833_v55  ;;  %v7228_v55 = vld [vmem:[#allocation3 + $0xc8] sm:$0xff] }
 0x47e   : > { %16838 = vmatprep.subr.bf16.mxu1 %v16837_v7 }
 0x480   : > { %15798 = vmatmul.mubr.msk.f32.gmra.mrb[6].mxu1 %vm4595_vm2, %v19272_v32 }
 0x481   : > { %15800 = vmatprep.mubr.msk.f32.mxu1 %vm4595_vm2, %v19279_v39 }
 0x484   : > { %15801 = vmatmul.mubr.msk.f32.gmra.mrb[8].mxu1 %vm4595_vm2, %v19284_v40 }
 0x485   : > { %15803 = vmatprep.mubr.msk.f32.mxu1 %vm4595_vm2, %v19291_v47 }
 0x488   : > { %15804 = vmatmul.mubr.msk.f32.gmra.mrb[10].mxu1 %vm4595_vm2, %v19296_v48 }
 0x489   : > { %15806 = vmatprep.mubr.msk.f32.mxu1 %vm4595_vm2, %v19303_v57 }
 0x48c   : > { %15807 = vmatmul.mubr.msk.f32.gmra.mrb[12].mxu1 %vm4595_vm2, %v19308_v58 }
 0x48d   : > { %15809 = vmatprep.mubr.msk.f32.mxu1 %vm4595_vm2, %v19315_v8 }
 0x490   : > { %15810 = vmatmul.mubr.msk.f32.gmra.mrb[14].mxu1 %vm4595_vm2, %v19320_v9 }
 0x491   : > { %15812 = vmatprep.mubr.msk.f32.mxu1 %vm4595_vm2, %v19327_v18 }
 0x494   : > { %15813 = vmatmul.mubr.msk.f32.gmra.mrb[16].mxu1 %vm4595_vm2, %v19332_v25 }
 0x495   : > { %15815 = vmatprep.mubr.msk.f32.mxu1 %vm4595_vm2, %v19339_v34 }
 0x498   : > { %15816 = vmatmul.mubr.msk.f32.gmra.mrb[18].mxu1 %vm4595_vm2, %v19344_v35 }
 0x499   : > { %15818 = vmatprep.mubr.msk.f32.mxu1 %vm4595_vm2, %v19349_v38 }
 0x49c   : > { %15819 = vmatmul.mubr.msk.f32.gmra.mrb[20].mxu1 %vm4595_vm2, %v19354_v23 }
 0x49d   : > { %15821 = vmatprep.mubr.msk.f32.mxu1 %vm4595_vm2, %v19359_v43 }
 0x4a0   : > { %15822 = vmatmul.mubr.msk.f32.gmra.mrb[22].mxu1 %vm4595_vm2, %v19364_v45 }
 0x4a1   : > { %15824 = vmatprep.mubr.msk.f32.mxu1 %vm4595_vm2, %v19541_v29 }
 0x4a4   : > { %15825 = vmatmul.mubr.msk.f32.gmra.mrb[24].mxu1 %vm4595_vm2, %v19545_v30 }
 0x4a5   : > { %15827 = vmatprep.mubr.msk.f32.mxu1 %vm4595_vm2, %v19633_v52 }
 0x4a8   : > { %15828 = vmatmul.mubr.msk.f32.gmra.mrb[26].mxu1 %vm4595_vm2, %v19637_v53 }
 0x4a9   : > { %15830 = vmatprep.mubr.msk.f32.mxu1 %vm4595_vm2, %v19725_v10 }
 0x4ac   : > { %15831 = vmatmul.mubr.msk.f32.gmra.mrb[28].mxu1 %vm4595_vm2, %v19729_v13 }
 0x4ad   : > { %15849 = vmatprep.mubr.msk.f32.mxu1 %vm4595_vm2, %v19231_v62  ;;  %v13281_v62 = vld [vmem:[%s21343_s3 + $0x1b0] sm:$0xff] }
 0x4b0   : > { %15850 = vmatmul.mubr.msk.f32.vlgmr.msra.gmra.mrb[30].mxu1 %vm4595_vm2, %v19236_v63  ;;  %v16849_v63 = vpack.c.bf16 %v13282_v26, %v13281_v62  ;;  %v7248_v62 = vld [vmem:[#allocation3 + $0x168] sm:$0xff]  ;;  %v13398_v26 = vld [vmem:[%s21345_s5 + $0x30] sm:$0xff] }
 0x4b1   : > { %16840 = vmatpush3.bf16.msra.mxu1 %v16837_v7  ;;  %15852 = vmatprep.mubr.msk.f32.mxu1 %vm4595_vm2, %v19243_v11  ;;  %v7231_v7 = vld [vmem:[#allocation3 + $0xe0] sm:$0xff] }
 0x4b2   : > { %16842 = vmatprep.subr.bf16.mxu1 %v16841_v16 }
 0x4b4   : > { %15853 = vmatmul.mubr.msk.f32.gmra.mrb[0].mxu1 %vm4595_vm2, %v19248_v12 }
 0x4b5   : > { %15855 = vmatprep.mubr.msk.f32.mxu1 %vm4595_vm2, %v19255_v19  ;;  %16844 = vmatpush3.bf16.msra.mxu1 %v16841_v16  ;;  %v7234_v16 = vld [vmem:[#allocation3 + $0xf8] sm:$0xff] }
 0x4b6   : > { %16846 = vmatprep.subr.bf16.mxu1 %v16845_v3 }
 0x4b8   : > { %15856 = vmatmul.mubr.msk.f32.gmra.mrb[2].mxu1 %vm4595_vm2, %v19260_v24 }
 0x4b9   : > { %15858 = vmatprep.mubr.msk.f32.mxu1 %vm4595_vm2, %v19267_v31  ;;  %16848 = vmatpush3.bf16.msra.mxu1 %v16845_v3  ;;  %v7247_v3 = vld [vmem:[#allocation3 + $0x160] sm:$0xff] }
 0x4ba   : > { %16850 = vmatprep.subr.bf16.mxu1 %v16849_v63 }
 0x4bc   : > { %15859 = vmatmul.mubr.msk.f32.gmra.mrb[4].mxu1 %vm4595_vm2, %v19272_v32 }
 0x4bd   : > { %15861 = vmatprep.mubr.msk.f32.mxu1 %vm4595_vm2, %v19279_v39  ;;  %16852 = vmatpush3.bf16.msra.mxu1 %v16849_v63  ;;  %v13399_v63 = vld [vmem:[%s21345_s5 + $0x38] sm:$0xff] }
 0x4be   : > { %16854 = vmatprep.subr.bf16.mxu1 %v16853_v33  ;;  %v16889_v27 = vpack.c.bf16 %v13399_v63, %v13398_v26 }
 0x4c0   : > { %15862 = vmatmul.mubr.msk.f32.gmra.mrb[6].mxu1 %vm4595_vm2, %v19284_v40 }
 0x4c1   : > { %15864 = vmatprep.mubr.msk.f32.mxu1 %vm4595_vm2, %v19291_v47 }
 0x4c4   : > { %15865 = vmatmul.mubr.msk.f32.gmra.mrb[8].mxu1 %vm4595_vm2, %v19296_v48 }
 0x4c5   : > { %15867 = vmatprep.mubr.msk.f32.mxu1 %vm4595_vm2, %v19303_v57 }
 0x4c8   : > { %15868 = vmatmul.mubr.msk.f32.gmra.mrb[10].mxu1 %vm4595_vm2, %v19308_v58 }
 0x4c9   : > { %15870 = vmatprep.mubr.msk.f32.mxu1 %vm4595_vm2, %v19315_v8 }
 0x4cc   : > { %15871 = vmatmul.mubr.msk.f32.gmra.mrb[12].mxu1 %vm4595_vm2, %v19320_v9 }
 0x4cd   : > { %15873 = vmatprep.mubr.msk.f32.mxu1 %vm4595_vm2, %v19327_v18 }
 0x4d0   : > { %15874 = vmatmul.mubr.msk.f32.gmra.mrb[14].mxu1 %vm4595_vm2, %v19332_v25 }
 0x4d1   : > { %15876 = vmatprep.mubr.msk.f32.mxu1 %vm4595_vm2, %v19339_v34 }
 0x4d4   : > { %15877 = vmatmul.mubr.msk.f32.gmra.mrb[16].mxu1 %vm4595_vm2, %v19344_v35 }
 0x4d5   : > { %15879 = vmatprep.mubr.msk.f32.mxu1 %vm4595_vm2, %v19349_v38 }
 0x4d8   : > { %15880 = vmatmul.mubr.msk.f32.gmra.mrb[18].mxu1 %vm4595_vm2, %v19354_v23 }
 0x4d9   : > { %15882 = vmatprep.mubr.msk.f32.mxu1 %vm4595_vm2, %v19359_v43 }
 0x4dc   : > { %15883 = vmatmul.mubr.msk.f32.gmra.mrb[20].mxu1 %vm4595_vm2, %v19364_v45 }
 0x4dd   : > { %15885 = vmatprep.mubr.msk.f32.mxu1 %vm4595_vm2, %v19541_v29 }
 0x4e0   : > { %15886 = vmatmul.mubr.msk.f32.gmra.mrb[22].mxu1 %vm4595_vm2, %v19545_v30 }
 0x4e1   : > { %15888 = vmatprep.mubr.msk.f32.mxu1 %vm4595_vm2, %v19633_v52 }
 0x4e4   : > { %15889 = vmatmul.mubr.msk.f32.gmra.mrb[24].mxu1 %vm4595_vm2, %v19637_v53 }
 0x4e5   : > { %15891 = vmatprep.mubr.msk.f32.mxu1 %vm4595_vm2, %v19725_v10 }
 0x4e8   : > { %15892 = vmatmul.mubr.msk.f32.gmra.mrb[26].mxu1 %vm4595_vm2, %v19729_v13 }
 0x4e9   : > { %15894 = vmatprep.mubr.msk.f32.mxu1 %vm4595_vm2, %v19815_v36 }
 0x4ec   : > { %15895 = vmatmul.mubr.msk.f32.gmra.mrb[28].mxu1 %vm4595_vm2, %v19821_v37 }
 0x4ed   : > { %15913 = vmatprep.mubr.msk.f32.mxu1 %vm4595_vm2, %v19243_v11  ;;  %v13321_v11 = vld [vmem:[%s21343_s3 + $0x1f0] sm:$0xff] }
 0x4f0   : > { %15914 = vmatmul.mubr.msk.f32.vlgmr.msra.gmra.mrb[30].mxu1 %vm4595_vm2, %v19248_v12  ;;  %v16865_v12 = vpack.c.bf16 %v13322_v49, %v13321_v11  ;;  %v20107_v11 = vld [vmem:[%s21344_s4] ss:$0 sm:$0xff] }
 0x4f1   : > { %16856 = vmatpush3.bf16.msra.mxu1 %v16853_v33  ;;  %15916 = vmatprep.mubr.msk.f32.mxu1 %vm4595_vm2, %v19255_v19  ;;  %v13355_v19 = vld [vmem:[%s21343_s3 + $0x200] sm:$0xff]  ;;  %v8154_v33 = vld [vmem:[%s21345_s5 + $0x8] sm:$0xff] }
 0x4f2   : > { %16858 = vmatprep.subr.bf16.mxu1 %v16857_v44 }
 0x4f4   : > { %15917 = vmatmul.mubr.msk.f32.gmra.mrb[0].mxu1 %vm4595_vm2, %v19260_v24  ;;  %v16869_v24 = vpack.c.bf16 %v13356_v50, %v13355_v19 }
 0x4f5   : > { %15919 = vmatprep.mubr.msk.f32.mxu1 %vm4595_vm2, %v19267_v31  ;;  %16860 = vmatpush3.bf16.msra.mxu1 %v16857_v44  ;;  %v19907_v31 = vld [vmem:[#allocation3 + $0x150] sm:$0xff]  ;;  %v13464_v44 = vld [vmem:[%s21345_s5 + $0x40] sm:$0xff] }
 0x4f6   : > { %16862 = vmatprep.subr.bf16.mxu1 %v16861_v5  ;;  %v20101_v46 = vpack.c.bf16 %v13465_v4, %v13464_v44 }
 0x4f8   : > { %15920 = vmatmul.mubr.msk.f32.gmra.mrb[2].mxu1 %vm4595_vm2, %v19272_v32  ;;  %v19913_v32 = vld [vmem:[#allocation3 + $0x158] sm:$0xff] }
 0x4f9   : > { %15922 = vmatprep.mubr.msk.f32.mxu1 %vm4595_vm2, %v19279_v39  ;;  %16864 = vmatpush3.bf16.msra.mxu1 %v16861_v5  ;;  %v13357_v39 = vld [vmem:[%s21343_s3 + $0x210] sm:$0xff] }
 0x4fa   : > { %16866 = vmatprep.subr.bf16.mxu1 %v16865_v12 }
 0x4fc   : > { %15923 = vmatmul.mubr.msk.f32.gmra.mrb[4].mxu1 %vm4595_vm2, %v19284_v40  ;;  %v13358_v40 = vld [vmem:[%s21343_s3 + $0x218] sm:$0xff] }
 0x4fd   : > { %15925 = vmatprep.mubr.msk.f32.mxu1 %vm4595_vm2, %v19291_v47  ;;  %16868 = vmatpush3.bf16.msra.mxu1 %v16865_v12  ;;  %v7217_v47 = vld [vmem:[#allocation3 + $0x70] sm:$0xff] }
 0x4fe   : > { %16870 = vmatprep.subr.bf16.mxu1 %v16869_v24 }
 0x500   : > { %15926 = vmatmul.mubr.msk.f32.gmra.mrb[6].mxu1 %vm4595_vm2, %v19296_v48  ;;  %v19923_v48 = vpop.f32.mrb[32].mxu0 }
 0x501   : > { %15928 = vmatprep.mubr.msk.f32.mxu1 %vm4595_vm2, %v19303_v57  ;;  %v19926_v57 = vpop.f32.mrb[33].mxu0 }
 0x504   : > { %15929 = vmatmul.mubr.msk.f32.gmra.mrb[8].mxu1 %vm4595_vm2, %v19308_v58  ;;  %v16873_v58 = vpack.c.bf16 %v13358_v40, %v13357_v39 }
 0x505   : > { %15931 = vmatprep.mubr.msk.f32.mxu1 %vm4595_vm2, %v19315_v8  ;;  %v7218_v8 = vld [vmem:[#allocation3 + $0x78] sm:$0xff] }
 0x508   : > { %15932 = vmatmul.mubr.msk.f32.gmra.mrb[10].mxu1 %vm4595_vm2, %v19320_v9  ;;  %v13359_v9 = vld [vmem:[%s21343_s3 + $0x220] sm:$0xff] }
 0x509   : > { %15934 = vmatprep.mubr.msk.f32.mxu1 %vm4595_vm2, %v19327_v18  ;;  %v13360_v18 = vld [vmem:[%s21343_s3 + $0x228] sm:$0xff] }
 0x50c   : > { %15935 = vmatmul.mubr.msk.f32.gmra.mrb[12].mxu1 %vm4595_vm2, %v19332_v25  ;;  %v19935_v25 = vld [vmem:[#allocation3 + $0x80] sm:$0xff] }
 0x50d   : > { %15937 = vmatprep.mubr.msk.f32.mxu1 %vm4595_vm2, %v19339_v34  ;;  %v16877_v34 = vpack.c.bf16 %v13360_v18, %v13359_v9 }
 0x510   : > { %15938 = vmatmul.mubr.msk.f32.gmra.mrb[14].mxu1 %vm4595_vm2, %v19344_v35  ;;  %v19939_v35 = vld [vmem:[#allocation3 + $0x88] sm:$0xff] }
 0x511   : > { %15940 = vmatprep.mubr.msk.f32.mxu1 %vm4595_vm2, %v19349_v38  ;;  %v13361_v38 = vld [vmem:[%s21343_s3 + $0x230] sm:$0xff] }
 0x514   : > { %15941 = vmatmul.mubr.msk.f32.gmra.mrb[16].mxu1 %vm4595_vm2, %v19354_v23  ;;  %v13362_v23 = vld [vmem:[%s21343_s3 + $0x238] sm:$0xff] }
 0x515   : > { %15943 = vmatprep.mubr.msk.f32.mxu1 %vm4595_vm2, %v19359_v43  ;;  %v7221_v43 = vld [vmem:[#allocation3 + $0x90] sm:$0xff] }
 0x518   : > { %15944 = vmatmul.mubr.msk.f32.gmra.mrb[18].mxu1 %vm4595_vm2, %v19364_v45  ;;  %v16881_v45 = vpack.c.bf16 %v13362_v23, %v13361_v38 }
 0x519   : > { %15946 = vmatprep.mubr.msk.f32.mxu1 %vm4595_vm2, %v19541_v29 }
 0x51c   : > { %15947 = vmatmul.mubr.msk.f32.gmra.mrb[20].mxu1 %vm4595_vm2, %v19545_v30 }
 0x51d   : > { %15949 = vmatprep.mubr.msk.f32.mxu1 %vm4595_vm2, %v19633_v52 }
 0x520   : > { %15950 = vmatmul.mubr.msk.f32.gmra.mrb[22].mxu1 %vm4595_vm2, %v19637_v53 }
 0x521   : > { %15952 = vmatprep.mubr.msk.f32.mxu1 %vm4595_vm2, %v19725_v10 }
 0x524   : > { %15953 = vmatmul.mubr.msk.f32.gmra.mrb[24].mxu1 %vm4595_vm2, %v19729_v13 }
 0x525   : > { %15955 = vmatprep.mubr.msk.f32.mxu1 %vm4595_vm2, %v19815_v36 }
 0x528   : > { %15956 = vmatmul.mubr.msk.f32.gmra.mrb[26].mxu1 %vm4595_vm2, %v19821_v37 }
 0x529   : > { %15958 = vmatprep.mubr.msk.f32.mxu1 %vm4595_vm2, %v19907_v31 }
 0x52c   : > { %15959 = vmatmul.mubr.msk.f32.gmra.mrb[28].mxu1 %vm4595_vm2, %v19913_v32 }
 0x52d   : > { %15977 = vmatprep.mubr.msk.f32.mxu1 %vm4595_vm2, %v7217_v47 }
 0x530   : > { %15978 = vmatmul.mubr.msk.f32.vlgmr.msra.gmra.mrb[30].mxu1 %vm4595_vm2, %v7218_v8 }
 0x531   : > { %16872 = vmatpush3.bf16.msra.mxu1 %v16869_v24  ;;  %15980 = vmatprep.mubr.msk.f32.mxu1 %vm4595_vm2, %v19935_v25 }
 0x532   : > { %16874 = vmatprep.subr.bf16.mxu1 %v16873_v58 }
 0x534   : > { %15981 = vmatmul.mubr.msk.f32.gmra.mrb[0].mxu1 %vm4595_vm2, %v19939_v35 }
 0x535   : > { %15983 = vmatprep.mubr.msk.f32.mxu1 %vm4595_vm2, %v7221_v43  ;;  %16876 = vmatpush3.bf16.msra.mxu1 %v16873_v58 }
 0x536   : > { %16878 = vmatprep.subr.bf16.mxu1 %v16877_v34 }
 0x538   : > { %15984 = vmatmul.mubr.msk.f32.gmra.mrb[2].mxu1 %vm4595_vm2, %v7222_v51 }
 0x539   : > { %15986 = vmatprep.mubr.msk.f32.mxu1 %vm4595_vm2, %v7223_v60  ;;  %16880 = vmatpush3.bf16.msra.mxu1 %v16877_v34 }
 0x53a   : > { %16882 = vmatprep.subr.bf16.mxu1 %v16881_v45 }
 0x53c   : > { %15987 = vmatmul.mubr.msk.f32.gmra.mrb[4].mxu1 %vm4595_vm2, %v7224_v0 }
 0x53d   : > { %15989 = vmatprep.mubr.msk.f32.mxu1 %vm4595_vm2, %v7225_v20  ;;  %16884 = vmatpush3.bf16.msra.mxu1 %v16881_v45 }
 0x53e   : > { %16886 = vmatprep.subr.bf16.mxu1 %v16885_v61 }
 0x540   : > { %15990 = vmatmul.mubr.msk.f32.gmra.mrb[6].mxu1 %vm4595_vm2, %v7226_v54 }
 0x541   : > { %15992 = vmatprep.mubr.msk.f32.mxu1 %vm4595_vm2, %v7227_v21 }
 0x544   : > { %15993 = vmatmul.mubr.msk.f32.gmra.mrb[8].mxu1 %vm4595_vm2, %v7228_v55 }
 0x545   : > { %15995 = vmatprep.mubr.msk.f32.mxu1 %vm4595_vm2, %v7229_v6 }
 0x548   : > { %15996 = vmatmul.mubr.msk.f32.gmra.mrb[10].mxu1 %vm4595_vm2, %v7230_v22 }
 0x549   : > { %15998 = vmatprep.mubr.msk.f32.mxu1 %vm4595_vm2, %v7231_v7 }
 0x54c   : > { %15999 = vmatmul.mubr.msk.f32.gmra.mrb[12].mxu1 %vm4595_vm2, %v7232_v14 }
 0x54d   : > { %16001 = vmatprep.mubr.msk.f32.mxu1 %vm4595_vm2, %v7233_v15 }
 0x550   : > { %16002 = vmatmul.mubr.msk.f32.gmra.mrb[14].mxu1 %vm4595_vm2, %v7234_v16 }
 0x551   : > { %16004 = vmatprep.mubr.msk.f32.mxu1 %vm4595_vm2, %v7235_v2 }
 0x554   : > { %16005 = vmatmul.mubr.msk.f32.gmra.mrb[16].mxu1 %vm4595_vm2, %v7236_v17 }
 0x555   : > { %16007 = vmatprep.mubr.msk.f32.mxu1 %vm4595_vm2, %v19541_v29 }
 0x558   : > { %16008 = vmatmul.mubr.msk.f32.gmra.mrb[18].mxu1 %vm4595_vm2, %v19545_v30 }
 0x559   : > { %16010 = vmatprep.mubr.msk.f32.mxu1 %vm4595_vm2, %v19633_v52 }
 0x55c   : > { %16011 = vmatmul.mubr.msk.f32.gmra.mrb[20].mxu1 %vm4595_vm2, %v19637_v53 }
 0x55d   : > { %16013 = vmatprep.mubr.msk.f32.mxu1 %vm4595_vm2, %v19725_v10 }
 0x560   : > { %16014 = vmatmul.mubr.msk.f32.gmra.mrb[22].mxu1 %vm4595_vm2, %v19729_v13 }
 0x561   : > { %16016 = vmatprep.mubr.msk.f32.mxu1 %vm4595_vm2, %v19815_v36 }
 0x564   : > { %16017 = vmatmul.mubr.msk.f32.gmra.mrb[24].mxu1 %vm4595_vm2, %v19821_v37 }
 0x565   : > { %16019 = vmatprep.mubr.msk.f32.mxu1 %vm4595_vm2, %v19907_v31 }
 0x568   : > { %16020 = vmatmul.mubr.msk.f32.gmra.mrb[26].mxu1 %vm4595_vm2, %v19913_v32 }
 0x569   : > { %16022 = vmatprep.mubr.msk.f32.mxu1 %vm4595_vm2, %v7247_v3 }
 0x56c   : > { %16023 = vmatmul.mubr.msk.f32.gmra.mrb[28].mxu1 %vm4595_vm2, %v7248_v62 }
 0x56d   : > { %16041 = vmatprep.mubr.msk.f32.mxu1 %vm4595_vm2, %v19935_v25 }
 0x570   : > { %16042 = vmatmul.mubr.msk.f32.vlgmr.msra.gmra.mrb[30].mxu1 %vm4595_vm2, %v19939_v35 }
 0x571   : > { %16044 = vmatprep.mubr.msk.f32.mxu1 %vm4595_vm2, %v7221_v43  ;;  %16888 = vmatpush3.bf16.msra.mxu1 %v16885_v61 }
 0x572   : > { %16890 = vmatprep.subr.bf16.mxu1 %v16889_v27 }
 0x574   : > { %16045 = vmatmul.mubr.msk.f32.gmra.mrb[0].mxu1 %vm4595_vm2, %v7222_v51 }
 0x575   : > { %16047 = vmatprep.mubr.msk.f32.mxu1 %vm4595_vm2, %v7223_v60  ;;  %16892 = vmatpush3.bf16.msra.mxu1 %v16889_v27 }
 0x578   : > { %16048 = vmatmul.mubr.msk.f32.gmra.mrb[2].mxu1 %vm4595_vm2, %v7224_v0 }
 0x579   : > { %16050 = vmatprep.mubr.msk.f32.mxu1 %vm4595_vm2, %v7225_v20 }
 0x57c   : > { %16051 = vmatmul.mubr.msk.f32.gmra.mrb[4].mxu1 %vm4595_vm2, %v7226_v54 }
 0x57d   : > { %16053 = vmatprep.mubr.msk.f32.mxu1 %vm4595_vm2, %v7227_v21 }
 0x580   : > { %16054 = vmatmul.mubr.msk.f32.gmra.mrb[6].mxu1 %vm4595_vm2, %v7228_v55 }
 0x581   : > { %16056 = vmatprep.mubr.msk.f32.mxu1 %vm4595_vm2, %v7229_v6 }
 0x584   : > { %16057 = vmatmul.mubr.msk.f32.gmra.mrb[8].mxu1 %vm4595_vm2, %v7230_v22 }
 0x585   : > { %16059 = vmatprep.mubr.msk.f32.mxu1 %vm4595_vm2, %v7231_v7 }
 0x588   : > { %16060 = vmatmul.mubr.msk.f32.gmra.mrb[10].mxu1 %vm4595_vm2, %v7232_v14 }
 0x589   : > { %16062 = vmatprep.mubr.msk.f32.mxu1 %vm4595_vm2, %v7233_v15 }
 0x58c   : > { %16063 = vmatmul.mubr.msk.f32.gmra.mrb[12].mxu1 %vm4595_vm2, %v7234_v16 }
 0x58d   : > { %16065 = vmatprep.mubr.msk.f32.mxu1 %vm4595_vm2, %v7235_v2 }
 0x590   : > { %16066 = vmatmul.mubr.msk.f32.gmra.mrb[14].mxu1 %vm4595_vm2, %v7236_v17 }
 0x591   : > { %16068 = vmatprep.mubr.msk.f32.mxu1 %vm4595_vm2, %v19541_v29  ;;  %v7641_v29 = vld [vmem:[#allocation3 + $0x170] sm:$0xff] }
 0x594   : > { %16069 = vmatmul.mubr.msk.f32.gmra.mrb[16].mxu1 %vm4595_vm2, %v19545_v30  ;;  %v7642_v30 = vld [vmem:[#allocation3 + $0x178] sm:$0xff] }
 0x595   : > { %16071 = vmatprep.mubr.msk.f32.mxu1 %vm4595_vm2, %v19633_v52  ;;  %v20067_v52 = vld [vmem:[#allocation4 + $0x10] sm:$0xff] }
 0x598   : > { %16072 = vmatmul.mubr.msk.f32.gmra.mrb[18].mxu1 %vm4595_vm2, %v19637_v53  ;;  %v20071_v53 = vld [vmem:[#allocation4 + $0x18] sm:$0xff] }
 0x599   : > { %16074 = vmatprep.mubr.msk.f32.mxu1 %vm4595_vm2, %v19725_v10  ;;  %v20075_v10 = vld [vmem:[#allocation4 + $0x20] sm:$0xff] }
 0x59c   : > { %16075 = vmatmul.mubr.msk.f32.gmra.mrb[20].mxu1 %vm4595_vm2, %v19729_v13  ;;  %v20079_v13 = vld [vmem:[#allocation4 + $0x28] sm:$0xff] }
 0x59d   : > { %16077 = vmatprep.mubr.msk.f32.mxu1 %vm4595_vm2, %v19815_v36  ;;  %v16893_v36 = vpack.c.bf16 %v8154_v33, %v8153_v28 }
 0x59f   : > { %16894 = vmatprep.subr.bf16.mxu1 %v16893_v36 }
 0x5a0   : > { %16078 = vmatmul.mubr.msk.f32.gmra.mrb[22].mxu1 %vm4595_vm2, %v19821_v37  ;;  %v8155_v37 = vld [vmem:[%s21345_s5 + $0x10] sm:$0xff] }
 0x5a1   : > { %16080 = vmatprep.mubr.msk.f32.mxu1 %vm4595_vm2, %v19907_v31  ;;  %v16897_v42 = vpack.c.bf16 %v8156_v41, %v8155_v37 }
 0x5a4   : > { %16081 = vmatmul.mubr.msk.f32.gmra.mrb[24].mxu1 %vm4595_vm2, %v19913_v32 }
 0x5a5   : > { %16083 = vmatprep.mubr.msk.f32.mxu1 %vm4595_vm2, %v7247_v3 }
 0x5a8   : > { %16084 = vmatmul.mubr.msk.f32.gmra.mrb[26].mxu1 %vm4595_vm2, %v7248_v62 }
 0x5a9   : > { %16086 = vmatprep.mubr.msk.f32.mxu1 %vm4595_vm2, %v7641_v29 }
 0x5ac   : > { %16087 = vmatmul.mubr.msk.f32.gmra.mrb[28].mxu1 %vm4595_vm2, %v7642_v30 }
 0x5ad   : > { %16097 = vmatprep.mubr.msk.f32.mxu1 %vm8076_vm3, %v20067_v52 }
 0x5b0   : > { %16098 = vmatmul.mubr.msk.f32.vlgmr.msra.gmra.mrb[32].mxu1 %vm8076_vm3, %v20071_v53 }
 0x5b1   : > { %16100 = vmatprep.mubr.msk.f32.mxu1 %vm8076_vm3, %v20075_v10  ;;  %16896 = vmatpush3.bf16.msra.mxu1 %v16893_v36 }
 0x5b2   : > { %16898 = vmatprep.subr.bf16.mxu1 %v16897_v42 }
 0x5b4   : > { %16101 = vmatmul.mubr.msk.f32.gmra.mrb[34].mxu1 %vm8076_vm3, %v20079_v13 }
 0x5b5   : > { %16900 = vmatpush3.bf16.msra.mxu1 %v16897_v42 }
 0x5b6   : > { %16902 = vmatprep.subr.bf16.mxu1 %v20101_v46 }
 0x643   : > { %v16043_v5 = vpop.f32.mrb[30].mxu1 }
 0x644   : > { %v16969_v49 = vadd.f32 %v16043_v5, %v19923_v48  ;;  %v7814_v12 = vpop.f32.mrb[31].mxu1 }
 0x645   : > { %v16970_v19 = vadd.f32 %v7814_v12, %v19926_v57 }
 0x646   : > { %v8013_v50 = vadd.f32 %v16969_v49, %v20107_v11 }
 0x647   : > { %v8012_v24 = vadd.f32 %v16970_v19, %v20107_v11  ;;  %v16046_v31 = vpop.f32.mrb[0].mxu1 }
 0x648   : > { %17938 = vtanh.f32 %v8013_v50  ;;  %v8015_v32 = vadd.f32 %v16046_v31, %v20107_v11  ;;  %v7824_v39 = vpop.f32.mrb[1].mxu1 }
 0x649   : > { %17940 = vtanh.f32 %v8012_v24  ;;  %v8014_v40 = vadd.f32 %v20107_v11, %v7824_v39 }
 0x64a   : > { %17942 = vtanh.f32 %v8015_v32 }
 0x64b   : > { %17944 = vtanh.f32 %v8014_v40  ;;  %v16049_v47 = vpop.f32.mrb[2].mxu1 }
 0x64c   : > { %v8017_v48 = vadd.f32 %v16049_v47, %v20107_v11  ;;  %v7834_v58 = vpop.f32.mrb[3].mxu1 }
 0x64d   : > { %v8016_v57 = vadd.f32 %v20107_v11, %v7834_v58 }
 0x64e   : > { %17946 = vtanh.f32 %v8017_v48 }
 0x64f   : > { %17948 = vtanh.f32 %v8016_v57  ;;  %v16052_v8 = vpop.f32.mrb[4].mxu1 }
 0x650   : > { %v8019_v9 = vadd.f32 %v16052_v8, %v20107_v11  ;;  %v7844_v18 = vpop.f32.mrb[5].mxu1 }
 0x651   : > { %v8018_v25 = vadd.f32 %v20107_v11, %v7844_v18 }
 0x652   : > { %v17939_v34 = vpop.eup %17938  ;;  %17950 = vtanh.f32 %v8019_v9 }
 0x653   : > { %v17941_v35 = vpop.eup %17940  ;;  %8090 = vst.msk [vmem:[#allocation4 + $0x38] sm:$0xff] %vm8076_vm3, %v17939_v34  ;;  %17952 = vtanh.f32 %v8018_v25  ;;  %v16055_v38 = vpop.f32.mrb[6].mxu1 }
 0x654   : > { %v17943_v23 = vpop.eup %17942  ;;  %8089 = vst.msk [vmem:[#allocation4 + $0x30] sm:$0xff] %vm8076_vm3, %v17941_v35  ;;  %v8021_v43 = vadd.f32 %v16055_v38, %v20107_v11  ;;  %v7854_v45 = vpop.f32.mrb[7].mxu1 }
 0x655   : > { %v17945_v51 = vpop.eup %17944  ;;  %8092 = vst.msk [vmem:[#allocation4 + $0x48] sm:$0xff] %vm8076_vm3, %v17943_v23  ;;  %v8020_v56 = vadd.f32 %v20107_v11, %v7854_v45 }
 0x656   : > { %8091 = vst.msk [vmem:[#allocation4 + $0x40] sm:$0xff] %vm8076_vm3, %v17945_v51  ;;  %17954 = vtanh.f32 %v8021_v43 }
 0x657   : > { %17956 = vtanh.f32 %v8020_v56  ;;  %v16058_v59 = vpop.f32.mrb[8].mxu1 }
 0x658   : > { %v17947_v60 = vpop.eup %17946  ;;  %v8023_v61 = vadd.f32 %v16058_v59, %v20107_v11  ;;  %v7864_v0 = vpop.f32.mrb[9].mxu1 }
 0x659   : > { %v17949_v20 = vpop.eup %17948  ;;  %8094 = vst.msk [vmem:[#allocation4 + $0x58] sm:$0xff] %vm8076_vm3, %v17947_v60  ;;  %v8022_v54 = vadd.f32 %v20107_v11, %v7864_v0 }
 0x65a   : > { %8093 = vst.msk [vmem:[#allocation4 + $0x50] sm:$0xff] %vm8076_vm3, %v17949_v20  ;;  %17958 = vtanh.f32 %v8023_v61  ;;  %v20134_v14 = vld [vmem:[#allocation4 + $0x38] sm:$0xff] }
 0x65b   : > { %17960 = vtanh.f32 %v8022_v54  ;;  %v16061_v21 = vpop.f32.mrb[10].mxu1  ;;  %v20129_v55 = vld [vmem:[#allocation4 + $0x30] sm:$0xff] }
 0x65c   : > { %v17951_v6 = vpop.eup %17950  ;;  %v8025_v22 = vadd.f32 %v16061_v21, %v20107_v11  ;;  %v7874_v7 = vpop.f32.mrb[11].mxu1  ;;  %16103 = vmatprep.mubr.msk.f32.mxu1 %vm8076_vm3, %v20129_v55  ;;  %v20146_v63 = vld [vmem:[#allocation4 + $0x48] sm:$0xff] }
 0x65d   : > { %v17953_v15 = vpop.eup %17952  ;;  %8096 = vst.msk [vmem:[#allocation4 + $0x68] sm:$0xff] %vm8076_vm3, %v17951_v6  ;;  %v8024_v16 = vadd.f32 %v20107_v11, %v7874_v7  ;;  %16104 = vmatmul.mubr.msk.f32.gmra.mrb[36].mxu1 %vm8076_vm3, %v20134_v14  ;;  %v20140_v2 = vld [vmem:[#allocation4 + $0x40] sm:$0xff] }
 0x65e   : > { %8095 = vst.msk [vmem:[#allocation4 + $0x60] sm:$0xff] %vm8076_vm3, %v17953_v15  ;;  %17962 = vtanh.f32 %v8025_v22  ;;  %16106 = vmatprep.mubr.msk.f32.mxu1 %vm8076_vm3, %v20140_v2 }
 0x65f   : > { %17964 = vtanh.f32 %v8024_v16  ;;  %v16064_v17 = vpop.f32.mrb[12].mxu1 }
 0x660   : > { %v17955_v3 = vpop.eup %17954  ;;  %v8027_v62 = vadd.f32 %v16064_v17, %v20107_v11  ;;  %v7884_v26 = vpop.f32.mrb[13].mxu1  ;;  %v20158_v41 = vld [vmem:[#allocation4 + $0x58] sm:$0xff] }
 0x661   : > { %v17957_v27 = vpop.eup %17956  ;;  %8098 = vst.msk [vmem:[#allocation4 + $0x78] sm:$0xff] %vm8076_vm3, %v17955_v3  ;;  %v8026_v29 = vadd.f32 %v20107_v11, %v7884_v26  ;;  %16107 = vmatmul.mubr.msk.f32.gmra.mrb[38].mxu1 %vm8076_vm3, %v20146_v63  ;;  %v20152_v30 = vld [vmem:[#allocation4 + $0x50] sm:$0xff] }
 0x662   : > { %8097 = vst.msk [vmem:[#allocation4 + $0x70] sm:$0xff] %vm8076_vm3, %v17957_v27  ;;  %17966 = vtanh.f32 %v8027_v62  ;;  %16109 = vmatprep.mubr.msk.f32.mxu1 %vm8076_vm3, %v20152_v30 }
 0x663   : > { %17968 = vtanh.f32 %v8026_v29  ;;  %v16067_v28 = vpop.f32.mrb[14].mxu1 }
 0x664   : > { %v17959_v33 = vpop.eup %17958  ;;  %v8029_v36 = vadd.f32 %v16067_v28, %v20107_v11  ;;  %v7894_v37 = vpop.f32.mrb[15].mxu1  ;;  %v20170_v50 = vld [vmem:[#allocation4 + $0x68] sm:$0xff] }
 0x665   : > { %v17961_v42 = vpop.eup %17960  ;;  %8100 = vst.msk [vmem:[#allocation4 + $0x88] sm:$0xff] %vm8076_vm3, %v17959_v33  ;;  %v8028_v44 = vadd.f32 %v20107_v11, %v7894_v37  ;;  %16110 = vmatmul.mubr.msk.f32.gmra.mrb[40].mxu1 %vm8076_vm3, %v20158_v41  ;;  %v20164_v4 = vld [vmem:[#allocation4 + $0x60] sm:$0xff] }
 0x666   : > { %8099 = vst.msk [vmem:[#allocation4 + $0x80] sm:$0xff] %vm8076_vm3, %v17961_v42  ;;  %17970 = vtanh.f32 %v8029_v36  ;;  %16112 = vmatprep.mubr.msk.f32.mxu1 %vm8076_vm3, %v20164_v4 }
 0x667   : > { %17972 = vtanh.f32 %v8028_v44  ;;  %v16070_v5 = vpop.f32.mrb[16].mxu1 }
 0x668   : > { %v17963_v49 = vpop.eup %17962  ;;  %v8031_v12 = vadd.f32 %v16070_v5, %v20107_v11  ;;  %v7904_v19 = vpop.f32.mrb[17].mxu1  ;;  %v20182_v58 = vld [vmem:[#allocation4 + $0x78] sm:$0xff] }
 0x669   : > { %v17965_v24 = vpop.eup %17964  ;;  %8102 = vst.msk [vmem:[#allocation4 + $0x98] sm:$0xff] %vm8076_vm3, %v17963_v49  ;;  %v8030_v31 = vadd.f32 %v20107_v11, %v7904_v19  ;;  %16113 = vmatmul.mubr.msk.f32.gmra.mrb[42].mxu1 %vm8076_vm3, %v20170_v50  ;;  %v20176_v32 = vld [vmem:[#allocation4 + $0x70] sm:$0xff] }
 0x66a   : > { %8101 = vst.msk [vmem:[#allocation4 + $0x90] sm:$0xff] %vm8076_vm3, %v17965_v24  ;;  %17974 = vtanh.f32 %v8031_v12  ;;  %16115 = vmatprep.mubr.msk.f32.mxu1 %vm8076_vm3, %v20176_v32 }
 0x66b   : > { %17976 = vtanh.f32 %v8030_v31  ;;  %v16073_v39 = vpop.f32.mrb[18].mxu1 }
 0x66c   : > { %v17967_v40 = vpop.eup %17966  ;;  %v8033_v47 = vadd.f32 %v16073_v39, %v20107_v11  ;;  %v7914_v48 = vpop.f32.mrb[19].mxu1  ;;  %v20194_v38 = vld [vmem:[#allocation4 + $0x88] sm:$0xff] }
 0x66d   : > { %v17969_v57 = vpop.eup %17968  ;;  %8104 = vst.msk [vmem:[#allocation4 + $0xa8] sm:$0xff] %vm8076_vm3, %v17967_v40  ;;  %v8032_v8 = vadd.f32 %v20107_v11, %v7914_v48  ;;  %16116 = vmatmul.mubr.msk.f32.gmra.mrb[44].mxu1 %vm8076_vm3, %v20182_v58  ;;  %v20188_v9 = vld [vmem:[#allocation4 + $0x80] sm:$0xff] }
 0x66e   : > { %8103 = vst.msk [vmem:[#allocation4 + $0xa0] sm:$0xff] %vm8076_vm3, %v17969_v57  ;;  %17978 = vtanh.f32 %v8033_v47  ;;  %16118 = vmatprep.mubr.msk.f32.mxu1 %vm8076_vm3, %v20188_v9 }
 0x66f   : > { %17980 = vtanh.f32 %v8032_v8  ;;  %v16076_v18 = vpop.f32.mrb[20].mxu1 }
 0x670   : > { %v17971_v25 = vpop.eup %17970  ;;  %v8035_v34 = vadd.f32 %v16076_v18, %v20107_v11  ;;  %v7924_v35 = vpop.f32.mrb[21].mxu1  ;;  %v20206_v61 = vld [vmem:[#allocation4 + $0x98] sm:$0xff] }
 0x671   : > { %v17973_v23 = vpop.eup %17972  ;;  %8106 = vst.msk [vmem:[#allocation4 + $0xb8] sm:$0xff] %vm8076_vm3, %v17971_v25  ;;  %v8034_v43 = vadd.f32 %v20107_v11, %v7924_v35  ;;  %16119 = vmatmul.mubr.msk.f32.gmra.mrb[46].mxu1 %vm8076_vm3, %v20194_v38  ;;  %v20200_v45 = vld [vmem:[#allocation4 + $0x90] sm:$0xff] }
 0x672   : > { %8105 = vst.msk [vmem:[#allocation4 + $0xb0] sm:$0xff] %vm8076_vm3, %v17973_v23  ;;  %17982 = vtanh.f32 %v8035_v34  ;;  %16121 = vmatprep.mubr.msk.f32.mxu1 %vm8076_vm3, %v20200_v45 }
 0x673   : > { %17984 = vtanh.f32 %v8034_v43  ;;  %v16079_v51 = vpop.f32.mrb[22].mxu1  ;;  %v8121_v43 = vld [vmem:[#allocation4] sm:$0xff] }
 0x674   : > { %v17975_v56 = vpop.eup %17974  ;;  %v8037_v59 = vadd.f32 %v16079_v51, %v20107_v11  ;;  %v7934_v60 = vpop.f32.mrb[23].mxu1  ;;  %v20218_v15 = vld [vmem:[#allocation4 + $0xa8] sm:$0xff] }
 0x675   : > { %v17977_v0 = vpop.eup %17976  ;;  %8108 = vst.msk [vmem:[#allocation4 + $0xc8] sm:$0xff] %vm8076_vm3, %v17975_v56  ;;  %v8036_v20 = vadd.f32 %v20107_v11, %v7934_v60  ;;  %16122 = vmatmul.mubr.msk.f32.gmra.mrb[48].mxu1 %vm8076_vm3, %v20206_v61  ;;  %v20212_v54 = vld [vmem:[#allocation4 + $0xa0] sm:$0xff]  ;;  %v13466_v56 = vld [vmem:[%s21345_s5 + $0x50] sm:$0xff]  ;;  %v8122_v60 = vld [vmem:[#allocation4 + $0x8] sm:$0xff] }
 0x676   : > { %8107 = vst.msk [vmem:[#allocation4 + $0xc0] sm:$0xff] %vm8076_vm3, %v17977_v0  ;;  %17986 = vtanh.f32 %v8037_v59  ;;  %16124 = vmatprep.mubr.msk.f32.mxu1 %vm8076_vm3, %v20212_v54  ;;  %v13467_v59 = vld [vmem:[%s21345_s5 + $0x58] sm:$0xff] }
 0x677   : > { %17988 = vtanh.f32 %v8036_v20  ;;  %v16082_v21 = vpop.f32.mrb[24].mxu1  ;;  %v16905_v0 = vpack.c.bf16 %v13467_v59, %v13466_v56  ;;  %v13500_v20 = vld [vmem:[%s21345_s5 + $0x60] sm:$0xff] }
 0x678   : > { %v17979_v6 = vpop.eup %17978  ;;  %v8039_v22 = vadd.f32 %v16082_v21, %v20107_v11  ;;  %v7944_v7 = vpop.f32.mrb[25].mxu1  ;;  %v20230_v28 = vld [vmem:[#allocation4 + $0xb8] sm:$0xff]  ;;  %v13501_v21 = vld [vmem:[%s21345_s5 + $0x68] sm:$0xff] }
 0x679   : > { %v17981_v16 = vpop.eup %17980  ;;  %8110 = vst.msk [vmem:[#allocation4 + $0xd8] sm:$0xff] %vm8076_vm3, %v17979_v6  ;;  %v8038_v17 = vadd.f32 %v20107_v11, %v7944_v7  ;;  %16125 = vmatmul.mubr.msk.f32.gmra.mrb[50].mxu1 %vm8076_vm3, %v20218_v15  ;;  %v20224_v3 = vld [vmem:[#allocation4 + $0xb0] sm:$0xff]  ;;  %v16909_v6 = vpack.c.bf16 %v13501_v21, %v13500_v20  ;;  %v13537_v7 = vld [vmem:[%s21345_s5 + $0x88] sm:$0xff] }
 0x67a   : > { %8109 = vst.msk [vmem:[#allocation4 + $0xd0] sm:$0xff] %vm8076_vm3, %v17981_v16  ;;  %17990 = vtanh.f32 %v8039_v22  ;;  %16127 = vmatprep.mubr.msk.f32.mxu1 %vm8076_vm3, %v20224_v3  ;;  %v13536_v22 = vld [vmem:[%s21345_s5 + $0x80] sm:$0xff] }
 0x67b   : > { %17992 = vtanh.f32 %v8038_v17  ;;  %v16085_v62 = vpop.f32.mrb[26].mxu1  ;;  %v16917_v16 = vpack.c.bf16 %v13537_v7, %v13536_v22  ;;  %v13538_v17 = vld [vmem:[%s21345_s5 + $0x90] sm:$0xff] }
 0x67c   : > { %v17983_v26 = vpop.eup %17982  ;;  %v8041_v27 = vadd.f32 %v16085_v62, %v20107_v11  ;;  %v7954_v29 = vpop.f32.mrb[27].mxu1  ;;  %v20242_v12 = vld [vmem:[#allocation4 + $0xc8] sm:$0xff]  ;;  %v13539_v62 = vld [vmem:[%s21345_s5 + $0x98] sm:$0xff] }
 0x67d   : > { %v17985_v33 = vpop.eup %17984  ;;  %8112 = vst.msk [vmem:[#allocation4 + $0xe8] sm:$0xff] %vm8076_vm3, %v17983_v26  ;;  %v8040_v36 = vadd.f32 %v20107_v11, %v7954_v29  ;;  %16128 = vmatmul.mubr.msk.f32.gmra.mrb[52].mxu1 %vm8076_vm3, %v20230_v28  ;;  %v20236_v37 = vld [vmem:[#allocation4 + $0xc0] sm:$0xff]  ;;  %v16921_v26 = vpack.c.bf16 %v13539_v62, %v13538_v17  ;;  %v13573_v29 = vld [vmem:[%s21345_s5 + $0xa8] sm:$0xff] }
 0x67e   : > { %8111 = vst.msk [vmem:[#allocation4 + $0xe0] sm:$0xff] %vm8076_vm3, %v17985_v33  ;;  %17994 = vtanh.f32 %v8041_v27  ;;  %16130 = vmatprep.mubr.msk.f32.mxu1 %vm8076_vm3, %v20236_v37  ;;  %v13572_v27 = vld [vmem:[%s21345_s5 + $0xa0] sm:$0xff] }
 0x67f   : > { %17996 = vtanh.f32 %v8040_v36  ;;  %v16088_v42 = vpop.f32.mrb[28].mxu1  ;;  %v16925_v33 = vpack.c.bf16 %v13573_v29, %v13572_v27  ;;  %v13574_v36 = vld [vmem:[%s21345_s5 + $0xb0] sm:$0xff] }
 0x680   : > { %v17987_v44 = vpop.eup %17986  ;;  %v8043_v5 = vadd.f32 %v16088_v42, %v20107_v11  ;;  %v7964_v49 = vpop.f32.mrb[29].mxu1  ;;  %v20253_v40 = vld [vmem:[#allocation4 + $0xd8] sm:$0xff] }
 0x681   : > { %v17989_v19 = vpop.eup %17988  ;;  %8114 = vst.msk [vmem:[#allocation4 + $0xf8] sm:$0xff] %vm8076_vm3, %v17987_v44  ;;  %v8042_v24 = vadd.f32 %v20107_v11, %v7964_v49  ;;  %16131 = vmatmul.mubr.msk.f32.gmra.mrb[54].mxu1 %vm8076_vm3, %v20242_v12  ;;  %v20248_v31 = vld [vmem:[#allocation4 + $0xd0] sm:$0xff]  ;;  %v13575_v42 = vld [vmem:[%s21345_s5 + $0xb8] sm:$0xff]  ;;  %v13609_v49 = vld [vmem:[%s21345_s5 + $0xc8] sm:$0xff] }
 0x682   : > { %8113 = vst.msk [vmem:[#allocation4 + $0xf0] sm:$0xff] %vm8076_vm3, %v17989_v19  ;;  %17998 = vtanh.f32 %v8043_v5  ;;  %16133 = vmatprep.mubr.msk.f32.mxu1 %vm8076_vm3, %v20248_v31  ;;  %v16929_v44 = vpack.c.bf16 %v13575_v42, %v13574_v36  ;;  %v13608_v5 = vld [vmem:[%s21345_s5 + $0xc0] sm:$0xff] }
 0x683   : > { %18000 = vtanh.f32 %v8042_v24  ;;  %v16933_v19 = vpack.c.bf16 %v13609_v49, %v13608_v5  ;;  %v13610_v24 = vld [vmem:[%s21345_s5 + $0xd0] sm:$0xff] }
 0x684   : > { %v17991_v39 = vpop.eup %17990  ;;  %v20263_v57 = vld [vmem:[#allocation4 + $0xe8] sm:$0xff] }
 0x685   : > { %v17993_v47 = vpop.eup %17992  ;;  %8116 = vst.msk [vmem:[#allocation4 + $0x108] sm:$0xff] %vm8076_vm3, %v17991_v39  ;;  %16134 = vmatmul.mubr.msk.f32.gmra.mrb[56].mxu1 %vm8076_vm3, %v20253_v40  ;;  %v20258_v11 = vld [vmem:[#allocation4 + $0xe0] sm:$0xff]  ;;  %v13611_v39 = vld [vmem:[%s21345_s5 + $0xd8] sm:$0xff] }
 0x686   : > { %8115 = vst.msk [vmem:[#allocation4 + $0x100] sm:$0xff] %vm8076_vm3, %v17993_v47  ;;  %16136 = vmatprep.mubr.msk.f32.mxu1 %vm8076_vm3, %v20258_v11  ;;  %v16937_v47 = vpack.c.bf16 %v13611_v39, %v13610_v24 }
 0x688   : > { %v17995_v48 = vpop.eup %17994  ;;  %v20273_v34 = vld [vmem:[#allocation4 + $0xf8] sm:$0xff] }
 0x689   : > { %v17997_v8 = vpop.eup %17996  ;;  %8118 = vst.msk [vmem:[#allocation4 + $0x118] sm:$0xff] %vm8076_vm3, %v17995_v48  ;;  %16137 = vmatmul.mubr.msk.f32.gmra.mrb[58].mxu1 %vm8076_vm3, %v20263_v57  ;;  %v20268_v18 = vld [vmem:[#allocation4 + $0xf0] sm:$0xff] }
 0x68a   : > { %8117 = vst.msk [vmem:[#allocation4 + $0x110] sm:$0xff] %vm8076_vm3, %v17997_v8  ;;  %16139 = vmatprep.mubr.msk.f32.mxu1 %vm8076_vm3, %v20268_v18 }
 0x68c   : > { %v17999_v25 = vpop.eup %17998  ;;  %v20283_v51 = vld [vmem:[#allocation4 + $0x108] sm:$0xff] }
 0x68d   : > { %v18001_v35 = vpop.eup %18000  ;;  %8120 = vst.msk [vmem:[#allocation4 + $0x128] sm:$0xff] %vm8076_vm3, %v17999_v25  ;;  %16140 = vmatmul.mubr.msk.f32.gmra.mrb[60].mxu1 %vm8076_vm3, %v20273_v34  ;;  %v20278_v23 = vld [vmem:[#allocation4 + $0x100] sm:$0xff] }
 0x68e   : > { %8119 = vst.msk [vmem:[#allocation4 + $0x120] sm:$0xff] %vm8076_vm3, %v18001_v35  ;;  %16142 = vmatprep.mubr.msk.f32.mxu1 %vm8076_vm3, %v20278_v23 }
 0x691   : > { %16143 = vmatmul.mubr.msk.f32.gmra.mrb[62].mxu1 %vm8076_vm3, %v20283_v51 }
 0x692   : > { %16153 = vmatprep.mubr.msk.f32.mxu1 %vm8076_vm3, %v8121_v43 }
 0x695   : > { %16154 = vmatmul.mubr.msk.f32.vlgmr.msra.gmra.mrb[32].mxu1 %vm8076_vm3, %v8122_v60 }
 0x696   : > { %16904 = vmatpush3.bf16.msra.mxu1 %v20101_v46  ;;  %16156 = vmatprep.mubr.msk.f32.mxu1 %vm8076_vm3, %v20067_v52  ;;  %v13502_v52 = vld [vmem:[%s21345_s5 + $0x70] sm:$0xff] }
 0x697   : > { %16906 = vmatprep.subr.bf16.mxu1 %v16905_v0 }
 0x699   : > { %16157 = vmatmul.mubr.msk.f32.gmra.mrb[34].mxu1 %vm8076_vm3, %v20071_v53  ;;  %v13503_v53 = vld [vmem:[%s21345_s5 + $0x78] sm:$0xff] }
 0x69a   : > { %16159 = vmatprep.mubr.msk.f32.mxu1 %vm8076_vm3, %v20075_v10  ;;  %16908 = vmatpush3.bf16.msra.mxu1 %v16905_v0  ;;  %v16913_v46 = vpack.c.bf16 %v13503_v53, %v13502_v52 }
 0x69b   : > { %16910 = vmatprep.subr.bf16.mxu1 %v16909_v6 }
 0x69d   : > { %16160 = vmatmul.mubr.msk.f32.gmra.mrb[36].mxu1 %vm8076_vm3, %v20079_v13 }
 0x69e   : > { %16162 = vmatprep.mubr.msk.f32.mxu1 %vm8076_vm3, %v20129_v55 }
 0x6a1   : > { %16163 = vmatmul.mubr.msk.f32.gmra.mrb[38].mxu1 %vm8076_vm3, %v20134_v14 }
 0x6a2   : > { %16165 = vmatprep.mubr.msk.f32.mxu1 %vm8076_vm3, %v20140_v2 }
 0x6a5   : > { %16166 = vmatmul.mubr.msk.f32.gmra.mrb[40].mxu1 %vm8076_vm3, %v20146_v63 }
 0x6a6   : > { %16168 = vmatprep.mubr.msk.f32.mxu1 %vm8076_vm3, %v20152_v30 }
 0x6a9   : > { %16169 = vmatmul.mubr.msk.f32.gmra.mrb[42].mxu1 %vm8076_vm3, %v20158_v41 }
 0x6aa   : > { %16171 = vmatprep.mubr.msk.f32.mxu1 %vm8076_vm3, %v20164_v4 }
 0x6ad   : > { %16172 = vmatmul.mubr.msk.f32.gmra.mrb[44].mxu1 %vm8076_vm3, %v20170_v50 }
 0x6ae   : > { %16174 = vmatprep.mubr.msk.f32.mxu1 %vm8076_vm3, %v20176_v32 }
 0x6b1   : > { %16175 = vmatmul.mubr.msk.f32.gmra.mrb[46].mxu1 %vm8076_vm3, %v20182_v58 }
 0x6b2   : > { %16177 = vmatprep.mubr.msk.f32.mxu1 %vm8076_vm3, %v20188_v9 }
 0x6b5   : > { %16178 = vmatmul.mubr.msk.f32.gmra.mrb[48].mxu1 %vm8076_vm3, %v20194_v38 }
 0x6b6   : > { %16180 = vmatprep.mubr.msk.f32.mxu1 %vm8076_vm3, %v20200_v45 }
 0x6b9   : > { %16181 = vmatmul.mubr.msk.f32.gmra.mrb[50].mxu1 %vm8076_vm3, %v20206_v61 }
 0x6ba   : > { %16183 = vmatprep.mubr.msk.f32.mxu1 %vm8076_vm3, %v20212_v54 }
 0x6bd   : > { %16184 = vmatmul.mubr.msk.f32.gmra.mrb[52].mxu1 %vm8076_vm3, %v20218_v15 }
 0x6be   : > { %16186 = vmatprep.mubr.msk.f32.mxu1 %vm8076_vm3, %v20224_v3 }
 0x6c1   : > { %16187 = vmatmul.mubr.msk.f32.gmra.mrb[54].mxu1 %vm8076_vm3, %v20230_v28 }
 0x6c2   : > { %16189 = vmatprep.mubr.msk.f32.mxu1 %vm8076_vm3, %v20236_v37 }
 0x6c5   : > { %16190 = vmatmul.mubr.msk.f32.gmra.mrb[56].mxu1 %vm8076_vm3, %v20242_v12 }
 0x6c6   : > { %16192 = vmatprep.mubr.msk.f32.mxu1 %vm8076_vm3, %v20248_v31 }
 0x6c9   : > { %16193 = vmatmul.mubr.msk.f32.gmra.mrb[58].mxu1 %vm8076_vm3, %v20253_v40 }
 0x6ca   : > { %16195 = vmatprep.mubr.msk.f32.mxu1 %vm8076_vm3, %v20258_v11 }
 0x6cd   : > { %16196 = vmatmul.mubr.msk.f32.gmra.mrb[60].mxu1 %vm8076_vm3, %v20263_v57 }
 0x6ce   : > { %16198 = vmatprep.mubr.msk.f32.mxu1 %vm8076_vm3, %v20268_v18 }
 0x6d1   : > { %16199 = vmatmul.mubr.msk.f32.gmra.mrb[62].mxu1 %vm8076_vm3, %v20273_v34 }
 0x6d2   : > { %16209 = vmatprep.mubr.msk.f32.mxu1 %vm8076_vm3, %v20075_v10  ;;  %v20434_v10 = vld [vmem:[#allocation4 + $0x110] sm:$0xff] }
 0x6d5   : > { %16210 = vmatmul.mubr.msk.f32.vlgmr.msra.gmra.mrb[32].mxu1 %vm8076_vm3, %v20079_v13  ;;  %v20438_v13 = vld [vmem:[#allocation4 + $0x118] sm:$0xff] }
 0x6d6   : > { %16912 = vmatpush3.bf16.msra.mxu1 %v16909_v6  ;;  %16212 = vmatprep.mubr.msk.f32.mxu1 %vm8076_vm3, %v20129_v55 }
 0x6d7   : > { %16914 = vmatprep.subr.bf16.mxu1 %v16913_v46 }
 0x6d9   : > { %16213 = vmatmul.mubr.msk.f32.gmra.mrb[34].mxu1 %vm8076_vm3, %v20134_v14 }
 0x6da   : > { %16215 = vmatprep.mubr.msk.f32.mxu1 %vm8076_vm3, %v20140_v2  ;;  %16916 = vmatpush3.bf16.msra.mxu1 %v16913_v46 }
 0x6db   : > { %16918 = vmatprep.subr.bf16.mxu1 %v16917_v16 }
 0x6dd   : > { %16216 = vmatmul.mubr.msk.f32.gmra.mrb[36].mxu1 %vm8076_vm3, %v20146_v63 }
 0x6de   : > { %16218 = vmatprep.mubr.msk.f32.mxu1 %vm8076_vm3, %v20152_v30 }
 0x6e1   : > { %16219 = vmatmul.mubr.msk.f32.gmra.mrb[38].mxu1 %vm8076_vm3, %v20158_v41 }
 0x6e2   : > { %16221 = vmatprep.mubr.msk.f32.mxu1 %vm8076_vm3, %v20164_v4 }
 0x6e5   : > { %16222 = vmatmul.mubr.msk.f32.gmra.mrb[40].mxu1 %vm8076_vm3, %v20170_v50 }
 0x6e6   : > { %16224 = vmatprep.mubr.msk.f32.mxu1 %vm8076_vm3, %v20176_v32 }
 0x6e9   : > { %16225 = vmatmul.mubr.msk.f32.gmra.mrb[42].mxu1 %vm8076_vm3, %v20182_v58 }
 0x6ea   : > { %16227 = vmatprep.mubr.msk.f32.mxu1 %vm8076_vm3, %v20188_v9 }
 0x6ed   : > { %16228 = vmatmul.mubr.msk.f32.gmra.mrb[44].mxu1 %vm8076_vm3, %v20194_v38 }
 0x6ee   : > { %16230 = vmatprep.mubr.msk.f32.mxu1 %vm8076_vm3, %v20200_v45 }
 0x6f1   : > { %16231 = vmatmul.mubr.msk.f32.gmra.mrb[46].mxu1 %vm8076_vm3, %v20206_v61 }
 0x6f2   : > { %16233 = vmatprep.mubr.msk.f32.mxu1 %vm8076_vm3, %v20212_v54 }
 0x6f5   : > { %16234 = vmatmul.mubr.msk.f32.gmra.mrb[48].mxu1 %vm8076_vm3, %v20218_v15 }
 0x6f6   : > { %16236 = vmatprep.mubr.msk.f32.mxu1 %vm8076_vm3, %v20224_v3 }
 0x6f9   : > { %16237 = vmatmul.mubr.msk.f32.gmra.mrb[50].mxu1 %vm8076_vm3, %v20230_v28 }
 0x6fa   : > { %16239 = vmatprep.mubr.msk.f32.mxu1 %vm8076_vm3, %v20236_v37 }
 0x6fd   : > { %16240 = vmatmul.mubr.msk.f32.gmra.mrb[52].mxu1 %vm8076_vm3, %v20242_v12 }
 0x6fe   : > { %16242 = vmatprep.mubr.msk.f32.mxu1 %vm8076_vm3, %v20248_v31 }
 0x701   : > { %16243 = vmatmul.mubr.msk.f32.gmra.mrb[54].mxu1 %vm8076_vm3, %v20253_v40 }
 0x702   : > { %16245 = vmatprep.mubr.msk.f32.mxu1 %vm8076_vm3, %v20258_v11 }
 0x705   : > { %16246 = vmatmul.mubr.msk.f32.gmra.mrb[56].mxu1 %vm8076_vm3, %v20263_v57 }
 0x706   : > { %16248 = vmatprep.mubr.msk.f32.mxu1 %vm8076_vm3, %v20268_v18 }
 0x709   : > { %16249 = vmatmul.mubr.msk.f32.gmra.mrb[58].mxu1 %vm8076_vm3, %v20273_v34 }
 0x70a   : > { %16251 = vmatprep.mubr.msk.f32.mxu1 %vm8076_vm3, %v20278_v23 }
 0x70d   : > { %16252 = vmatmul.mubr.msk.f32.gmra.mrb[60].mxu1 %vm8076_vm3, %v20283_v51 }
 0x70e   : > { %16254 = vmatprep.mubr.msk.f32.mxu1 %vm8076_vm3, %v20434_v10 }
 0x711   : > { %16255 = vmatmul.mubr.msk.f32.gmra.mrb[62].mxu1 %vm8076_vm3, %v20438_v13 }
 0x712   : > { %16265 = vmatprep.mubr.msk.f32.mxu1 %vm8076_vm3, %v20129_v55  ;;  %v20514_v55 = vld [vmem:[#allocation4 + $0x120] sm:$0xff] }
 0x715   : > { %16266 = vmatmul.mubr.msk.f32.vlgmr.msra.gmra.mrb[32].mxu1 %vm8076_vm3, %v20134_v14  ;;  %v20518_v14 = vld [vmem:[#allocation4 + $0x128] sm:$0xff] }
 0x716   : > { %16920 = vmatpush3.bf16.msra.mxu1 %v16917_v16  ;;  %16268 = vmatprep.mubr.msk.f32.mxu1 %vm8076_vm3, %v20140_v2 }
 0x717   : > { %16922 = vmatprep.subr.bf16.mxu1 %v16921_v26 }
 0x719   : > { %16269 = vmatmul.mubr.msk.f32.gmra.mrb[34].mxu1 %vm8076_vm3, %v20146_v63 }
 0x71a   : > { %16271 = vmatprep.mubr.msk.f32.mxu1 %vm8076_vm3, %v20152_v30  ;;  %16924 = vmatpush3.bf16.msra.mxu1 %v16921_v26 }
 0x71b   : > { %16926 = vmatprep.subr.bf16.mxu1 %v16925_v33 }
 0x71d   : > { %16272 = vmatmul.mubr.msk.f32.gmra.mrb[36].mxu1 %vm8076_vm3, %v20158_v41 }
 0x71e   : > { %16274 = vmatprep.mubr.msk.f32.mxu1 %vm8076_vm3, %v20164_v4 }
 0x721   : > { %16275 = vmatmul.mubr.msk.f32.gmra.mrb[38].mxu1 %vm8076_vm3, %v20170_v50 }
 0x722   : > { %16277 = vmatprep.mubr.msk.f32.mxu1 %vm8076_vm3, %v20176_v32 }
 0x725   : > { %16278 = vmatmul.mubr.msk.f32.gmra.mrb[40].mxu1 %vm8076_vm3, %v20182_v58 }
 0x726   : > { %16280 = vmatprep.mubr.msk.f32.mxu1 %vm8076_vm3, %v20188_v9 }
 0x729   : > { %16281 = vmatmul.mubr.msk.f32.gmra.mrb[42].mxu1 %vm8076_vm3, %v20194_v38 }
 0x72a   : > { %16283 = vmatprep.mubr.msk.f32.mxu1 %vm8076_vm3, %v20200_v45 }
 0x72d   : > { %16284 = vmatmul.mubr.msk.f32.gmra.mrb[44].mxu1 %vm8076_vm3, %v20206_v61 }
 0x72e   : > { %16286 = vmatprep.mubr.msk.f32.mxu1 %vm8076_vm3, %v20212_v54 }
 0x731   : > { %16287 = vmatmul.mubr.msk.f32.gmra.mrb[46].mxu1 %vm8076_vm3, %v20218_v15 }
 0x732   : > { %16289 = vmatprep.mubr.msk.f32.mxu1 %vm8076_vm3, %v20224_v3 }
 0x735   : > { %16290 = vmatmul.mubr.msk.f32.gmra.mrb[48].mxu1 %vm8076_vm3, %v20230_v28 }
 0x736   : > { %16292 = vmatprep.mubr.msk.f32.mxu1 %vm8076_vm3, %v20236_v37 }
 0x739   : > { %16293 = vmatmul.mubr.msk.f32.gmra.mrb[50].mxu1 %vm8076_vm3, %v20242_v12 }
 0x73a   : > { %16295 = vmatprep.mubr.msk.f32.mxu1 %vm8076_vm3, %v20248_v31 }
 0x73d   : > { %16296 = vmatmul.mubr.msk.f32.gmra.mrb[52].mxu1 %vm8076_vm3, %v20253_v40 }
 0x73e   : > { %16298 = vmatprep.mubr.msk.f32.mxu1 %vm8076_vm3, %v20258_v11 }
 0x741   : > { %16299 = vmatmul.mubr.msk.f32.gmra.mrb[54].mxu1 %vm8076_vm3, %v20263_v57 }
 0x742   : > { %16301 = vmatprep.mubr.msk.f32.mxu1 %vm8076_vm3, %v20268_v18 }
 0x745   : > { %16302 = vmatmul.mubr.msk.f32.gmra.mrb[56].mxu1 %vm8076_vm3, %v20273_v34 }
 0x746   : > { %16304 = vmatprep.mubr.msk.f32.mxu1 %vm8076_vm3, %v20278_v23 }
 0x749   : > { %16305 = vmatmul.mubr.msk.f32.gmra.mrb[58].mxu1 %vm8076_vm3, %v20283_v51 }
 0x74a   : > { %16307 = vmatprep.mubr.msk.f32.mxu1 %vm8076_vm3, %v20434_v10 }
 0x74d   : > { %16308 = vmatmul.mubr.msk.f32.gmra.mrb[60].mxu1 %vm8076_vm3, %v20438_v13 }
 0x74e   : > { %16310 = vmatprep.mubr.msk.f32.mxu1 %vm8076_vm3, %v20514_v55 }
 0x751   : > { %16311 = vmatmul.mubr.msk.f32.gmra.mrb[62].mxu1 %vm8076_vm3, %v20518_v14 }
 0x752   : > { %16321 = vmatprep.mubr.msk.f32.mxu1 %vm8076_vm3, %v20140_v2  ;;  %v20592_v2 = vld [vmem:[#allocation4 + $0x130] sm:$0xff] }
 0x755   : > { %16322 = vmatmul.mubr.msk.f32.vlgmr.msra.gmra.mrb[32].mxu1 %vm8076_vm3, %v20146_v63  ;;  %v20598_v63 = vld [vmem:[#allocation4 + $0x138] sm:$0xff] }
 0x756   : > { %16928 = vmatpush3.bf16.msra.mxu1 %v16925_v33  ;;  %16324 = vmatprep.mubr.msk.f32.mxu1 %vm8076_vm3, %v20152_v30 }
 0x757   : > { %16930 = vmatprep.subr.bf16.mxu1 %v16929_v44 }
 0x759   : > { %16325 = vmatmul.mubr.msk.f32.gmra.mrb[34].mxu1 %vm8076_vm3, %v20158_v41 }
 0x75a   : > { %16327 = vmatprep.mubr.msk.f32.mxu1 %vm8076_vm3, %v20164_v4  ;;  %16932 = vmatpush3.bf16.msra.mxu1 %v16929_v44 }
 0x75b   : > { %16934 = vmatprep.subr.bf16.mxu1 %v16933_v19 }
 0x75d   : > { %16328 = vmatmul.mubr.msk.f32.gmra.mrb[36].mxu1 %vm8076_vm3, %v20170_v50 }
 0x75e   : > { %16330 = vmatprep.mubr.msk.f32.mxu1 %vm8076_vm3, %v20176_v32 }
 0x761   : > { %16331 = vmatmul.mubr.msk.f32.gmra.mrb[38].mxu1 %vm8076_vm3, %v20182_v58 }
 0x762   : > { %16333 = vmatprep.mubr.msk.f32.mxu1 %vm8076_vm3, %v20188_v9 }
 0x765   : > { %16334 = vmatmul.mubr.msk.f32.gmra.mrb[40].mxu1 %vm8076_vm3, %v20194_v38 }
 0x766   : > { %16336 = vmatprep.mubr.msk.f32.mxu1 %vm8076_vm3, %v20200_v45 }
 0x769   : > { %16337 = vmatmul.mubr.msk.f32.gmra.mrb[42].mxu1 %vm8076_vm3, %v20206_v61 }
 0x76a   : > { %16339 = vmatprep.mubr.msk.f32.mxu1 %vm8076_vm3, %v20212_v54 }
 0x76d   : > { %16340 = vmatmul.mubr.msk.f32.gmra.mrb[44].mxu1 %vm8076_vm3, %v20218_v15 }
 0x76e   : > { %16342 = vmatprep.mubr.msk.f32.mxu1 %vm8076_vm3, %v20224_v3 }
 0x771   : > { %16343 = vmatmul.mubr.msk.f32.gmra.mrb[46].mxu1 %vm8076_vm3, %v20230_v28 }
 0x772   : > { %16345 = vmatprep.mubr.msk.f32.mxu1 %vm8076_vm3, %v20236_v37 }
 0x775   : > { %16346 = vmatmul.mubr.msk.f32.gmra.mrb[48].mxu1 %vm8076_vm3, %v20242_v12 }
 0x776   : > { %16348 = vmatprep.mubr.msk.f32.mxu1 %vm8076_vm3, %v20248_v31 }
 0x779   : > { %16349 = vmatmul.mubr.msk.f32.gmra.mrb[50].mxu1 %vm8076_vm3, %v20253_v40 }
 0x77a   : > { %16351 = vmatprep.mubr.msk.f32.mxu1 %vm8076_vm3, %v20258_v11 }
 0x77d   : > { %16352 = vmatmul.mubr.msk.f32.gmra.mrb[52].mxu1 %vm8076_vm3, %v20263_v57 }
 0x77e   : > { %16354 = vmatprep.mubr.msk.f32.mxu1 %vm8076_vm3, %v20268_v18 }
 0x781   : > { %16355 = vmatmul.mubr.msk.f32.gmra.mrb[54].mxu1 %vm8076_vm3, %v20273_v34 }
 0x782   : > { %16357 = vmatprep.mubr.msk.f32.mxu1 %vm8076_vm3, %v20278_v23 }
 0x785   : > { %16358 = vmatmul.mubr.msk.f32.gmra.mrb[56].mxu1 %vm8076_vm3, %v20283_v51 }
 0x786   : > { %16360 = vmatprep.mubr.msk.f32.mxu1 %vm8076_vm3, %v20434_v10 }
 0x789   : > { %16361 = vmatmul.mubr.msk.f32.gmra.mrb[58].mxu1 %vm8076_vm3, %v20438_v13 }
 0x78a   : > { %16363 = vmatprep.mubr.msk.f32.mxu1 %vm8076_vm3, %v20514_v55 }
 0x78d   : > { %16364 = vmatmul.mubr.msk.f32.gmra.mrb[60].mxu1 %vm8076_vm3, %v20518_v14 }
 0x78e   : > { %16366 = vmatprep.mubr.msk.f32.mxu1 %vm8076_vm3, %v20592_v2 }
 0x791   : > { %16367 = vmatmul.mubr.msk.f32.gmra.mrb[62].mxu1 %vm8076_vm3, %v20598_v63 }
 0x792   : > { %16377 = vmatprep.mubr.msk.f32.mxu1 %vm8076_vm3, %v20152_v30  ;;  %v9916_v30 = vld [vmem:[#allocation4 + $0x140] sm:$0xff] }
 0x795   : > { %16378 = vmatmul.mubr.msk.f32.vlgmr.msra.gmra.mrb[32].mxu1 %vm8076_vm3, %v20158_v41  ;;  %v9917_v41 = vld [vmem:[#allocation4 + $0x148] sm:$0xff] }
 0x796   : > { %16936 = vmatpush3.bf16.msra.mxu1 %v16933_v19  ;;  %16380 = vmatprep.mubr.msk.f32.mxu1 %vm8076_vm3, %v20164_v4 }
 0x797   : > { %16938 = vmatprep.subr.bf16.mxu1 %v16937_v47 }
 0x799   : > { %16381 = vmatmul.mubr.msk.f32.gmra.mrb[34].mxu1 %vm8076_vm3, %v20170_v50 }
 0x79a   : > { %16383 = vmatprep.mubr.msk.f32.mxu1 %vm8076_vm3, %v20176_v32  ;;  %16940 = vmatpush3.bf16.msra.mxu1 %v16937_v47 }
 0x79d   : > { %16384 = vmatmul.mubr.msk.f32.gmra.mrb[36].mxu1 %vm8076_vm3, %v20182_v58 }
 0x79e   : > { %16386 = vmatprep.mubr.msk.f32.mxu1 %vm8076_vm3, %v20188_v9 }
 0x7a1   : > { %16387 = vmatmul.mubr.msk.f32.gmra.mrb[38].mxu1 %vm8076_vm3, %v20194_v38 }
 0x7a2   : > { %16389 = vmatprep.mubr.msk.f32.mxu1 %vm8076_vm3, %v20200_v45 }
 0x7a5   : > { %16390 = vmatmul.mubr.msk.f32.gmra.mrb[40].mxu1 %vm8076_vm3, %v20206_v61 }
 0x7a6   : > { %16392 = vmatprep.mubr.msk.f32.mxu1 %vm8076_vm3, %v20212_v54 }
 0x7a9   : > { %16393 = vmatmul.mubr.msk.f32.gmra.mrb[42].mxu1 %vm8076_vm3, %v20218_v15 }
 0x7aa   : > { %16395 = vmatprep.mubr.msk.f32.mxu1 %vm8076_vm3, %v20224_v3 }
 0x7ad   : > { %16396 = vmatmul.mubr.msk.f32.gmra.mrb[44].mxu1 %vm8076_vm3, %v20230_v28 }
 0x7ae   : > { %16398 = vmatprep.mubr.msk.f32.mxu1 %vm8076_vm3, %v20236_v37 }
 0x7b1   : > { %16399 = vmatmul.mubr.msk.f32.gmra.mrb[46].mxu1 %vm8076_vm3, %v20242_v12 }
 0x7b2   : > { %16401 = vmatprep.mubr.msk.f32.mxu1 %vm8076_vm3, %v20248_v31 }
 0x7b5   : > { %16402 = vmatmul.mubr.msk.f32.gmra.mrb[48].mxu1 %vm8076_vm3, %v20253_v40 }
 0x7b6   : > { %16404 = vmatprep.mubr.msk.f32.mxu1 %vm8076_vm3, %v20258_v11 }
 0x7b9   : > { %16405 = vmatmul.mubr.msk.f32.gmra.mrb[50].mxu1 %vm8076_vm3, %v20263_v57 }
 0x7ba   : > { %16407 = vmatprep.mubr.msk.f32.mxu1 %vm8076_vm3, %v20268_v18 }
 0x7bd   : > { %16408 = vmatmul.mubr.msk.f32.gmra.mrb[52].mxu1 %vm8076_vm3, %v20273_v34 }
 0x7be   : > { %16410 = vmatprep.mubr.msk.f32.mxu1 %vm8076_vm3, %v20278_v23 }
 0x7c1   : > { %16411 = vmatmul.mubr.msk.f32.gmra.mrb[54].mxu1 %vm8076_vm3, %v20283_v51 }
 0x7c2   : > { %16413 = vmatprep.mubr.msk.f32.mxu1 %vm8076_vm3, %v20434_v10 }
 0x7c5   : > { %16414 = vmatmul.mubr.msk.f32.gmra.mrb[56].mxu1 %vm8076_vm3, %v20438_v13 }
 0x7c6   : > { %16416 = vmatprep.mubr.msk.f32.mxu1 %vm8076_vm3, %v20514_v55 }
 0x7c9   : > { %16417 = vmatmul.mubr.msk.f32.gmra.mrb[58].mxu1 %vm8076_vm3, %v20518_v14 }
 0x7ca   : > { %16419 = vmatprep.mubr.msk.f32.mxu1 %vm8076_vm3, %v20592_v2 }
 0x7cd   : > { %16420 = vmatmul.mubr.msk.f32.gmra.mrb[60].mxu1 %vm8076_vm3, %v20598_v63 }
 0x7ce   : > { %16422 = vmatprep.mubr.msk.f32.mxu1 %vm8076_vm3, %v9916_v30 }
 0x7d1   : > { %16423 = vmatmul.mubr.msk.f32.gmra.mrb[62].mxu1 %vm8076_vm3, %v9917_v41 }
 0x7d2   : > { %16433 = vmatprep.mubr.msk.f32.mxu1 %vm8076_vm3, %v20164_v4  ;;  %v10306_v4 = vld [vmem:[#allocation4 + $0x150] sm:$0xff] }
 0x7d5   : > { %16434 = vmatmul.mubr.msk.f32.vlgmr.msra.gmra.mrb[32].mxu1 %vm8076_vm3, %v20170_v50  ;;  %v10307_v50 = vld [vmem:[#allocation4 + $0x158] sm:$0xff] }
 0x7d6   : > { %16436 = vmatprep.mubr.msk.f32.mxu1 %vm8076_vm3, %v20176_v32  ;;  %v13645_v32 = vld [vmem:[%s21347_s7 + $0x10] sm:$0xff] }
 0x7d9   : > { %16437 = vmatmul.mubr.msk.f32.gmra.mrb[34].mxu1 %vm8076_vm3, %v20182_v58  ;;  %v13646_v58 = vld [vmem:[%s21347_s7 + $0x18] sm:$0xff] }
 0x7da   : > { %16439 = vmatprep.mubr.msk.f32.mxu1 %vm8076_vm3, %v20188_v9  ;;  %v16941_v9 = vpack.c.bf16 %v13646_v58, %v13645_v32 }
 0x7dc   : > { %16942 = vmatprep.subr.bf16.mxu0 %v16941_v9 }
 0x7dd   : > { %16440 = vmatmul.mubr.msk.f32.gmra.mrb[36].mxu1 %vm8076_vm3, %v20194_v38  ;;  %16944 = vmatpush3.bf16.msra.mxu0 %v16941_v9  ;;  %v20752_v38 = vld [vmem:[#allocation5 + $0x10] sm:$0xff] }
 0x7de   : > { %16442 = vmatprep.mubr.msk.f32.mxu1 %vm8076_vm3, %v20200_v45  ;;  %16485 = vmatprep.mubr.msk.f32.mxu0 %vm10737_vm4, %v20752_v38  ;;  %v20756_v45 = vld [vmem:[#allocation5 + $0x18] sm:$0xff] }
 0x7e0   : > { %16486 = vmatmul.mubr.msk.f32.vlgmr.msra.gmra.mrb[34].mxu0 %vm10737_vm4, %v20756_v45 }
 0x7e1   : > { %16443 = vmatmul.mubr.msk.f32.gmra.mrb[38].mxu1 %vm8076_vm3, %v20206_v61  ;;  %v10811_v61 = vld [vmem:[%s21347_s7 + $0x8] sm:$0xff] }
 0x7e2   : > { %16445 = vmatprep.mubr.msk.f32.mxu1 %vm8076_vm3, %v20212_v54  ;;  %v16945_v54 = vpack.c.bf16 %v10811_v61, %v10810_v1 }
 0x7e4   : > { %16946 = vmatprep.subr.bf16.mxu0 %v16945_v54 }
 0x7e5   : > { %16446 = vmatmul.mubr.msk.f32.gmra.mrb[40].mxu1 %vm8076_vm3, %v20218_v15  ;;  %16948 = vmatpush3.bf16.msra.mxu0 %v16945_v54  ;;  %v13711_v15 = vld [vmem:[%s21347_s7 + $0x20] sm:$0xff] }
 0x7e6   : > { %16448 = vmatprep.mubr.msk.f32.mxu1 %vm8076_vm3, %v20224_v3  ;;  %v13712_v3 = vld [vmem:[%s21347_s7 + $0x28] sm:$0xff] }
 0x7e9   : > { %16449 = vmatmul.mubr.msk.f32.gmra.mrb[42].mxu1 %vm8076_vm3, %v20230_v28  ;;  %v20772_v28 = vpack.c.bf16 %v13712_v3, %v13711_v15 }
 0x7ea   : > { %16451 = vmatprep.mubr.msk.f32.mxu1 %vm8076_vm3, %v20236_v37  ;;  %v20778_v37 = vld [vmem:[%s21346_s6] ss:$0 sm:$0xff] }
 0x7eb   : > { %16950 = vmatprep.subr.bf16.mxu0 %v20772_v28 }
 0x7ed   : > { %16452 = vmatmul.mubr.msk.f32.gmra.mrb[44].mxu1 %vm8076_vm3, %v20242_v12 }
 0x7ee   : > { %16454 = vmatprep.mubr.msk.f32.mxu1 %vm8076_vm3, %v20248_v31 }
 0x7f1   : > { %16455 = vmatmul.mubr.msk.f32.gmra.mrb[46].mxu1 %vm8076_vm3, %v20253_v40 }
 0x7f2   : > { %16457 = vmatprep.mubr.msk.f32.mxu1 %vm8076_vm3, %v20258_v11 }
 0x7f5   : > { %16458 = vmatmul.mubr.msk.f32.gmra.mrb[48].mxu1 %vm8076_vm3, %v20263_v57 }
 0x7f6   : > { %16460 = vmatprep.mubr.msk.f32.mxu1 %vm8076_vm3, %v20268_v18 }
 0x7f9   : > { %16461 = vmatmul.mubr.msk.f32.gmra.mrb[50].mxu1 %vm8076_vm3, %v20273_v34 }
 0x7fa   : > { %16463 = vmatprep.mubr.msk.f32.mxu1 %vm8076_vm3, %v20278_v23 }
 0x7fd   : > { %16464 = vmatmul.mubr.msk.f32.gmra.mrb[52].mxu1 %vm8076_vm3, %v20283_v51 }
 0x7fe   : > { %16466 = vmatprep.mubr.msk.f32.mxu1 %vm8076_vm3, %v20434_v10 }
 0x801   : > { %16467 = vmatmul.mubr.msk.f32.gmra.mrb[54].mxu1 %vm8076_vm3, %v20438_v13 }
 0x802   : > { %16469 = vmatprep.mubr.msk.f32.mxu1 %vm8076_vm3, %v20514_v55 }
 0x805   : > { %16470 = vmatmul.mubr.msk.f32.gmra.mrb[56].mxu1 %vm8076_vm3, %v20518_v14 }
 0x806   : > { %16472 = vmatprep.mubr.msk.f32.mxu1 %vm8076_vm3, %v20592_v2 }
 0x809   : > { %16473 = vmatmul.mubr.msk.f32.gmra.mrb[58].mxu1 %vm8076_vm3, %v20598_v63 }
 0x80a   : > { %16475 = vmatprep.mubr.msk.f32.mxu1 %vm8076_vm3, %v9916_v30 }
 0x80d   : > { %16476 = vmatmul.mubr.msk.f32.gmra.mrb[60].mxu1 %vm8076_vm3, %v9917_v41 }
 0x80e   : > { %16478 = vmatprep.mubr.msk.f32.mxu1 %vm8076_vm3, %v10306_v4 }
 0x811   : > { %16479 = vmatmul.mubr.msk.f32.gmra.mrb[62].mxu1 %vm8076_vm3, %v10307_v50 }
 0x8a8   : > { %v16435_v12 = vpop.f32.mrb[32].mxu1 }
 0x8a9   : > { %v10674_v31 = vadd.f32 %v16435_v12, %v20778_v37  ;;  %v10475_v40 = vpop.f32.mrb[33].mxu1 }
 0x8aa   : > { %v10673_v11 = vadd.f32 %v20778_v37, %v10475_v40 }
 0x8ab   : > { %18002 = vtanh.f32 %v10674_v31 }
 0x8ac   : > { %18004 = vtanh.f32 %v10673_v11  ;;  %v16438_v48 = vpop.f32.mrb[34].mxu1 }
 0x8ad   : > { %v10676_v57 = vadd.f32 %v16438_v48, %v20778_v37  ;;  %v10485_v8 = vpop.f32.mrb[35].mxu1 }
 0x8ae   : > { %v10675_v18 = vadd.f32 %v20778_v37, %v10485_v8 }
 0x8af   : > { %18006 = vtanh.f32 %v10676_v57 }
 0x8b0   : > { %18008 = vtanh.f32 %v10675_v18  ;;  %v16441_v25 = vpop.f32.mrb[36].mxu1 }
 0x8b1   : > { %v10678_v34 = vadd.f32 %v16441_v25, %v20778_v37  ;;  %v10495_v35 = vpop.f32.mrb[37].mxu1 }
 0x8b2   : > { %v10677_v23 = vadd.f32 %v20778_v37, %v10495_v35 }
 0x8b3   : > { %18010 = vtanh.f32 %v10678_v34 }
 0x8b4   : > { %18012 = vtanh.f32 %v10677_v23  ;;  %v16444_v43 = vpop.f32.mrb[38].mxu1 }
 0x8b5   : > { %v18003_v51 = vpop.eup %18002  ;;  %v10680_v56 = vadd.f32 %v16444_v43, %v20778_v37  ;;  %v10505_v59 = vpop.f32.mrb[39].mxu1 }
 0x8b6   : > { %v18005_v60 = vpop.eup %18004  ;;  %10747 = vst.msk [vmem:[#allocation5 + $0x28] sm:$0xff] %vm10737_vm4, %v18003_v51  ;;  %v10679_v0 = vadd.f32 %v20778_v37, %v10505_v59 }
 0x8b7   : > { %10746 = vst.msk [vmem:[#allocation5 + $0x20] sm:$0xff] %vm10737_vm4, %v18005_v60  ;;  %18014 = vtanh.f32 %v10680_v56 }
 0x8b8   : > { %18016 = vtanh.f32 %v10679_v0  ;;  %v16447_v20 = vpop.f32.mrb[40].mxu1 }
 0x8b9   : > { %v18007_v21 = vpop.eup %18006  ;;  %v10682_v6 = vadd.f32 %v16447_v20, %v20778_v37  ;;  %v10515_v52 = vpop.f32.mrb[41].mxu1 }
 0x8ba   : > { %v18009_v53 = vpop.eup %18008  ;;  %10749 = vst.msk [vmem:[#allocation5 + $0x38] sm:$0xff] %vm10737_vm4, %v18007_v21  ;;  %v10681_v46 = vadd.f32 %v20778_v37, %v10515_v52 }
 0x8bb   : > { %10748 = vst.msk [vmem:[#allocation5 + $0x30] sm:$0xff] %vm10737_vm4, %v18009_v53  ;;  %18018 = vtanh.f32 %v10682_v6 }
 0x8bc   : > { %18020 = vtanh.f32 %v10681_v46  ;;  %v16450_v22 = vpop.f32.mrb[42].mxu1 }
 0x8bd   : > { %v18011_v7 = vpop.eup %18010  ;;  %v10684_v16 = vadd.f32 %v16450_v22, %v20778_v37  ;;  %v10525_v10 = vpop.f32.mrb[43].mxu1  ;;  %v20802_v26 = vld [vmem:[#allocation5 + $0x28] sm:$0xff] }
 0x8be   : > { %v18013_v13 = vpop.eup %18012  ;;  %10751 = vst.msk [vmem:[#allocation5 + $0x48] sm:$0xff] %vm10737_vm4, %v18011_v7  ;;  %v10683_v17 = vadd.f32 %v20778_v37, %v10525_v10  ;;  %v20797_v62 = vld [vmem:[#allocation5 + $0x20] sm:$0xff] }
 0x8bf   : > { %10750 = vst.msk [vmem:[#allocation5 + $0x40] sm:$0xff] %vm10737_vm4, %v18013_v13  ;;  %18022 = vtanh.f32 %v10684_v16  ;;  %16488 = vmatprep.mubr.msk.f32.mxu0 %vm10737_vm4, %v20797_v62 }
 0x8c0   : > { %18024 = vtanh.f32 %v10683_v17  ;;  %v16453_v27 = vpop.f32.mrb[44].mxu1  ;;  %16489 = vmatmul.mubr.msk.f32.gmra.mrb[36].mxu0 %vm10737_vm4, %v20802_v26 }
 0x8c1   : > { %v18015_v29 = vpop.eup %18014  ;;  %v10686_v33 = vadd.f32 %v16453_v27, %v20778_v37  ;;  %v10535_v55 = vpop.f32.mrb[45].mxu1  ;;  %v20814_v44 = vld [vmem:[#allocation5 + $0x38] sm:$0xff] }
 0x8c2   : > { %v18017_v14 = vpop.eup %18016  ;;  %10753 = vst.msk [vmem:[#allocation5 + $0x58] sm:$0xff] %vm10737_vm4, %v18015_v29  ;;  %v10685_v36 = vadd.f32 %v20778_v37, %v10535_v55  ;;  %v20809_v42 = vld [vmem:[#allocation5 + $0x30] sm:$0xff] }
 0x8c3   : > { %10752 = vst.msk [vmem:[#allocation5 + $0x50] sm:$0xff] %vm10737_vm4, %v18017_v14  ;;  %18026 = vtanh.f32 %v10686_v33  ;;  %16491 = vmatprep.mubr.msk.f32.mxu0 %vm10737_vm4, %v20809_v42 }
 0x8c4   : > { %18028 = vtanh.f32 %v10685_v36  ;;  %v16456_v5 = vpop.f32.mrb[46].mxu1  ;;  %16492 = vmatmul.mubr.msk.f32.gmra.mrb[38].mxu0 %vm10737_vm4, %v20814_v44 }
 0x8c5   : > { %v18019_v49 = vpop.eup %18018  ;;  %v10688_v19 = vadd.f32 %v16456_v5, %v20778_v37  ;;  %v10545_v2 = vpop.f32.mrb[47].mxu1  ;;  %v20826_v47 = vld [vmem:[#allocation5 + $0x48] sm:$0xff] }
 0x8c6   : > { %v18021_v63 = vpop.eup %18020  ;;  %10755 = vst.msk [vmem:[#allocation5 + $0x68] sm:$0xff] %vm10737_vm4, %v18019_v49  ;;  %v10687_v24 = vadd.f32 %v20778_v37, %v10545_v2  ;;  %v20821_v39 = vld [vmem:[#allocation5 + $0x40] sm:$0xff] }
 0x8c7   : > { %10754 = vst.msk [vmem:[#allocation5 + $0x60] sm:$0xff] %vm10737_vm4, %v18021_v63  ;;  %18030 = vtanh.f32 %v10688_v19  ;;  %16494 = vmatprep.mubr.msk.f32.mxu0 %vm10737_vm4, %v20821_v39 }
 0x8c8   : > { %18032 = vtanh.f32 %v10687_v24  ;;  %v16459_v30 = vpop.f32.mrb[48].mxu1  ;;  %16495 = vmatmul.mubr.msk.f32.gmra.mrb[40].mxu0 %vm10737_vm4, %v20826_v47 }
 0x8c9   : > { %v18023_v41 = vpop.eup %18022  ;;  %v10690_v4 = vadd.f32 %v16459_v30, %v20778_v37  ;;  %v10555_v50 = vpop.f32.mrb[49].mxu1  ;;  %v20838_v1 = vld [vmem:[#allocation5 + $0x58] sm:$0xff] }
 0x8ca   : > { %v18025_v32 = vpop.eup %18024  ;;  %10757 = vst.msk [vmem:[#allocation5 + $0x78] sm:$0xff] %vm10737_vm4, %v18023_v41  ;;  %v10689_v58 = vadd.f32 %v20778_v37, %v10555_v50  ;;  %v20833_v9 = vld [vmem:[#allocation5 + $0x50] sm:$0xff] }
 0x8cb   : > { %10756 = vst.msk [vmem:[#allocation5 + $0x70] sm:$0xff] %vm10737_vm4, %v18025_v32  ;;  %18034 = vtanh.f32 %v10690_v4  ;;  %16497 = vmatprep.mubr.msk.f32.mxu0 %vm10737_vm4, %v20833_v9 }
 0x8cc   : > { %18036 = vtanh.f32 %v10689_v58  ;;  %v16462_v61 = vpop.f32.mrb[50].mxu1  ;;  %16498 = vmatmul.mubr.msk.f32.gmra.mrb[42].mxu0 %vm10737_vm4, %v20838_v1 }
 0x8cd   : > { %v18027_v54 = vpop.eup %18026  ;;  %v10692_v15 = vadd.f32 %v16462_v61, %v20778_v37  ;;  %v10565_v3 = vpop.f32.mrb[51].mxu1  ;;  %v20850_v11 = vld [vmem:[#allocation5 + $0x68] sm:$0xff] }
 0x8ce   : > { %v18029_v12 = vpop.eup %18028  ;;  %10759 = vst.msk [vmem:[#allocation5 + $0x88] sm:$0xff] %vm10737_vm4, %v18027_v54  ;;  %v10691_v31 = vadd.f32 %v20778_v37, %v10565_v3  ;;  %v20845_v40 = vld [vmem:[#allocation5 + $0x60] sm:$0xff] }
 0x8cf   : > { %10758 = vst.msk [vmem:[#allocation5 + $0x80] sm:$0xff] %vm10737_vm4, %v18029_v12  ;;  %18038 = vtanh.f32 %v10692_v15  ;;  %16500 = vmatprep.mubr.msk.f32.mxu0 %vm10737_vm4, %v20845_v40 }
 0x8d0   : > { %18040 = vtanh.f32 %v10691_v31  ;;  %v16465_v48 = vpop.f32.mrb[52].mxu1  ;;  %16501 = vmatmul.mubr.msk.f32.gmra.mrb[44].mxu0 %vm10737_vm4, %v20850_v11 }
 0x8d1   : > { %v18031_v57 = vpop.eup %18030  ;;  %v10694_v8 = vadd.f32 %v16465_v48, %v20778_v37  ;;  %v10575_v18 = vpop.f32.mrb[53].mxu1  ;;  %v20862_v23 = vld [vmem:[#allocation5 + $0x78] sm:$0xff] }
 0x8d2   : > { %v18033_v25 = vpop.eup %18032  ;;  %10761 = vst.msk [vmem:[#allocation5 + $0x98] sm:$0xff] %vm10737_vm4, %v18031_v57  ;;  %v10693_v34 = vadd.f32 %v20778_v37, %v10575_v18  ;;  %v20857_v35 = vld [vmem:[#allocation5 + $0x70] sm:$0xff] }
 0x8d3   : > { %10760 = vst.msk [vmem:[#allocation5 + $0x90] sm:$0xff] %vm10737_vm4, %v18033_v25  ;;  %18042 = vtanh.f32 %v10694_v8  ;;  %16503 = vmatprep.mubr.msk.f32.mxu0 %vm10737_vm4, %v20857_v35 }
 0x8d4   : > { %18044 = vtanh.f32 %v10693_v34  ;;  %v16468_v43 = vpop.f32.mrb[54].mxu1  ;;  %16504 = vmatmul.mubr.msk.f32.gmra.mrb[46].mxu0 %vm10737_vm4, %v20862_v23 }
 0x8d5   : > { %v18035_v51 = vpop.eup %18034  ;;  %v10696_v56 = vadd.f32 %v16468_v43, %v20778_v37  ;;  %v10585_v59 = vpop.f32.mrb[55].mxu1  ;;  %v20874_v21 = vld [vmem:[#allocation5 + $0x88] sm:$0xff] }
 0x8d6   : > { %v18037_v60 = vpop.eup %18036  ;;  %10763 = vst.msk [vmem:[#allocation5 + $0xa8] sm:$0xff] %vm10737_vm4, %v18035_v51  ;;  %v10695_v0 = vadd.f32 %v20778_v37, %v10585_v59  ;;  %v20869_v20 = vld [vmem:[#allocation5 + $0x80] sm:$0xff] }
 0x8d7   : > { %10762 = vst.msk [vmem:[#allocation5 + $0xa0] sm:$0xff] %vm10737_vm4, %v18037_v60  ;;  %18046 = vtanh.f32 %v10696_v56  ;;  %16506 = vmatprep.mubr.msk.f32.mxu0 %vm10737_vm4, %v20869_v20  ;;  %v10778_v60 = vld [vmem:[#allocation5] sm:$0xff] }
 0x8d8   : > { %18048 = vtanh.f32 %v10695_v0  ;;  %v16471_v6 = vpop.f32.mrb[56].mxu1  ;;  %16507 = vmatmul.mubr.msk.f32.gmra.mrb[48].mxu0 %vm10737_vm4, %v20874_v21 }
 0x8d9   : > { %v18039_v52 = vpop.eup %18038  ;;  %v10698_v53 = vadd.f32 %v16471_v6, %v20778_v37  ;;  %v10595_v46 = vpop.f32.mrb[57].mxu1  ;;  %v20886_v10 = vld [vmem:[#allocation5 + $0x98] sm:$0xff]  ;;  %v13745_v6 = vld [vmem:[%s21347_s7 + $0x30] sm:$0xff] }
 0x8da   : > { %v18041_v22 = vpop.eup %18040  ;;  %10765 = vst.msk [vmem:[#allocation5 + $0xb8] sm:$0xff] %vm10737_vm4, %v18039_v52  ;;  %v10697_v7 = vadd.f32 %v20778_v37, %v10595_v46  ;;  %v20881_v16 = vld [vmem:[#allocation5 + $0x90] sm:$0xff]  ;;  %v13746_v52 = vld [vmem:[%s21347_s7 + $0x38] sm:$0xff] }
 0x8db   : > { %10764 = vst.msk [vmem:[#allocation5 + $0xb0] sm:$0xff] %vm10737_vm4, %v18041_v22  ;;  %18050 = vtanh.f32 %v10698_v53  ;;  %16509 = vmatprep.mubr.msk.f32.mxu0 %vm10737_vm4, %v20881_v16  ;;  %v10779_v53 = vld [vmem:[#allocation5 + $0x8] sm:$0xff]  ;;  %v16953_v46 = vpack.c.bf16 %v13746_v52, %v13745_v6 }
 0x8dc   : > { %18052 = vtanh.f32 %v10697_v7  ;;  %v16474_v13 = vpop.f32.mrb[58].mxu1  ;;  %16510 = vmatmul.mubr.msk.f32.gmra.mrb[50].mxu0 %vm10737_vm4, %v20886_v10 }
 0x8dd   : > { %v18043_v17 = vpop.eup %18042  ;;  %v10700_v27 = vadd.f32 %v16474_v13, %v20778_v37  ;;  %v10605_v29 = vpop.f32.mrb[59].mxu1  ;;  %v20898_v36 = vld [vmem:[#allocation5 + $0xa8] sm:$0xff] }
 0x8de   : > { %v18045_v33 = vpop.eup %18044  ;;  %10767 = vst.msk [vmem:[#allocation5 + $0xc8] sm:$0xff] %vm10737_vm4, %v18043_v17  ;;  %v10699_v55 = vadd.f32 %v20778_v37, %v10605_v29  ;;  %v20893_v14 = vld [vmem:[#allocation5 + $0xa0] sm:$0xff] }
 0x8df   : > { %10766 = vst.msk [vmem:[#allocation5 + $0xc0] sm:$0xff] %vm10737_vm4, %v18045_v33  ;;  %18054 = vtanh.f32 %v10700_v27  ;;  %16512 = vmatprep.mubr.msk.f32.mxu0 %vm10737_vm4, %v20893_v14 }
 0x8e0   : > { %18056 = vtanh.f32 %v10699_v55  ;;  %v16477_v5 = vpop.f32.mrb[60].mxu1  ;;  %16513 = vmatmul.mubr.msk.f32.gmra.mrb[52].mxu0 %vm10737_vm4, %v20898_v36 }
 0x8e1   : > { %v18047_v49 = vpop.eup %18046  ;;  %v10702_v19 = vadd.f32 %v16477_v5, %v20778_v37  ;;  %v10615_v2 = vpop.f32.mrb[61].mxu1  ;;  %v20910_v41 = vld [vmem:[#allocation5 + $0xb8] sm:$0xff] }
 0x8e2   : > { %v18049_v63 = vpop.eup %18048  ;;  %10769 = vst.msk [vmem:[#allocation5 + $0xd8] sm:$0xff] %vm10737_vm4, %v18047_v49  ;;  %v10701_v24 = vadd.f32 %v20778_v37, %v10615_v2  ;;  %v20905_v30 = vld [vmem:[#allocation5 + $0xb0] sm:$0xff] }
 0x8e3   : > { %10768 = vst.msk [vmem:[#allocation5 + $0xd0] sm:$0xff] %vm10737_vm4, %v18049_v63  ;;  %18058 = vtanh.f32 %v10702_v19  ;;  %16515 = vmatprep.mubr.msk.f32.mxu0 %vm10737_vm4, %v20905_v30 }
 0x8e4   : > { %18060 = vtanh.f32 %v10701_v24  ;;  %v16480_v4 = vpop.f32.mrb[62].mxu1  ;;  %16516 = vmatmul.mubr.msk.f32.gmra.mrb[54].mxu0 %vm10737_vm4, %v20910_v41 }
 0x8e5   : > { %v18051_v50 = vpop.eup %18050  ;;  %v10704_v32 = vadd.f32 %v16480_v4, %v20778_v37  ;;  %v10625_v58 = vpop.f32.mrb[63].mxu1  ;;  %v20922_v3 = vld [vmem:[#allocation5 + $0xc8] sm:$0xff] }
 0x8e6   : > { %v18053_v61 = vpop.eup %18052  ;;  %10771 = vst.msk [vmem:[#allocation5 + $0xe8] sm:$0xff] %vm10737_vm4, %v18051_v50  ;;  %v10703_v54 = vadd.f32 %v20778_v37, %v10625_v58  ;;  %v20917_v15 = vld [vmem:[#allocation5 + $0xc0] sm:$0xff] }
 0x8e7   : > { %10770 = vst.msk [vmem:[#allocation5 + $0xe0] sm:$0xff] %vm10737_vm4, %v18053_v61  ;;  %18062 = vtanh.f32 %v10704_v32  ;;  %16518 = vmatprep.mubr.msk.f32.mxu0 %vm10737_vm4, %v20917_v15 }
 0x8e8   : > { %18064 = vtanh.f32 %v10703_v54  ;;  %16519 = vmatmul.mubr.msk.f32.gmra.mrb[56].mxu0 %vm10737_vm4, %v20922_v3 }
 0x8e9   : > { %v18055_v12 = vpop.eup %18054  ;;  %v20932_v37 = vld [vmem:[#allocation5 + $0xd8] sm:$0xff] }
 0x8ea   : > { %v18057_v31 = vpop.eup %18056  ;;  %10773 = vst.msk [vmem:[#allocation5 + $0xf8] sm:$0xff] %vm10737_vm4, %v18055_v12  ;;  %v20927_v48 = vld [vmem:[#allocation5 + $0xd0] sm:$0xff] }
 0x8eb   : > { %10772 = vst.msk [vmem:[#allocation5 + $0xf0] sm:$0xff] %vm10737_vm4, %v18057_v31  ;;  %16521 = vmatprep.mubr.msk.f32.mxu0 %vm10737_vm4, %v20927_v48 }
 0x8ec   : > { %16522 = vmatmul.mubr.msk.f32.gmra.mrb[58].mxu0 %vm10737_vm4, %v20932_v37 }
 0x8ed   : > { %v18059_v57 = vpop.eup %18058  ;;  %v20942_v25 = vld [vmem:[#allocation5 + $0xe8] sm:$0xff] }
 0x8ee   : > { %v18061_v8 = vpop.eup %18060  ;;  %10775 = vst.msk [vmem:[#allocation5 + $0x108] sm:$0xff] %vm10737_vm4, %v18059_v57  ;;  %v20937_v18 = vld [vmem:[#allocation5 + $0xe0] sm:$0xff] }
 0x8ef   : > { %10774 = vst.msk [vmem:[#allocation5 + $0x100] sm:$0xff] %vm10737_vm4, %v18061_v8  ;;  %16524 = vmatprep.mubr.msk.f32.mxu0 %vm10737_vm4, %v20937_v18 }
 0x8f0   : > { %16525 = vmatmul.mubr.msk.f32.gmra.mrb[60].mxu0 %vm10737_vm4, %v20942_v25 }
 0x8f1   : > { %v18063_v34 = vpop.eup %18062  ;;  %v20952_v56 = vld [vmem:[#allocation5 + $0xf8] sm:$0xff] }
 0x8f2   : > { %v18065_v43 = vpop.eup %18064  ;;  %10777 = vst.msk [vmem:[#allocation5 + $0x118] sm:$0xff] %vm10737_vm4, %v18063_v34  ;;  %v20947_v51 = vld [vmem:[#allocation5 + $0xf0] sm:$0xff] }
 0x8f3   : > { %10776 = vst.msk [vmem:[#allocation5 + $0x110] sm:$0xff] %vm10737_vm4, %v18065_v43  ;;  %16527 = vmatprep.mubr.msk.f32.mxu0 %vm10737_vm4, %v20947_v51 }
 0x8f4   : > { %16528 = vmatmul.mubr.msk.f32.gmra.mrb[62].mxu0 %vm10737_vm4, %v20952_v56 }
 0x8f5   : > { %v20960_v0 = vld [vmem:[#allocation5 + $0x108] sm:$0xff] }
 0x8f6   : > { %v20956_v59 = vld [vmem:[#allocation5 + $0x100] sm:$0xff] }
 0x8f7   : > { %16530 = vmatprep.mubr.msk.f32.mxu0 %vm10737_vm4, %v20956_v59 }
 0x8f8   : > { %16531 = vmatmul.mubr.msk.f32.gmra.mrb[64].mxu0 %vm10737_vm4, %v20960_v0 }
 0x8f9   : > { %16537 = vmatprep.mubr.msk.f32.mxu0 %vm10737_vm4, %v10778_v60 }
 0x8fc   : > { %16538 = vmatmul.mubr.msk.f32.vlgmr.msra.gmra.mrb[34].mxu0 %vm10737_vm4, %v10779_v53 }
 0x8fd   : > { %16952 = vmatpush3.bf16.msra.mxu0 %v20772_v28  ;;  %16540 = vmatprep.mubr.msk.f32.mxu0 %vm10737_vm4, %v20752_v38  ;;  %v13779_v38 = vld [vmem:[%s21347_s7 + $0x40] sm:$0xff] }
 0x8fe   : > { %16954 = vmatprep.subr.bf16.mxu0 %v16953_v46 }
 0x900   : > { %16541 = vmatmul.mubr.msk.f32.gmra.mrb[36].mxu0 %vm10737_vm4, %v20756_v45  ;;  %v13780_v45 = vld [vmem:[%s21347_s7 + $0x48] sm:$0xff] }
 0x901   : > { %16543 = vmatprep.mubr.msk.f32.mxu0 %vm10737_vm4, %v20797_v62  ;;  %v16957_v28 = vpack.c.bf16 %v13780_v45, %v13779_v38 }
 0x904   : > { %16544 = vmatmul.mubr.msk.f32.gmra.mrb[38].mxu0 %vm10737_vm4, %v20802_v26 }
 0x905   : > { %16546 = vmatprep.mubr.msk.f32.mxu0 %vm10737_vm4, %v20809_v42 }
 0x908   : > { %16547 = vmatmul.mubr.msk.f32.gmra.mrb[40].mxu0 %vm10737_vm4, %v20814_v44 }
 0x909   : > { %16549 = vmatprep.mubr.msk.f32.mxu0 %vm10737_vm4, %v20821_v39 }
 0x90c   : > { %16550 = vmatmul.mubr.msk.f32.gmra.mrb[42].mxu0 %vm10737_vm4, %v20826_v47 }
 0x90d   : > { %16552 = vmatprep.mubr.msk.f32.mxu0 %vm10737_vm4, %v20833_v9 }
 0x910   : > { %16553 = vmatmul.mubr.msk.f32.gmra.mrb[44].mxu0 %vm10737_vm4, %v20838_v1 }
 0x911   : > { %16555 = vmatprep.mubr.msk.f32.mxu0 %vm10737_vm4, %v20845_v40 }
 0x914   : > { %16556 = vmatmul.mubr.msk.f32.gmra.mrb[46].mxu0 %vm10737_vm4, %v20850_v11 }
 0x915   : > { %16558 = vmatprep.mubr.msk.f32.mxu0 %vm10737_vm4, %v20857_v35 }
 0x918   : > { %16559 = vmatmul.mubr.msk.f32.gmra.mrb[48].mxu0 %vm10737_vm4, %v20862_v23 }
 0x919   : > { %16561 = vmatprep.mubr.msk.f32.mxu0 %vm10737_vm4, %v20869_v20 }
 0x91c   : > { %16562 = vmatmul.mubr.msk.f32.gmra.mrb[50].mxu0 %vm10737_vm4, %v20874_v21 }
 0x91d   : > { %16564 = vmatprep.mubr.msk.f32.mxu0 %vm10737_vm4, %v20881_v16 }
 0x920   : > { %16565 = vmatmul.mubr.msk.f32.gmra.mrb[52].mxu0 %vm10737_vm4, %v20886_v10 }
 0x921   : > { %16567 = vmatprep.mubr.msk.f32.mxu0 %vm10737_vm4, %v20893_v14 }
 0x924   : > { %16568 = vmatmul.mubr.msk.f32.gmra.mrb[54].mxu0 %vm10737_vm4, %v20898_v36 }
 0x925   : > { %16570 = vmatprep.mubr.msk.f32.mxu0 %vm10737_vm4, %v20905_v30 }
 0x928   : > { %16571 = vmatmul.mubr.msk.f32.gmra.mrb[56].mxu0 %vm10737_vm4, %v20910_v41 }
 0x929   : > { %16573 = vmatprep.mubr.msk.f32.mxu0 %vm10737_vm4, %v20917_v15 }
 0x92c   : > { %16574 = vmatmul.mubr.msk.f32.gmra.mrb[58].mxu0 %vm10737_vm4, %v20922_v3 }
 0x92d   : > { %16576 = vmatprep.mubr.msk.f32.mxu0 %vm10737_vm4, %v20927_v48 }
 0x930   : > { %16577 = vmatmul.mubr.msk.f32.gmra.mrb[60].mxu0 %vm10737_vm4, %v20932_v37 }
 0x931   : > { %16579 = vmatprep.mubr.msk.f32.mxu0 %vm10737_vm4, %v20937_v18 }
 0x934   : > { %16580 = vmatmul.mubr.msk.f32.gmra.mrb[62].mxu0 %vm10737_vm4, %v20942_v25 }
 0x935   : > { %16582 = vmatprep.mubr.msk.f32.mxu0 %vm10737_vm4, %v20947_v51 }
 0x938   : > { %16583 = vmatmul.mubr.msk.f32.gmra.mrb[64].mxu0 %vm10737_vm4, %v20952_v56 }
 0x939   : > { %16589 = vmatprep.mubr.msk.f32.mxu0 %vm10737_vm4, %v20797_v62  ;;  %v21099_v62 = vld [vmem:[#allocation5 + $0x110] sm:$0xff] }
 0x93c   : > { %16590 = vmatmul.mubr.msk.f32.vlgmr.msra.gmra.mrb[34].mxu0 %vm10737_vm4, %v20802_v26  ;;  %v21103_v26 = vld [vmem:[#allocation5 + $0x118] sm:$0xff] }
 0x93d   : > { %16956 = vmatpush3.bf16.msra.mxu0 %v16953_v46  ;;  %16592 = vmatprep.mubr.msk.f32.mxu0 %vm10737_vm4, %v20809_v42 }
 0x93e   : > { %16958 = vmatprep.subr.bf16.mxu0 %v16957_v28 }
 0x940   : > { %16593 = vmatmul.mubr.msk.f32.gmra.mrb[36].mxu0 %vm10737_vm4, %v20814_v44 }
 0x941   : > { %16595 = vmatprep.mubr.msk.f32.mxu0 %vm10737_vm4, %v20821_v39 }
 0x944   : > { %16596 = vmatmul.mubr.msk.f32.gmra.mrb[38].mxu0 %vm10737_vm4, %v20826_v47 }
 0x945   : > { %16598 = vmatprep.mubr.msk.f32.mxu0 %vm10737_vm4, %v20833_v9 }
 0x948   : > { %16599 = vmatmul.mubr.msk.f32.gmra.mrb[40].mxu0 %vm10737_vm4, %v20838_v1 }
 0x949   : > { %16601 = vmatprep.mubr.msk.f32.mxu0 %vm10737_vm4, %v20845_v40 }
 0x94c   : > { %16602 = vmatmul.mubr.msk.f32.gmra.mrb[42].mxu0 %vm10737_vm4, %v20850_v11 }
 0x94d   : > { %16604 = vmatprep.mubr.msk.f32.mxu0 %vm10737_vm4, %v20857_v35 }
 0x950   : > { %16605 = vmatmul.mubr.msk.f32.gmra.mrb[44].mxu0 %vm10737_vm4, %v20862_v23 }
 0x951   : > { %16607 = vmatprep.mubr.msk.f32.mxu0 %vm10737_vm4, %v20869_v20 }
 0x954   : > { %16608 = vmatmul.mubr.msk.f32.gmra.mrb[46].mxu0 %vm10737_vm4, %v20874_v21 }
 0x955   : > { %16610 = vmatprep.mubr.msk.f32.mxu0 %vm10737_vm4, %v20881_v16 }
 0x958   : > { %16611 = vmatmul.mubr.msk.f32.gmra.mrb[48].mxu0 %vm10737_vm4, %v20886_v10 }
 0x959   : > { %16613 = vmatprep.mubr.msk.f32.mxu0 %vm10737_vm4, %v20893_v14 }
 0x95c   : > { %16614 = vmatmul.mubr.msk.f32.gmra.mrb[50].mxu0 %vm10737_vm4, %v20898_v36 }
 0x95d   : > { %16616 = vmatprep.mubr.msk.f32.mxu0 %vm10737_vm4, %v20905_v30 }
 0x960   : > { %16617 = vmatmul.mubr.msk.f32.gmra.mrb[52].mxu0 %vm10737_vm4, %v20910_v41 }
 0x961   : > { %16619 = vmatprep.mubr.msk.f32.mxu0 %vm10737_vm4, %v20917_v15 }
 0x964   : > { %16620 = vmatmul.mubr.msk.f32.gmra.mrb[54].mxu0 %vm10737_vm4, %v20922_v3 }
 0x965   : > { %16622 = vmatprep.mubr.msk.f32.mxu0 %vm10737_vm4, %v20927_v48 }
 0x968   : > { %16623 = vmatmul.mubr.msk.f32.gmra.mrb[56].mxu0 %vm10737_vm4, %v20932_v37 }
 0x969   : > { %16625 = vmatprep.mubr.msk.f32.mxu0 %vm10737_vm4, %v20937_v18 }
 0x96c   : > { %16626 = vmatmul.mubr.msk.f32.gmra.mrb[58].mxu0 %vm10737_vm4, %v20942_v25 }
 0x96d   : > { %16628 = vmatprep.mubr.msk.f32.mxu0 %vm10737_vm4, %v20947_v51 }
 0x970   : > { %16629 = vmatmul.mubr.msk.f32.gmra.mrb[60].mxu0 %vm10737_vm4, %v20952_v56 }
 0x971   : > { %16631 = vmatprep.mubr.msk.f32.mxu0 %vm10737_vm4, %v20956_v59 }
 0x974   : > { %16632 = vmatmul.mubr.msk.f32.gmra.mrb[62].mxu0 %vm10737_vm4, %v20960_v0 }
 0x975   : > { %16634 = vmatprep.mubr.msk.f32.mxu0 %vm10737_vm4, %v21099_v62 }
 0x978   : > { %16635 = vmatmul.mubr.msk.f32.gmra.mrb[64].mxu0 %vm10737_vm4, %v21103_v26 }
 0x979   : > { %16641 = vmatprep.mubr.msk.f32.mxu0 %vm10737_vm4, %v20809_v42  ;;  %v11787_v42 = vld [vmem:[#allocation5 + $0x120] sm:$0xff] }
 0x97c   : > { %16642 = vmatmul.mubr.msk.f32.vlgmr.msra.gmra.mrb[34].mxu0 %vm10737_vm4, %v20814_v44  ;;  %v11788_v44 = vld [vmem:[#allocation5 + $0x128] sm:$0xff] }
 0x97d   : > { %16960 = vmatpush3.bf16.msra.mxu0 %v16957_v28  ;;  %16644 = vmatprep.mubr.msk.f32.mxu0 %vm10737_vm4, %v20821_v39 }
 0x980   : > { %16645 = vmatmul.mubr.msk.f32.gmra.mrb[36].mxu0 %vm10737_vm4, %v20826_v47 }
 0x981   : > { %16647 = vmatprep.mubr.msk.f32.mxu0 %vm10737_vm4, %v20833_v9 }
 0x984   : > { %16648 = vmatmul.mubr.msk.f32.gmra.mrb[38].mxu0 %vm10737_vm4, %v20838_v1 }
 0x985   : > { %16650 = vmatprep.mubr.msk.f32.mxu0 %vm10737_vm4, %v20845_v40 }
 0x988   : > { %16651 = vmatmul.mubr.msk.f32.gmra.mrb[40].mxu0 %vm10737_vm4, %v20850_v11 }
 0x989   : > { %16653 = vmatprep.mubr.msk.f32.mxu0 %vm10737_vm4, %v20857_v35 }
 0x98c   : > { %16654 = vmatmul.mubr.msk.f32.gmra.mrb[42].mxu0 %vm10737_vm4, %v20862_v23 }
 0x98d   : > { %16656 = vmatprep.mubr.msk.f32.mxu0 %vm10737_vm4, %v20869_v20 }
 0x990   : > { %16657 = vmatmul.mubr.msk.f32.gmra.mrb[44].mxu0 %vm10737_vm4, %v20874_v21 }
 0x991   : > { %16659 = vmatprep.mubr.msk.f32.mxu0 %vm10737_vm4, %v20881_v16 }
 0x994   : > { %16660 = vmatmul.mubr.msk.f32.gmra.mrb[46].mxu0 %vm10737_vm4, %v20886_v10 }
 0x995   : > { %16662 = vmatprep.mubr.msk.f32.mxu0 %vm10737_vm4, %v20893_v14 }
 0x998   : > { %16663 = vmatmul.mubr.msk.f32.gmra.mrb[48].mxu0 %vm10737_vm4, %v20898_v36 }
 0x999   : > { %16665 = vmatprep.mubr.msk.f32.mxu0 %vm10737_vm4, %v20905_v30 }
 0x99c   : > { %16666 = vmatmul.mubr.msk.f32.gmra.mrb[50].mxu0 %vm10737_vm4, %v20910_v41 }
 0x99d   : > { %16668 = vmatprep.mubr.msk.f32.mxu0 %vm10737_vm4, %v20917_v15 }
 0x9a0   : > { %16669 = vmatmul.mubr.msk.f32.gmra.mrb[52].mxu0 %vm10737_vm4, %v20922_v3 }
 0x9a1   : > { %16671 = vmatprep.mubr.msk.f32.mxu0 %vm10737_vm4, %v20927_v48 }
 0x9a4   : > { %16672 = vmatmul.mubr.msk.f32.gmra.mrb[54].mxu0 %vm10737_vm4, %v20932_v37 }
 0x9a5   : > { %16674 = vmatprep.mubr.msk.f32.mxu0 %vm10737_vm4, %v20937_v18 }
 0x9a8   : > { %16675 = vmatmul.mubr.msk.f32.gmra.mrb[56].mxu0 %vm10737_vm4, %v20942_v25 }
 0x9a9   : > { %16677 = vmatprep.mubr.msk.f32.mxu0 %vm10737_vm4, %v20947_v51 }
 0x9ac   : > { %16678 = vmatmul.mubr.msk.f32.gmra.mrb[58].mxu0 %vm10737_vm4, %v20952_v56 }
 0x9ad   : > { %16680 = vmatprep.mubr.msk.f32.mxu0 %vm10737_vm4, %v20956_v59 }
 0x9b0   : > { %16681 = vmatmul.mubr.msk.f32.gmra.mrb[60].mxu0 %vm10737_vm4, %v20960_v0 }
 0x9b1   : > { %16683 = vmatprep.mubr.msk.f32.mxu0 %vm10737_vm4, %v21099_v62 }
 0x9b4   : > { %16684 = vmatmul.mubr.msk.f32.gmra.mrb[62].mxu0 %vm10737_vm4, %v21103_v26 }
 0x9b5   : > { %16686 = vmatprep.mubr.msk.f32.mxu0 %vm10737_vm4, %v11787_v42 }
 0x9b8   : > { %16687 = vmatmul.mubr.msk.f32.gmra.mrb[64].mxu0 %vm10737_vm4, %v11788_v44 }
 0x9b9   : > { %16693 = vmatprep.mubr.msk.f32.mxu0 %vm10737_vm4, %v20821_v39  ;;  %v12175_v39 = vld [vmem:[#allocation5 + $0x130] sm:$0xff] }
 0x9bc   : > { %16694 = vmatmul.mubr.msk.f32.vlgmr.msra.gmra.mrb[34].mxu0 %vm10737_vm4, %v20826_v47  ;;  %v12176_v47 = vld [vmem:[#allocation5 + $0x138] sm:$0xff] }
 0x9bd   : > { %16696 = vmatprep.mubr.msk.f32.mxu0 %vm10737_vm4, %v20833_v9  ;;  %v21232_v9 = vld [vmem:[%s21348_s8] ss:$0 sm:$0xff] }
 0x9c0   : > { %16697 = vmatmul.mubr.msk.f32.gmra.mrb[36].mxu0 %vm10737_vm4, %v20838_v1 }
 0x9c1   : > { %16699 = vmatprep.mubr.msk.f32.mxu0 %vm10737_vm4, %v20845_v40 }
 0x9c4   : > { %16700 = vmatmul.mubr.msk.f32.gmra.mrb[38].mxu0 %vm10737_vm4, %v20850_v11 }
 0x9c5   : > { %16702 = vmatprep.mubr.msk.f32.mxu0 %vm10737_vm4, %v20857_v35 }
 0x9c8   : > { %16703 = vmatmul.mubr.msk.f32.gmra.mrb[40].mxu0 %vm10737_vm4, %v20862_v23 }
 0x9c9   : > { %16705 = vmatprep.mubr.msk.f32.mxu0 %vm10737_vm4, %v20869_v20 }
 0x9cc   : > { %16706 = vmatmul.mubr.msk.f32.gmra.mrb[42].mxu0 %vm10737_vm4, %v20874_v21 }
 0x9cd   : > { %16708 = vmatprep.mubr.msk.f32.mxu0 %vm10737_vm4, %v20881_v16 }
 0x9d0   : > { %16709 = vmatmul.mubr.msk.f32.gmra.mrb[44].mxu0 %vm10737_vm4, %v20886_v10 }
 0x9d1   : > { %16711 = vmatprep.mubr.msk.f32.mxu0 %vm10737_vm4, %v20893_v14 }
 0x9d4   : > { %16712 = vmatmul.mubr.msk.f32.gmra.mrb[46].mxu0 %vm10737_vm4, %v20898_v36 }
 0x9d5   : > { %16714 = vmatprep.mubr.msk.f32.mxu0 %vm10737_vm4, %v20905_v30 }
 0x9d8   : > { %16715 = vmatmul.mubr.msk.f32.gmra.mrb[48].mxu0 %vm10737_vm4, %v20910_v41 }
 0x9d9   : > { %16717 = vmatprep.mubr.msk.f32.mxu0 %vm10737_vm4, %v20917_v15 }
 0x9dc   : > { %16718 = vmatmul.mubr.msk.f32.gmra.mrb[50].mxu0 %vm10737_vm4, %v20922_v3 }
 0x9dd   : > { %16720 = vmatprep.mubr.msk.f32.mxu0 %vm10737_vm4, %v20927_v48 }
 0x9e0   : > { %16721 = vmatmul.mubr.msk.f32.gmra.mrb[52].mxu0 %vm10737_vm4, %v20932_v37 }
 0x9e1   : > { %16723 = vmatprep.mubr.msk.f32.mxu0 %vm10737_vm4, %v20937_v18 }
 0x9e4   : > { %16724 = vmatmul.mubr.msk.f32.gmra.mrb[54].mxu0 %vm10737_vm4, %v20942_v25 }
 0x9e5   : > { %16726 = vmatprep.mubr.msk.f32.mxu0 %vm10737_vm4, %v20947_v51 }
 0x9e8   : > { %16727 = vmatmul.mubr.msk.f32.gmra.mrb[56].mxu0 %vm10737_vm4, %v20952_v56 }
 0x9e9   : > { %16729 = vmatprep.mubr.msk.f32.mxu0 %vm10737_vm4, %v20956_v59 }
 0x9ec   : > { %16730 = vmatmul.mubr.msk.f32.gmra.mrb[58].mxu0 %vm10737_vm4, %v20960_v0 }
 0x9ed   : > { %16732 = vmatprep.mubr.msk.f32.mxu0 %vm10737_vm4, %v21099_v62 }
 0x9f0   : > { %16733 = vmatmul.mubr.msk.f32.gmra.mrb[60].mxu0 %vm10737_vm4, %v21103_v26 }
 0x9f1   : > { %16735 = vmatprep.mubr.msk.f32.mxu0 %vm10737_vm4, %v11787_v42 }
 0x9f4   : > { %16736 = vmatmul.mubr.msk.f32.gmra.mrb[62].mxu0 %vm10737_vm4, %v11788_v44 }
 0x9f5   : > { %16738 = vmatprep.mubr.msk.f32.mxu0 %vm10737_vm4, %v12175_v39 }
 0x9f8   : > { %16739 = vmatmul.mubr.msk.f32.gmra.mrb[64].mxu0 %vm10737_vm4, %v12176_v47 }
 0xa8f   : > { %v16695_v1 = vpop.f32.mrb[34].mxu0 }
 0xa90   : > { %v12541_v40 = vadd.f32 %v16695_v1, %v21232_v9  ;;  %v12342_v11 = vpop.f32.mrb[35].mxu0 }
 0xa91   : > { %v12540_v35 = vadd.f32 %v21232_v9, %v12342_v11 }
 0xa92   : > { %12574 = vst.msk [vmem:[%s21239_s15 + $0x8] sm:$0xff] %vm12572_vm5, %v12541_v40 }
 0xa93   : > { %12573 = vst.msk [vmem:[%s21239_s15] sm:$0xff] %vm12572_vm5, %v12540_v35  ;;  %v16698_v23 = vpop.f32.mrb[36].mxu0 }
 0xa94   : > { %v12543_v20 = vadd.f32 %v16698_v23, %v21232_v9  ;;  %v12352_v21 = vpop.f32.mrb[37].mxu0 }
 0xa95   : > { %v12542_v22 = vadd.f32 %v21232_v9, %v12352_v21 }
 0xa96   : > { %12576 = vst.msk [vmem:[%s21239_s15 + $0x18] sm:$0xff] %vm12572_vm5, %v12543_v20 }
 0xa97   : > { %12575 = vst.msk [vmem:[%s21239_s15 + $0x10] sm:$0xff] %vm12572_vm5, %v12542_v22  ;;  %v16701_v7 = vpop.f32.mrb[38].mxu0 }
 0xa98   : > { %v12545_v16 = vadd.f32 %v16701_v7, %v21232_v9  ;;  %v12362_v10 = vpop.f32.mrb[39].mxu0 }
 0xa99   : > { %v12544_v13 = vadd.f32 %v21232_v9, %v12362_v10 }
 0xa9a   : > { %12578 = vst.msk [vmem:[%s21239_s15 + $0x28] sm:$0xff] %vm12572_vm5, %v12545_v16 }
 0xa9b   : > { %12577 = vst.msk [vmem:[%s21239_s15 + $0x20] sm:$0xff] %vm12572_vm5, %v12544_v13  ;;  %v16704_v17 = vpop.f32.mrb[40].mxu0 }
 0xa9c   : > { %v12547_v27 = vadd.f32 %v16704_v17, %v21232_v9  ;;  %v12372_v29 = vpop.f32.mrb[41].mxu0 }
 0xa9d   : > { %v12546_v33 = vadd.f32 %v21232_v9, %v12372_v29 }
 0xa9e   : > { %12580 = vst.msk [vmem:[%s21239_s15 + $0x38] sm:$0xff] %vm12572_vm5, %v12547_v27 }
 0xa9f   : > { %12579 = vst.msk [vmem:[%s21239_s15 + $0x30] sm:$0xff] %vm12572_vm5, %v12546_v33  ;;  %v16707_v55 = vpop.f32.mrb[42].mxu0 }
 0xaa0   : > { %v12549_v14 = vadd.f32 %v16707_v55, %v21232_v9  ;;  %v12382_v36 = vpop.f32.mrb[43].mxu0 }
 0xaa1   : > { %v12548_v5 = vadd.f32 %v21232_v9, %v12382_v36 }
 0xaa2   : > { %12582 = vst.msk [vmem:[%s21239_s15 + $0x48] sm:$0xff] %vm12572_vm5, %v12549_v14 }
 0xaa3   : > { %12581 = vst.msk [vmem:[%s21239_s15 + $0x40] sm:$0xff] %vm12572_vm5, %v12548_v5  ;;  %v16710_v49 = vpop.f32.mrb[44].mxu0 }
 0xaa4   : > { %v12551_v19 = vadd.f32 %v16710_v49, %v21232_v9  ;;  %v12392_v2 = vpop.f32.mrb[45].mxu0 }
 0xaa5   : > { %v12550_v63 = vadd.f32 %v21232_v9, %v12392_v2 }
 0xaa6   : > { %12584 = vst.msk [vmem:[%s21239_s15 + $0x58] sm:$0xff] %vm12572_vm5, %v12551_v19 }
 0xaa7   : > { %12583 = vst.msk [vmem:[%s21239_s15 + $0x50] sm:$0xff] %vm12572_vm5, %v12550_v63  ;;  %v16713_v24 = vpop.f32.mrb[46].mxu0 }
 0xaa8   : > { %v12553_v30 = vadd.f32 %v16713_v24, %v21232_v9  ;;  %v12402_v41 = vpop.f32.mrb[47].mxu0 }
 0xaa9   : > { %v12552_v4 = vadd.f32 %v21232_v9, %v12402_v41 }
 0xaaa   : > { %12586 = vst.msk [vmem:[%s21239_s15 + $0x68] sm:$0xff] %vm12572_vm5, %v12553_v30 }
 0xaab   : > { %12585 = vst.msk [vmem:[%s21239_s15 + $0x60] sm:$0xff] %vm12572_vm5, %v12552_v4  ;;  %v16716_v50 = vpop.f32.mrb[48].mxu0 }
 0xaac   : > { %v12555_v32 = vadd.f32 %v16716_v50, %v21232_v9  ;;  %v12412_v58 = vpop.f32.mrb[49].mxu0 }
 0xaad   : > { %v12554_v61 = vadd.f32 %v21232_v9, %v12412_v58 }
 0xaae   : > { %12588 = vst.msk [vmem:[%s21239_s15 + $0x78] sm:$0xff] %vm12572_vm5, %v12555_v32 }
 0xaaf   : > { %12587 = vst.msk [vmem:[%s21239_s15 + $0x70] sm:$0xff] %vm12572_vm5, %v12554_v61  ;;  %v16719_v54 = vpop.f32.mrb[50].mxu0 }
 0xab0   : > { %v12557_v15 = vadd.f32 %v16719_v54, %v21232_v9  ;;  %v12422_v3 = vpop.f32.mrb[51].mxu0 }
 0xab1   : > { %v12556_v12 = vadd.f32 %v21232_v9, %v12422_v3 }
 0xab2   : > { %12590 = vst.msk [vmem:[%s21239_s15 + $0x88] sm:$0xff] %vm12572_vm5, %v12557_v15 }
 0xab3   : > { %12589 = vst.msk [vmem:[%s21239_s15 + $0x80] sm:$0xff] %vm12572_vm5, %v12556_v12  ;;  %v16722_v31 = vpop.f32.mrb[52].mxu0 }
 0xab4   : > { %v12559_v48 = vadd.f32 %v16722_v31, %v21232_v9  ;;  %v12432_v37 = vpop.f32.mrb[53].mxu0 }
 0xab5   : > { %v12558_v57 = vadd.f32 %v21232_v9, %v12432_v37 }
 0xab6   : > { %12592 = vst.msk [vmem:[%s21239_s15 + $0x98] sm:$0xff] %vm12572_vm5, %v12559_v48 }
 0xab7   : > { %12591 = vst.msk [vmem:[%s21239_s15 + $0x90] sm:$0xff] %vm12572_vm5, %v12558_v57  ;;  %v16725_v8 = vpop.f32.mrb[54].mxu0 }
 0xab8   : > { %v12561_v18 = vadd.f32 %v16725_v8, %v21232_v9  ;;  %v12442_v25 = vpop.f32.mrb[55].mxu0 }
 0xab9   : > { %v12560_v34 = vadd.f32 %v21232_v9, %v12442_v25 }
 0xaba   : > { %12594 = vst.msk [vmem:[%s21239_s15 + $0xa8] sm:$0xff] %vm12572_vm5, %v12561_v18 }
 0xabb   : > { %12593 = vst.msk [vmem:[%s21239_s15 + $0xa0] sm:$0xff] %vm12572_vm5, %v12560_v34  ;;  %v16728_v43 = vpop.f32.mrb[56].mxu0 }
 0xabc   : > { %v12563_v51 = vadd.f32 %v16728_v43, %v21232_v9  ;;  %v12452_v56 = vpop.f32.mrb[57].mxu0 }
 0xabd   : > { %v12562_v59 = vadd.f32 %v21232_v9, %v12452_v56 }
 0xabe   : > { %12596 = vst.msk [vmem:[%s21239_s15 + $0xb8] sm:$0xff] %vm12572_vm5, %v12563_v51 }
 0xabf   : > { %12595 = vst.msk [vmem:[%s21239_s15 + $0xb0] sm:$0xff] %vm12572_vm5, %v12562_v59  ;;  %v16731_v60 = vpop.f32.mrb[58].mxu0 }
 0xac0   : > { %v12565_v0 = vadd.f32 %v16731_v60, %v21232_v9  ;;  %v12462_v6 = vpop.f32.mrb[59].mxu0 }
 0xac1   : > { %v12564_v52 = vadd.f32 %v21232_v9, %v12462_v6 }
 0xac2   : > { %12598 = vst.msk [vmem:[%s21239_s15 + $0xc8] sm:$0xff] %vm12572_vm5, %v12565_v0 }
 0xac3   : > { %12597 = vst.msk [vmem:[%s21239_s15 + $0xc0] sm:$0xff] %vm12572_vm5, %v12564_v52  ;;  %v16734_v53 = vpop.f32.mrb[60].mxu0 }
 0xac4   : > { %v12567_v46 = vadd.f32 %v16734_v53, %v21232_v9  ;;  %v12472_v38 = vpop.f32.mrb[61].mxu0 }
 0xac5   : > { %v12566_v45 = vadd.f32 %v21232_v9, %v12472_v38 }
 0xac6   : > { %12600 = vst.msk [vmem:[%s21239_s15 + $0xd8] sm:$0xff] %vm12572_vm5, %v12567_v46 }
 0xac7   : > { %12599 = vst.msk [vmem:[%s21239_s15 + $0xd0] sm:$0xff] %vm12572_vm5, %v12566_v45  ;;  %v16737_v28 = vpop.f32.mrb[62].mxu0 }
 0xac8   : > { %v12569_v62 = vadd.f32 %v16737_v28, %v21232_v9  ;;  %v12482_v26 = vpop.f32.mrb[63].mxu0 }
 0xac9   : > { %v12568_v42 = vadd.f32 %v21232_v9, %v12482_v26 }
 0xaca   : > { %12602 = vst.msk [vmem:[%s21239_s15 + $0xe8] sm:$0xff] %vm12572_vm5, %v12569_v62 }
 0xacb   : > { %12601 = vst.msk [vmem:[%s21239_s15 + $0xe0] sm:$0xff] %vm12572_vm5, %v12568_v42  ;;  %v16740_v44 = vpop.f32.mrb[64].mxu0 }
 0xacc   : > { %v12571_v39 = vadd.f32 %v16740_v44, %v21232_v9  ;;  %v12492_v47 = vpop.f32.mrb[65].mxu0 }
 0xacd   : > { %v12570_v1 = vadd.f32 %v21232_v9, %v12492_v47 }
 0xace   : > { %12604 = vst.msk [vmem:[%s21239_s15 + $0xf8] sm:$0xff] %vm12572_vm5, %v12571_v39 }
 0xacf   : > { %12603 = vst.msk [vmem:[%s21239_s15 + $0xf0] sm:$0xff] %vm12572_vm5, %v12570_v1 }
 0xad0 PF: > { %s19_s30 = sadd.s32 1, %s18072_s30  }
 0xad1   : > { %p16_p4 = scmp.ge.s32.totalorder %s19_s30, 4  }
 0xad3   :  { %18 = sbr.rel (!%p16_p4) target bundleno = 1 (0x1), region = 114 }

</bundles_post_ra>
